<compile_context>
chip_gen: v6e
topology: v6e:2x2x1
jax: 0.10.0
libtpu: 0.0.40
codegen_flags: <defaults>
</compile_context>

<pallas_src>
import functools

import jax
import jax.numpy as jnp
from jax.experimental import pallas as pl
from jax.experimental.pallas import tpu as pltpu


# ----------------------------------------------------------------------------
# Fused kernel: conv3x3+bias -> batch stats -> BN+ReLU -> NCHW-flat output.
# ----------------------------------------------------------------------------
def fused_single_conv_kernel(x_ref, w_ref, b_ref, g_ref, bt_ref,   # inputs
                             o_ref,                                # output
                             xpad_ref, p_ref, conv_ref,            # VMEM scratch
                             *, eps):
    # x_ref   : (N, H, W, Cin)        unpadded NHWC input (whole batch)
    # w_ref   : (9*Cin, Cp)           im2col weights, Cout zero-padded to Cp=128
    # b_ref   : (1, Cp)               conv bias (padded)
    # g_ref   : (1, Cp)               BN gamma (padded)
    # bt_ref  : (1, Cp)               BN beta  (padded)
    # o_ref   : (N, Cout, H*W)        output, NCHW with H,W flattened (lane-dense)
    # xpad_ref: (H+2, W+2, Cin)       padded-image scratch (reused per image)
    # p_ref   : (H*W, 9*Cin)          im2col patch scratch
    # conv_ref: (N, H*W, Cp)          conv+bias result kept resident in VMEM
    N, H, W, Cin = x_ref.shape
    HW = H * W
    Cp = w_ref.shape[1]
    Cout = o_ref.shape[1]

    # ---- Pass 1: conv + bias per image, one wide MXU matmul each ------------
    ch_sum = jnp.zeros((1, Cp), jnp.float32)
    for n in range(N):  # N is tiny and static -> unrolled
        # In-kernel zero padding (avoids an extra padded copy of x in HBM).
        xpad_ref[...] = jnp.zeros_like(xpad_ref)
        xpad_ref[1:H + 1, 1:W + 1, :] = x_ref[n]

        # im2col once into VMEM scratch; column order (dy, dx, ci) matches w_ref.
        for dy in range(3):
            for dx in range(3):
                t = dy * 3 + dx
                p_ref[:, t * Cin:(t + 1) * Cin] = (
                    xpad_ref[dy:dy + H, dx:dx + W, :].reshape(HW, Cin))

        acc = jnp.dot(p_ref[...], w_ref[...],
                      preferred_element_type=jnp.float32)          # (HW, Cp)
        acc = acc + b_ref[...]
        conv_ref[n] = acc
        ch_sum = ch_sum + jnp.sum(acc, axis=0, keepdims=True)

    # ---- BatchNorm batch statistics (two-pass, biased variance) -------------
    count = jnp.float32(N * HW)
    mean = ch_sum / count                                          # (1, Cp)
    ch_ssq = jnp.zeros((1, Cp), jnp.float32)
    for n in range(N):
        d = conv_ref[n] - mean
        ch_ssq = ch_ssq + jnp.sum(d * d, axis=0, keepdims=True)
    var = ch_ssq / count
    inv_std = jax.lax.rsqrt(var + eps)
    scale = g_ref[...] * inv_std                                   # (1, Cp)
    shift = bt_ref[...] - mean * scale                             # (1, Cp)
    # Note: padded channels have gamma=0 -> scale=0, shift=0 -> output 0 (sliced away).

    # ---- Pass 2: BN + ReLU, transpose folded into the output store ----------
    for n in range(N):
        y = jnp.maximum(conv_ref[n] * scale + shift, 0.0)          # (HW, Cp)
        o_ref[n] = jnp.transpose(y)[:Cout, :]                      # (Cout, HW)


# ----------------------------------------------------------------------------
# Wrapper: PyTorch-layout params in, NCHW out.
# ----------------------------------------------------------------------------
def single_conv_forward(x_nchw, weight_oihw, bias, gamma, beta, eps=1e-5):
    """Forward pass of single_conv (train-mode BatchNorm batch statistics).

    x_nchw      : (N, Cin, H, W)    float32
    weight_oihw : (Cout, Cin, 3, 3) float32 (PyTorch layout)
    bias, gamma, beta : (Cout,)
    Returns (N, Cout, H, W) float32.
    """
    N, Cin, H, W = x_nchw.shape
    Cout = weight_oihw.shape[0]
    HW = H * W
    Hp, Wp = H + 2, W + 2
    K = 9 * Cin
    Cp = ((Cout + 127) // 128) * 128  # lane-dense padded channel count

    # Small glue: NCHW -> NHWC (tiny input; no spatial padding here).
    x_nhwc = jnp.transpose(x_nchw.astype(jnp.float32), (0, 2, 3, 1))

    # Weights OIHW -> (9*Cin, Cout) im2col layout, ordered (dy, dx, ci); pad Cout->Cp.
    w2 = jnp.transpose(weight_oihw.astype(jnp.float32), (2, 3, 1, 0)).reshape(K, Cout)
    w2 = jnp.pad(w2, ((0, 0), (0, Cp - Cout)))

    def pad_vec(v):
        return jnp.pad(v.astype(jnp.float32), (0, Cp - Cout)).reshape(1, Cp)

    b2, g2, bt2 = pad_vec(bias), pad_vec(gamma), pad_vec(beta)

    kernel = functools.partial(fused_single_conv_kernel, eps=float(eps))

    out_flat = pl.pallas_call(
        kernel,
        out_shape=jax.ShapeDtypeStruct((N, Cout, HW), jnp.float32),
        grid_spec=pltpu.PrefetchScalarGridSpec(
            num_scalar_prefetch=0,
            grid=(1,),  # whole batch in one block (toy shapes; see scaling note above)
            in_specs=[
                pl.BlockSpec((N, H, W, Cin), lambda i: (0, 0, 0, 0)),
                pl.BlockSpec((K, Cp), lambda i: (0, 0)),
                pl.BlockSpec((1, Cp), lambda i: (0, 0)),
                pl.BlockSpec((1, Cp), lambda i: (0, 0)),
                pl.BlockSpec((1, Cp), lambda i: (0, 0)),
            ],
            out_specs=pl.BlockSpec((N, Cout, HW), lambda i: (0, 0, 0)),
            scratch_shapes=[
                pltpu.VMEM((Hp, Wp, Cin), jnp.float32),   # padded image
                pltpu.VMEM((HW, K), jnp.float32),         # im2col patches
                pltpu.VMEM((N, HW, Cp), jnp.float32),     # conv+bias accumulator
            ],
        ),
        compiler_params=pltpu.CompilerParams(
            # Single grid step; the batch-stat dependency makes this inherently
            # sequential.  (For large N, split conv/BN passes and mark the conv
            # batch axis "parallel" to use v7x's two TensorCores.)
            dimension_semantics=("arbitrary",)),
    )(x_nhwc, w2, b2, g2, bt2)

    # (N, Cout, H*W) -> (N, Cout, H, W): contiguous reshape, no transpose.
    return out_flat.reshape(N, Cout, H, W)


# ----------------------------------------------------------------------------
# Pure-JAX reference (for numerical validation).
# ----------------------------------------------------------------------------
def _reference(x, w, b, gamma, beta, eps=1e-5):
    y = jax.lax.conv_general_dilated(
        x, w, window_strides=(1, 1), padding=((1, 1), (1, 1)),
        dimension_numbers=("NCHW", "OIHW", "NCHW"),
        precision=jax.lax.Precision.HIGHEST)
    y = y + b[None, :, None, None]
    mean = jnp.mean(y, axis=(0, 2, 3), keepdims=True)
    var = jnp.mean((y - mean) ** 2, axis=(0, 2, 3), keepdims=True)  # biased
    y = (y - mean) * jax.lax.rsqrt(var + eps)
    y = y * gamma[None, :, None, None] + beta[None, :, None, None]
    return jnp.maximum(y, 0.0)


if __name__ == "__main__":
    # Small shapes consistent with the module: batch=2, ch_in=4, ch_out=8, 16x16.
    N, Cin, Cout, H, W = 2, 4, 8, 16, 16

    key = jax.random.PRNGKey(0)
    kx, kw, kb = jax.random.split(key, 3)

    x = jax.random.normal(kx, (N, Cin, H, W), dtype=jnp.float32)
    weight = 0.1 * jax.random.normal(kw, (Cout, Cin, 3, 3), dtype=jnp.float32)
    bias = 0.05 * jax.random.normal(kb, (Cout,), dtype=jnp.float32)
    gamma = 1.0 + 0.1 * jnp.arange(Cout, dtype=jnp.float32)
    beta = 0.01 * jnp.arange(Cout, dtype=jnp.float32)

    out = single_conv_forward(x, weight, bias, gamma, beta)
    jax.block_until_ready(out)

    assert out.shape == (N, Cout, H, W)
    assert bool(jnp.all(out >= 0.0))  # ReLU sanity check

    ref = _reference(x, weight, bias, gamma, beta)
    max_err = float(jnp.max(jnp.abs(out - ref)))
    assert max_err < 5e-3, f"mismatch vs reference: max abs err = {max_err}"

    print("KERNEL_OK")
</pallas_src>

<mosaic_0001>
module attributes {stable_mosaic.version = 11 : i64} {
  func.func @fused_single_conv_kernel(%arg0: i32, %arg1: memref<2x16x16x4xf32, #tpu.memory_space<vmem>>, %arg2: memref<36x128xf32, #tpu.memory_space<vmem>>, %arg3: memref<1x128xf32, #tpu.memory_space<vmem>>, %arg4: memref<1x128xf32, #tpu.memory_space<vmem>>, %arg5: memref<1x128xf32, #tpu.memory_space<vmem>>, %arg6: memref<2x8x256xf32, #tpu.memory_space<vmem>>, %arg7: memref<18x18x4xf32, #tpu.memory_space<vmem>>, %arg8: memref<256x36xf32, #tpu.memory_space<vmem>>, %arg9: memref<2x256x128xf32, #tpu.memory_space<vmem>>) attributes {dimension_semantics = [#tpu.dimension_semantics<arbitrary>], iteration_bounds = array<i64: 1>, scalar_prefetch = 0 : i64, scratch_operands = 3 : i64, tpu.core_type = #tpu.core_type<tc>, window_params = [{pipeline_mode = #tpu.pipeline_mode<synchronous>, transform_indices = @transform_0, window_bounds = array<i64: 2, 16, 16, 4>}, {pipeline_mode = #tpu.pipeline_mode<synchronous>, transform_indices = @transform_1, window_bounds = array<i64: 36, 128>}, {pipeline_mode = #tpu.pipeline_mode<synchronous>, transform_indices = @transform_2, window_bounds = array<i64: 1, 128>}, {pipeline_mode = #tpu.pipeline_mode<synchronous>, transform_indices = @transform_3, window_bounds = array<i64: 1, 128>}, {pipeline_mode = #tpu.pipeline_mode<synchronous>, transform_indices = @transform_4, window_bounds = array<i64: 1, 128>}, {pipeline_mode = #tpu.pipeline_mode<synchronous>, transform_indices = @transform_5, window_bounds = array<i64: 2, 8, 256>}]} {
    %cst = arith.constant 0.000000e+00 : f32
    %0 = vector.broadcast %cst : f32 to vector<1x128xf32>
    %cst_0 = arith.constant 0.000000e+00 : f32
    %1 = vector.broadcast %cst_0 : f32 to vector<18x18x4xf32>
    %c0 = arith.constant 0 : index
    %c0_1 = arith.constant 0 : index
    %c0_2 = arith.constant 0 : index
    %2 = vector.load %arg7[%c0, %c0_1, %c0_2] : memref<18x18x4xf32, #tpu.memory_space<vmem>>, vector<18x18x4xf32>
    tpu.vector_store %arg7[%c0, %c0_1, %c0_2], %1 {strides = array<i32>} : memref<18x18x4xf32, #tpu.memory_space<vmem>>, vector<18x18x4xf32>,
    %c0_3 = arith.constant 0 : index
    %c0_4 = arith.constant 0 : index
    %c0_5 = arith.constant 0 : index
    %c0_6 = arith.constant 0 : index
    %3 = vector.load %arg1[%c0_3, %c0_4, %c0_5, %c0_6] : memref<2x16x16x4xf32, #tpu.memory_space<vmem>>, vector<1x16x16x4xf32>
    %4 = vector.shape_cast %3 : vector<1x16x16x4xf32> to vector<16x16x4xf32>
    %c1 = arith.constant 1 : index
    %c1_7 = arith.constant 1 : index
    %c0_8 = arith.constant 0 : index
    %5 = vector.load %arg7[%c1, %c1_7, %c0_8] : memref<18x18x4xf32, #tpu.memory_space<vmem>>, vector<16x16x4xf32>
    tpu.vector_store %arg7[%c1, %c1_7, %c0_8], %4 {strides = array<i32>} : memref<18x18x4xf32, #tpu.memory_space<vmem>>, vector<16x16x4xf32>,
    %c0_9 = arith.constant 0 : index
    %c0_10 = arith.constant 0 : index
    %c0_11 = arith.constant 0 : index
    %6 = vector.load %arg7[%c0_9, %c0_10, %c0_11] : memref<18x18x4xf32, #tpu.memory_space<vmem>>, vector<16x16x4xf32>
    %7 = vector.shape_cast %6 : vector<16x16x4xf32> to vector<256x4xf32>
    %c0_12 = arith.constant 0 : index
    %c0_13 = arith.constant 0 : index
    %8 = vector.load %arg8[%c0_12, %c0_13] : memref<256x36xf32, #tpu.memory_space<vmem>>, vector<256x4xf32>
    tpu.vector_store %arg8[%c0_12, %c0_13], %7 {strides = array<i32>} : memref<256x36xf32, #tpu.memory_space<vmem>>, vector<256x4xf32>,
    %c0_14 = arith.constant 0 : index
    %c1_15 = arith.constant 1 : index
    %c0_16 = arith.constant 0 : index
    %9 = vector.load %arg7[%c0_14, %c1_15, %c0_16] : memref<18x18x4xf32, #tpu.memory_space<vmem>>, vector<16x16x4xf32>
    %10 = vector.shape_cast %9 : vector<16x16x4xf32> to vector<256x4xf32>
    %c0_17 = arith.constant 0 : index
    %c4 = arith.constant 4 : index
    %11 = vector.load %arg8[%c0_17, %c4] : memref<256x36xf32, #tpu.memory_space<vmem>>, vector<256x4xf32>
    tpu.vector_store %arg8[%c0_17, %c4], %10 {strides = array<i32>} : memref<256x36xf32, #tpu.memory_space<vmem>>, vector<256x4xf32>,
    %c0_18 = arith.constant 0 : index
    %c2 = arith.constant 2 : index
    %c0_19 = arith.constant 0 : index
    %12 = vector.load %arg7[%c0_18, %c2, %c0_19] : memref<18x18x4xf32, #tpu.memory_space<vmem>>, vector<16x16x4xf32>
    %13 = vector.shape_cast %12 : vector<16x16x4xf32> to vector<256x4xf32>
    %c0_20 = arith.constant 0 : index
    %c8 = arith.constant 8 : index
    %14 = vector.load %arg8[%c0_20, %c8] : memref<256x36xf32, #tpu.memory_space<vmem>>, vector<256x4xf32>
    tpu.vector_store %arg8[%c0_20, %c8], %13 {strides = array<i32>} : memref<256x36xf32, #tpu.memory_space<vmem>>, vector<256x4xf32>,
    %c1_21 = arith.constant 1 : index
    %c0_22 = arith.constant 0 : index
    %c0_23 = arith.constant 0 : index
    %15 = vector.load %arg7[%c1_21, %c0_22, %c0_23] : memref<18x18x4xf32, #tpu.memory_space<vmem>>, vector<16x16x4xf32>
    %16 = vector.shape_cast %15 : vector<16x16x4xf32> to vector<256x4xf32>
    %c0_24 = arith.constant 0 : index
    %c12 = arith.constant 12 : index
    %17 = vector.load %arg8[%c0_24, %c12] : memref<256x36xf32, #tpu.memory_space<vmem>>, vector<256x4xf32>
    tpu.vector_store %arg8[%c0_24, %c12], %16 {strides = array<i32>} : memref<256x36xf32, #tpu.memory_space<vmem>>, vector<256x4xf32>,
    %c1_25 = arith.constant 1 : index
    %c1_26 = arith.constant 1 : index
    %c0_27 = arith.constant 0 : index
    %18 = vector.load %arg7[%c1_25, %c1_26, %c0_27] : memref<18x18x4xf32, #tpu.memory_space<vmem>>, vector<16x16x4xf32>
    %19 = vector.shape_cast %18 : vector<16x16x4xf32> to vector<256x4xf32>
    %c0_28 = arith.constant 0 : index
    %c16 = arith.constant 16 : index
    %20 = vector.load %arg8[%c0_28, %c16] : memref<256x36xf32, #tpu.memory_space<vmem>>, vector<256x4xf32>
    tpu.vector_store %arg8[%c0_28, %c16], %19 {strides = array<i32>} : memref<256x36xf32, #tpu.memory_space<vmem>>, vector<256x4xf32>,
    %c1_29 = arith.constant 1 : index
    %c2_30 = arith.constant 2 : index
    %c0_31 = arith.constant 0 : index
    %21 = vector.load %arg7[%c1_29, %c2_30, %c0_31] : memref<18x18x4xf32, #tpu.memory_space<vmem>>, vector<16x16x4xf32>
    %22 = vector.shape_cast %21 : vector<16x16x4xf32> to vector<256x4xf32>
    %c0_32 = arith.constant 0 : index
    %c20 = arith.constant 20 : index
    %23 = vector.load %arg8[%c0_32, %c20] : memref<256x36xf32, #tpu.memory_space<vmem>>, vector<256x4xf32>
    tpu.vector_store %arg8[%c0_32, %c20], %22 {strides = array<i32>} : memref<256x36xf32, #tpu.memory_space<vmem>>, vector<256x4xf32>,
    %c2_33 = arith.constant 2 : index
    %c0_34 = arith.constant 0 : index
    %c0_35 = arith.constant 0 : index
    %24 = vector.load %arg7[%c2_33, %c0_34, %c0_35] : memref<18x18x4xf32, #tpu.memory_space<vmem>>, vector<16x16x4xf32>
    %25 = vector.shape_cast %24 : vector<16x16x4xf32> to vector<256x4xf32>
    %c0_36 = arith.constant 0 : index
    %c24 = arith.constant 24 : index
    %26 = vector.load %arg8[%c0_36, %c24] : memref<256x36xf32, #tpu.memory_space<vmem>>, vector<256x4xf32>
    tpu.vector_store %arg8[%c0_36, %c24], %25 {strides = array<i32>} : memref<256x36xf32, #tpu.memory_space<vmem>>, vector<256x4xf32>,
    %c2_37 = arith.constant 2 : index
    %c1_38 = arith.constant 1 : index
    %c0_39 = arith.constant 0 : index
    %27 = vector.load %arg7[%c2_37, %c1_38, %c0_39] : memref<18x18x4xf32, #tpu.memory_space<vmem>>, vector<16x16x4xf32>
    %28 = vector.shape_cast %27 : vector<16x16x4xf32> to vector<256x4xf32>
    %c0_40 = arith.constant 0 : index
    %c28 = arith.constant 28 : index
    %29 = vector.load %arg8[%c0_40, %c28] : memref<256x36xf32, #tpu.memory_space<vmem>>, vector<256x4xf32>
    tpu.vector_store %arg8[%c0_40, %c28], %28 {strides = array<i32>} : memref<256x36xf32, #tpu.memory_space<vmem>>, vector<256x4xf32>,
    %c2_41 = arith.constant 2 : index
    %c2_42 = arith.constant 2 : index
    %c0_43 = arith.constant 0 : index
    %30 = vector.load %arg7[%c2_41, %c2_42, %c0_43] : memref<18x18x4xf32, #tpu.memory_space<vmem>>, vector<16x16x4xf32>
    %31 = vector.shape_cast %30 : vector<16x16x4xf32> to vector<256x4xf32>
    %c0_44 = arith.constant 0 : index
    %c32 = arith.constant 32 : index
    %32 = vector.load %arg8[%c0_44, %c32] : memref<256x36xf32, #tpu.memory_space<vmem>>, vector<256x4xf32>
    tpu.vector_store %arg8[%c0_44, %c32], %31 {strides = array<i32>} : memref<256x36xf32, #tpu.memory_space<vmem>>, vector<256x4xf32>,
    %c0_45 = arith.constant 0 : index
    %c0_46 = arith.constant 0 : index
    %33 = vector.load %arg8[%c0_45, %c0_46] : memref<256x36xf32, #tpu.memory_space<vmem>>, vector<256x36xf32>
    %c0_47 = arith.constant 0 : index
    %c0_48 = arith.constant 0 : index
    %34 = vector.load %arg2[%c0_47, %c0_48] : memref<36x128xf32, #tpu.memory_space<vmem>>, vector<36x128xf32>
    %cst_49 = arith.constant dense<0.000000e+00> : vector<256x128xf32>
    %35 = tpu.matmul %33, %34, %cst_49 {dimension_numbers = #tpu.dot_dimension_numbers<[1], [0], [0], [1], [0, 0, 1, 1], [], []>} : vector<256x36xf32>, vector<36x128xf32>, vector<256x128xf32> -> vector<256x128xf32>
    %c0_50 = arith.constant 0 : index
    %c0_51 = arith.constant 0 : index
    %36 = vector.load %arg3[%c0_50, %c0_51] : memref<1x128xf32, #tpu.memory_space<vmem>>, vector<1x128xf32>
    %37 = vector.broadcast %36 : vector<1x128xf32> to vector<256x128xf32>
    %38 = arith.addf %35, %37 : vector<256x128xf32>
    %c0_52 = arith.constant 0 : index
    %c0_53 = arith.constant 0 : index
    %c0_54 = arith.constant 0 : index
    %39 = vector.load %arg9[%c0_52, %c0_53, %c0_54] : memref<2x256x128xf32, #tpu.memory_space<vmem>>, vector<1x256x128xf32>
    %40 = vector.shape_cast %39 : vector<1x256x128xf32> to vector<256x128xf32>
    %41 = vector.shape_cast %38 : vector<256x128xf32> to vector<1x256x128xf32>
    tpu.vector_store %arg9[%c0_52, %c0_53, %c0_54], %41 {strides = array<i32>} : memref<2x256x128xf32, #tpu.memory_space<vmem>>, vector<1x256x128xf32>,
    %cst_55 = arith.constant dense<0.000000e+00> : vector<128xf32>
    %42 = vector.multi_reduction <add>, %38, %cst_55 [0] : vector<256x128xf32> to vector<128xf32>
    %43 = vector.shape_cast %42 : vector<128xf32> to vector<1x128xf32>
    %44 = arith.addf %0, %43 : vector<1x128xf32>
    %cst_56 = arith.constant 0.000000e+00 : f32
    %45 = vector.broadcast %cst_56 : f32 to vector<18x18x4xf32>
    %c0_57 = arith.constant 0 : index
    %c0_58 = arith.constant 0 : index
    %c0_59 = arith.constant 0 : index
    %46 = vector.load %arg7[%c0_57, %c0_58, %c0_59] : memref<18x18x4xf32, #tpu.memory_space<vmem>>, vector<18x18x4xf32>
    tpu.vector_store %arg7[%c0_57, %c0_58, %c0_59], %45 {strides = array<i32>} : memref<18x18x4xf32, #tpu.memory_space<vmem>>, vector<18x18x4xf32>,
    %c1_60 = arith.constant 1 : index
    %c0_61 = arith.constant 0 : index
    %c0_62 = arith.constant 0 : index
    %c0_63 = arith.constant 0 : index
    %47 = vector.load %arg1[%c1_60, %c0_61, %c0_62, %c0_63] : memref<2x16x16x4xf32, #tpu.memory_space<vmem>>, vector<1x16x16x4xf32>
    %48 = vector.shape_cast %47 : vector<1x16x16x4xf32> to vector<16x16x4xf32>
    %c1_64 = arith.constant 1 : index
    %c1_65 = arith.constant 1 : index
    %c0_66 = arith.constant 0 : index
    %49 = vector.load %arg7[%c1_64, %c1_65, %c0_66] : memref<18x18x4xf32, #tpu.memory_space<vmem>>, vector<16x16x4xf32>
    tpu.vector_store %arg7[%c1_64, %c1_65, %c0_66], %48 {strides = array<i32>} : memref<18x18x4xf32, #tpu.memory_space<vmem>>, vector<16x16x4xf32>,
    %c0_67 = arith.constant 0 : index
    %c0_68 = arith.constant 0 : index
    %c0_69 = arith.constant 0 : index
    %50 = vector.load %arg7[%c0_67, %c0_68, %c0_69] : memref<18x18x4xf32, #tpu.memory_space<vmem>>, vector<16x16x4xf32>
    %51 = vector.shape_cast %50 : vector<16x16x4xf32> to vector<256x4xf32>
    %c0_70 = arith.constant 0 : index
    %c0_71 = arith.constant 0 : index
    %52 = vector.load %arg8[%c0_70, %c0_71] : memref<256x36xf32, #tpu.memory_space<vmem>>, vector<256x4xf32>
    tpu.vector_store %arg8[%c0_70, %c0_71], %51 {strides = array<i32>} : memref<256x36xf32, #tpu.memory_space<vmem>>, vector<256x4xf32>,
    %c0_72 = arith.constant 0 : index
    %c1_73 = arith.constant 1 : index
    %c0_74 = arith.constant 0 : index
    %53 = vector.load %arg7[%c0_72, %c1_73, %c0_74] : memref<18x18x4xf32, #tpu.memory_space<vmem>>, vector<16x16x4xf32>
    %54 = vector.shape_cast %53 : vector<16x16x4xf32> to vector<256x4xf32>
    %c0_75 = arith.constant 0 : index
    %c4_76 = arith.constant 4 : index
    %55 = vector.load %arg8[%c0_75, %c4_76] : memref<256x36xf32, #tpu.memory_space<vmem>>, vector<256x4xf32>
    tpu.vector_store %arg8[%c0_75, %c4_76], %54 {strides = array<i32>} : memref<256x36xf32, #tpu.memory_space<vmem>>, vector<256x4xf32>,
    %c0_77 = arith.constant 0 : index
    %c2_78 = arith.constant 2 : index
    %c0_79 = arith.constant 0 : index
    %56 = vector.load %arg7[%c0_77, %c2_78, %c0_79] : memref<18x18x4xf32, #tpu.memory_space<vmem>>, vector<16x16x4xf32>
    %57 = vector.shape_cast %56 : vector<16x16x4xf32> to vector<256x4xf32>
    %c0_80 = arith.constant 0 : index
    %c8_81 = arith.constant 8 : index
    %58 = vector.load %arg8[%c0_80, %c8_81] : memref<256x36xf32, #tpu.memory_space<vmem>>, vector<256x4xf32>
    tpu.vector_store %arg8[%c0_80, %c8_81], %57 {strides = array<i32>} : memref<256x36xf32, #tpu.memory_space<vmem>>, vector<256x4xf32>,
    %c1_82 = arith.constant 1 : index
    %c0_83 = arith.constant 0 : index
    %c0_84 = arith.constant 0 : index
    %59 = vector.load %arg7[%c1_82, %c0_83, %c0_84] : memref<18x18x4xf32, #tpu.memory_space<vmem>>, vector<16x16x4xf32>
    %60 = vector.shape_cast %59 : vector<16x16x4xf32> to vector<256x4xf32>
    %c0_85 = arith.constant 0 : index
    %c12_86 = arith.constant 12 : index
    %61 = vector.load %arg8[%c0_85, %c12_86] : memref<256x36xf32, #tpu.memory_space<vmem>>, vector<256x4xf32>
    tpu.vector_store %arg8[%c0_85, %c12_86], %60 {strides = array<i32>} : memref<256x36xf32, #tpu.memory_space<vmem>>, vector<256x4xf32>,
    %c1_87 = arith.constant 1 : index
    %c1_88 = arith.constant 1 : index
    %c0_89 = arith.constant 0 : index
    %62 = vector.load %arg7[%c1_87, %c1_88, %c0_89] : memref<18x18x4xf32, #tpu.memory_space<vmem>>, vector<16x16x4xf32>
    %63 = vector.shape_cast %62 : vector<16x16x4xf32> to vector<256x4xf32>
    %c0_90 = arith.constant 0 : index
    %c16_91 = arith.constant 16 : index
    %64 = vector.load %arg8[%c0_90, %c16_91] : memref<256x36xf32, #tpu.memory_space<vmem>>, vector<256x4xf32>
    tpu.vector_store %arg8[%c0_90, %c16_91], %63 {strides = array<i32>} : memref<256x36xf32, #tpu.memory_space<vmem>>, vector<256x4xf32>,
    %c1_92 = arith.constant 1 : index
    %c2_93 = arith.constant 2 : index
    %c0_94 = arith.constant 0 : index
    %65 = vector.load %arg7[%c1_92, %c2_93, %c0_94] : memref<18x18x4xf32, #tpu.memory_space<vmem>>, vector<16x16x4xf32>
    %66 = vector.shape_cast %65 : vector<16x16x4xf32> to vector<256x4xf32>
    %c0_95 = arith.constant 0 : index
    %c20_96 = arith.constant 20 : index
    %67 = vector.load %arg8[%c0_95, %c20_96] : memref<256x36xf32, #tpu.memory_space<vmem>>, vector<256x4xf32>
    tpu.vector_store %arg8[%c0_95, %c20_96], %66 {strides = array<i32>} : memref<256x36xf32, #tpu.memory_space<vmem>>, vector<256x4xf32>,
    %c2_97 = arith.constant 2 : index
    %c0_98 = arith.constant 0 : index
    %c0_99 = arith.constant 0 : index
    %68 = vector.load %arg7[%c2_97, %c0_98, %c0_99] : memref<18x18x4xf32, #tpu.memory_space<vmem>>, vector<16x16x4xf32>
    %69 = vector.shape_cast %68 : vector<16x16x4xf32> to vector<256x4xf32>
    %c0_100 = arith.constant 0 : index
    %c24_101 = arith.constant 24 : index
    %70 = vector.load %arg8[%c0_100, %c24_101] : memref<256x36xf32, #tpu.memory_space<vmem>>, vector<256x4xf32>
    tpu.vector_store %arg8[%c0_100, %c24_101], %69 {strides = array<i32>} : memref<256x36xf32, #tpu.memory_space<vmem>>, vector<256x4xf32>,
    %c2_102 = arith.constant 2 : index
    %c1_103 = arith.constant 1 : index
    %c0_104 = arith.constant 0 : index
    %71 = vector.load %arg7[%c2_102, %c1_103, %c0_104] : memref<18x18x4xf32, #tpu.memory_space<vmem>>, vector<16x16x4xf32>
    %72 = vector.shape_cast %71 : vector<16x16x4xf32> to vector<256x4xf32>
    %c0_105 = arith.constant 0 : index
    %c28_106 = arith.constant 28 : index
    %73 = vector.load %arg8[%c0_105, %c28_106] : memref<256x36xf32, #tpu.memory_space<vmem>>, vector<256x4xf32>
    tpu.vector_store %arg8[%c0_105, %c28_106], %72 {strides = array<i32>} : memref<256x36xf32, #tpu.memory_space<vmem>>, vector<256x4xf32>,
    %c2_107 = arith.constant 2 : index
    %c2_108 = arith.constant 2 : index
    %c0_109 = arith.constant 0 : index
    %74 = vector.load %arg7[%c2_107, %c2_108, %c0_109] : memref<18x18x4xf32, #tpu.memory_space<vmem>>, vector<16x16x4xf32>
    %75 = vector.shape_cast %74 : vector<16x16x4xf32> to vector<256x4xf32>
    %c0_110 = arith.constant 0 : index
    %c32_111 = arith.constant 32 : index
    %76 = vector.load %arg8[%c0_110, %c32_111] : memref<256x36xf32, #tpu.memory_space<vmem>>, vector<256x4xf32>
    tpu.vector_store %arg8[%c0_110, %c32_111], %75 {strides = array<i32>} : memref<256x36xf32, #tpu.memory_space<vmem>>, vector<256x4xf32>,
    %c0_112 = arith.constant 0 : index
    %c0_113 = arith.constant 0 : index
    %77 = vector.load %arg8[%c0_112, %c0_113] : memref<256x36xf32, #tpu.memory_space<vmem>>, vector<256x36xf32>
    %c0_114 = arith.constant 0 : index
    %c0_115 = arith.constant 0 : index
    %78 = vector.load %arg2[%c0_114, %c0_115] : memref<36x128xf32, #tpu.memory_space<vmem>>, vector<36x128xf32>
    %cst_116 = arith.constant dense<0.000000e+00> : vector<256x128xf32>
    %79 = tpu.matmul %77, %78, %cst_116 {dimension_numbers = #tpu.dot_dimension_numbers<[1], [0], [0], [1], [0, 0, 1, 1], [], []>} : vector<256x36xf32>, vector<36x128xf32>, vector<256x128xf32> -> vector<256x128xf32>
    %c0_117 = arith.constant 0 : index
    %c0_118 = arith.constant 0 : index
    %80 = vector.load %arg3[%c0_117, %c0_118] : memref<1x128xf32, #tpu.memory_space<vmem>>, vector<1x128xf32>
    %81 = vector.broadcast %80 : vector<1x128xf32> to vector<256x128xf32>
    %82 = arith.addf %79, %81 : vector<256x128xf32>
    %c1_119 = arith.constant 1 : index
    %c0_120 = arith.constant 0 : index
    %c0_121 = arith.constant 0 : index
    %83 = vector.load %arg9[%c1_119, %c0_120, %c0_121] : memref<2x256x128xf32, #tpu.memory_space<vmem>>, vector<1x256x128xf32>
    %84 = vector.shape_cast %83 : vector<1x256x128xf32> to vector<256x128xf32>
    %85 = vector.shape_cast %82 : vector<256x128xf32> to vector<1x256x128xf32>
    tpu.vector_store %arg9[%c1_119, %c0_120, %c0_121], %85 {strides = array<i32>} : memref<2x256x128xf32, #tpu.memory_space<vmem>>, vector<1x256x128xf32>,
    %cst_122 = arith.constant dense<0.000000e+00> : vector<128xf32>
    %86 = vector.multi_reduction <add>, %82, %cst_122 [0] : vector<256x128xf32> to vector<128xf32>
    %87 = vector.shape_cast %86 : vector<128xf32> to vector<1x128xf32>
    %88 = arith.addf %44, %87 : vector<1x128xf32>
    %cst_123 = arith.constant 5.120000e+02 : f32
    %89 = vector.broadcast %cst_123 : f32 to vector<1x128xf32>
    %90 = arith.divf %88, %89 : vector<1x128xf32>
    %cst_124 = arith.constant 0.000000e+00 : f32
    %91 = vector.broadcast %cst_124 : f32 to vector<1x128xf32>
    %c0_125 = arith.constant 0 : index
    %c0_126 = arith.constant 0 : index
    %c0_127 = arith.constant 0 : index
    %92 = vector.load %arg9[%c0_125, %c0_126, %c0_127] : memref<2x256x128xf32, #tpu.memory_space<vmem>>, vector<1x256x128xf32>
    %93 = vector.shape_cast %92 : vector<1x256x128xf32> to vector<256x128xf32>
    %94 = vector.broadcast %90 : vector<1x128xf32> to vector<256x128xf32>
    %95 = arith.subf %93, %94 : vector<256x128xf32>
    %96 = arith.mulf %95, %95 : vector<256x128xf32>
    %cst_128 = arith.constant dense<0.000000e+00> : vector<128xf32>
    %97 = vector.multi_reduction <add>, %96, %cst_128 [0] : vector<256x128xf32> to vector<128xf32>
    %98 = vector.shape_cast %97 : vector<128xf32> to vector<1x128xf32>
    %99 = arith.addf %91, %98 : vector<1x128xf32>
    %c1_129 = arith.constant 1 : index
    %c0_130 = arith.constant 0 : index
    %c0_131 = arith.constant 0 : index
    %100 = vector.load %arg9[%c1_129, %c0_130, %c0_131] : memref<2x256x128xf32, #tpu.memory_space<vmem>>, vector<1x256x128xf32>
    %101 = vector.shape_cast %100 : vector<1x256x128xf32> to vector<256x128xf32>
    %102 = vector.broadcast %90 : vector<1x128xf32> to vector<256x128xf32>
    %103 = arith.subf %101, %102 : vector<256x128xf32>
    %104 = arith.mulf %103, %103 : vector<256x128xf32>
    %cst_132 = arith.constant dense<0.000000e+00> : vector<128xf32>
    %105 = vector.multi_reduction <add>, %104, %cst_132 [0] : vector<256x128xf32> to vector<128xf32>
    %106 = vector.shape_cast %105 : vector<128xf32> to vector<1x128xf32>
    %107 = arith.addf %99, %106 : vector<1x128xf32>
    %cst_133 = arith.constant 5.120000e+02 : f32
    %108 = vector.broadcast %cst_133 : f32 to vector<1x128xf32>
    %109 = arith.divf %107, %108 : vector<1x128xf32>
    %cst_134 = arith.constant 9.99999974E-6 : f32
    %110 = vector.broadcast %cst_134 : f32 to vector<1x128xf32>
    %111 = arith.addf %109, %110 : vector<1x128xf32>
    %112 = math.rsqrt %111 : vector<1x128xf32>
    %c0_135 = arith.constant 0 : index
    %c0_136 = arith.constant 0 : index
    %113 = vector.load %arg4[%c0_135, %c0_136] : memref<1x128xf32, #tpu.memory_space<vmem>>, vector<1x128xf32>
    %114 = arith.mulf %113, %112 : vector<1x128xf32>
    %c0_137 = arith.constant 0 : index
    %c0_138 = arith.constant 0 : index
    %115 = vector.load %arg5[%c0_137, %c0_138] : memref<1x128xf32, #tpu.memory_space<vmem>>, vector<1x128xf32>
    %116 = arith.mulf %90, %114 : vector<1x128xf32>
    %117 = arith.subf %115, %116 : vector<1x128xf32>
    %c0_139 = arith.constant 0 : index
    %c0_140 = arith.constant 0 : index
    %c0_141 = arith.constant 0 : index
    %118 = vector.load %arg9[%c0_139, %c0_140, %c0_141] : memref<2x256x128xf32, #tpu.memory_space<vmem>>, vector<1x256x128xf32>
    %119 = vector.shape_cast %118 : vector<1x256x128xf32> to vector<256x128xf32>
    %120 = vector.broadcast %114 : vector<1x128xf32> to vector<256x128xf32>
    %121 = arith.mulf %119, %120 : vector<256x128xf32>
    %122 = vector.broadcast %117 : vector<1x128xf32> to vector<256x128xf32>
    %123 = arith.addf %121, %122 : vector<256x128xf32>
    %cst_142 = arith.constant 0.000000e+00 : f32
    %124 = vector.broadcast %cst_142 : f32 to vector<256x128xf32>
    %125 = arith.maximumf %123, %124 : vector<256x128xf32>
    %126 = tpu.transpose %125, [1, 0] : vector<256x128xf32> -> vector<128x256xf32>
    %127 = vector.extract_strided_slice %126 {offsets = [0, 0], sizes = [8, 256], strides = [1, 1]} : vector<128x256xf32> to vector<8x256xf32>
    %c0_143 = arith.constant 0 : index
    %c0_144 = arith.constant 0 : index
    %c0_145 = arith.constant 0 : index
    %128 = vector.load %arg6[%c0_143, %c0_144, %c0_145] : memref<2x8x256xf32, #tpu.memory_space<vmem>>, vector<1x8x256xf32>
    %129 = vector.shape_cast %128 : vector<1x8x256xf32> to vector<8x256xf32>
    %130 = vector.shape_cast %127 : vector<8x256xf32> to vector<1x8x256xf32>
    tpu.vector_store %arg6[%c0_143, %c0_144, %c0_145], %130 {strides = array<i32>} : memref<2x8x256xf32, #tpu.memory_space<vmem>>, vector<1x8x256xf32>,
    %c1_146 = arith.constant 1 : index
    %c0_147 = arith.constant 0 : index
    %c0_148 = arith.constant 0 : index
    %131 = vector.load %arg9[%c1_146, %c0_147, %c0_148] : memref<2x256x128xf32, #tpu.memory_space<vmem>>, vector<1x256x128xf32>
    %132 = vector.shape_cast %131 : vector<1x256x128xf32> to vector<256x128xf32>
    %133 = vector.broadcast %114 : vector<1x128xf32> to vector<256x128xf32>
    %134 = arith.mulf %132, %133 : vector<256x128xf32>
    %135 = vector.broadcast %117 : vector<1x128xf32> to vector<256x128xf32>
    %136 = arith.addf %134, %135 : vector<256x128xf32>
    %cst_149 = arith.constant 0.000000e+00 : f32
    %137 = vector.broadcast %cst_149 : f32 to vector<256x128xf32>
    %138 = arith.maximumf %136, %137 : vector<256x128xf32>
    %139 = tpu.transpose %138, [1, 0] : vector<256x128xf32> -> vector<128x256xf32>
    %140 = vector.extract_strided_slice %139 {offsets = [0, 0], sizes = [8, 256], strides = [1, 1]} : vector<128x256xf32> to vector<8x256xf32>
    %c1_150 = arith.constant 1 : index
    %c0_151 = arith.constant 0 : index
    %c0_152 = arith.constant 0 : index
    %141 = vector.load %arg6[%c1_150, %c0_151, %c0_152] : memref<2x8x256xf32, #tpu.memory_space<vmem>>, vector<1x8x256xf32>
    %142 = vector.shape_cast %141 : vector<1x8x256xf32> to vector<8x256xf32>
    %143 = vector.shape_cast %140 : vector<8x256xf32> to vector<1x8x256xf32>
    tpu.vector_store %arg6[%c1_150, %c0_151, %c0_152], %143 {strides = array<i32>} : memref<2x8x256xf32, #tpu.memory_space<vmem>>, vector<1x8x256xf32>,
    return
  }
  func.func @transform_0(%arg0: i32) -> (i32, i32, i32, i32) {
    %c0_i32 = arith.constant 0 : i32
    %c0_i32_0 = arith.constant 0 : i32
    %c0_i32_1 = arith.constant 0 : i32
    %c0_i32_2 = arith.constant 0 : i32
    %c0_i32_3 = arith.constant 0 : i32
    return %c0_i32, %c0_i32_0, %c0_i32_1, %c0_i32_2 : i32, i32, i32, i32
  }
  func.func @transform_1(%arg0: i32) -> (i32, i32) {
    %c0_i32 = arith.constant 0 : i32
    %c0_i32_0 = arith.constant 0 : i32
    %c0_i32_1 = arith.constant 0 : i32
    return %c0_i32, %c0_i32_0 : i32, i32
  }
  func.func @transform_2(%arg0: i32) -> (i32, i32) {
    %c0_i32 = arith.constant 0 : i32
    %c0_i32_0 = arith.constant 0 : i32
    %c0_i32_1 = arith.constant 0 : i32
    return %c0_i32, %c0_i32_0 : i32, i32
  }
  func.func @transform_3(%arg0: i32) -> (i32, i32) {
    %c0_i32 = arith.constant 0 : i32
    %c0_i32_0 = arith.constant 0 : i32
    %c0_i32_1 = arith.constant 0 : i32
    return %c0_i32, %c0_i32_0 : i32, i32
  }
  func.func @transform_4(%arg0: i32) -> (i32, i32) {
    %c0_i32 = arith.constant 0 : i32
    %c0_i32_0 = arith.constant 0 : i32
    %c0_i32_1 = arith.constant 0 : i32
    return %c0_i32, %c0_i32_0 : i32, i32
  }
  func.func @transform_5(%arg0: i32) -> (i32, i32, i32) {
    %c0_i32 = arith.constant 0 : i32
    %c0_i32_0 = arith.constant 0 : i32
    %c0_i32_1 = arith.constant 0 : i32
    %c0_i32_2 = arith.constant 0 : i32
    return %c0_i32, %c0_i32_0, %c0_i32_1 : i32, i32, i32
  }
}

</mosaic_0001>

<bundles_post_ra>
// kernel: tpu_custom_call.1
= control target key start
LH: loop header
LB: loop body
LE: loop exit
PB: predicated region body
PF: predicated region fallthrough
CT: control target
= control target key end

     0   :  { %vm21_vm0 = vcmask 31744   ;;  %vm24_vm1 = vcmask 25600   ;;  %v8544_v2 = vmov 0.0   ;;  %s5338_s16 = smov 4   ;;  %s8538_s0 = inlined_call_operand.vmem [shape: f32[2,16,16,4], index: 0, kind: input, shape index: {}]   ;;  %s8539_s1 = inlined_call_operand.vmem [shape: f32[36,128], index: 1, kind: input, shape index: {}]   ;;  %s8540_s2 = inlined_call_operand.vmem [shape: f32[1,128], index: 2, kind: input, shape index: {}]   ;;  %s8541_s3 = inlined_call_operand.vmem [shape: f32[1,128], index: 3, kind: input, shape index: {}]   ;;  %s8542_s4 = inlined_call_operand.vmem [shape: f32[1,128], index: 4, kind: input, shape index: {}]   ;;  %s8543_s5 = inlined_call_operand.hbm [shape: f32[2,8,256], index: 5, kind: output, shape index: {}]  }
   0x1   :  { %v77_v0 = vld [vmem:[%s8538_s0] sm:$0xff]  ;;  %v78_v1 = vld [vmem:[%s8538_s0 + $0x8] sm:$0xff]  ;;  %22 = vst.msk [vmem:[#allocation2] sm:$0xff] %vm21_vm0, %v8544_v2  ;;  %23 = vst.msk [vmem:[#allocation2 + $0x8] sm:$0xff] %vm21_vm0, %v8544_v2 }
   0x2   :  { %26 = vst.msk [vmem:[#allocation2 + $0x18] sm:$0xff] %vm21_vm0, %v8544_v2  ;;  %27 = vst.msk [vmem:[#allocation2 + $0x20] sm:$0xff] %vm21_vm0, %v8544_v2  ;;  %v79_v3 = vld [vmem:[%s8538_s0 + $0x10] sm:$0xff]  ;;  %v80_v4 = vld [vmem:[%s8538_s0 + $0x18] sm:$0xff] }
   0x3   :  { %29 = vst.msk [vmem:[#allocation2 + $0x30] sm:$0xff] %vm21_vm0, %v8544_v2  ;;  %30 = vst.msk [vmem:[#allocation2 + $0x38] sm:$0xff] %vm21_vm0, %v8544_v2  ;;  %v81_v5 = vld [vmem:[%s8538_s0 + $0x20] sm:$0xff]  ;;  %v82_v6 = vld [vmem:[%s8538_s0 + $0x28] sm:$0xff] }
   0x4   :  { %32 = vst.msk [vmem:[#allocation2 + $0x48] sm:$0xff] %vm21_vm0, %v8544_v2  ;;  %33 = vst.msk [vmem:[#allocation2 + $0x50] sm:$0xff] %vm21_vm0, %v8544_v2  ;;  %v83_v7 = vld [vmem:[%s8538_s0 + $0x30] sm:$0xff]  ;;  %v84_v8 = vld [vmem:[%s8538_s0 + $0x38] sm:$0xff] }
   0x5   :  { %35 = vst.msk [vmem:[#allocation2 + $0x60] sm:$0xff] %vm21_vm0, %v8544_v2  ;;  %36 = vst.msk [vmem:[#allocation2 + $0x68] sm:$0xff] %vm21_vm0, %v8544_v2  ;;  %v85_v9 = vld [vmem:[%s8538_s0 + $0x40] sm:$0xff]  ;;  %v86_v10 = vld [vmem:[%s8538_s0 + $0x48] sm:$0xff] }
   0x6   :  { %38 = vst.msk [vmem:[#allocation2 + $0x78] sm:$0xff] %vm21_vm0, %v8544_v2  ;;  %39 = vst.msk [vmem:[#allocation2 + $0x80] sm:$0xff] %vm21_vm0, %v8544_v2  ;;  %v87_v11 = vld [vmem:[%s8538_s0 + $0x50] sm:$0xff]  ;;  %v88_v12 = vld [vmem:[%s8538_s0 + $0x58] sm:$0xff] }
   0x7   :  { %41 = vst.msk [vmem:[#allocation2 + $0x90] sm:$0xff] %vm21_vm0, %v8544_v2  ;;  %42 = vst.msk [vmem:[#allocation2 + $0x98] sm:$0xff] %vm21_vm0, %v8544_v2  ;;  %v89_v13 = vld [vmem:[%s8538_s0 + $0x60] sm:$0xff]  ;;  %v90_v14 = vld [vmem:[%s8538_s0 + $0x68] sm:$0xff] }
   0x8   :  { %44 = vst.msk [vmem:[#allocation2 + $0xa8] sm:$0xff] %vm21_vm0, %v8544_v2  ;;  %45 = vst.msk [vmem:[#allocation2 + $0xb0] sm:$0xff] %vm21_vm0, %v8544_v2  ;;  %v91_v15 = vld [vmem:[%s8538_s0 + $0x70] sm:$0xff]  ;;  %v92_v16 = vld [vmem:[%s8538_s0 + $0x78] sm:$0xff] }
   0x9   :  { %47 = vst.msk [vmem:[#allocation2 + $0xc0] sm:$0xff] %vm21_vm0, %v8544_v2  ;;  %48 = vst.msk [vmem:[#allocation2 + $0xc8] sm:$0xff] %vm21_vm0, %v8544_v2  ;;  %v93_v17 = vld [vmem:[%s8538_s0 + $0x80] sm:$0xff]  ;;  %v94_v18 = vld [vmem:[%s8538_s0 + $0x88] sm:$0xff] }
   0xa   :  { %50 = vst.msk [vmem:[#allocation2 + $0xd8] sm:$0xff] %vm21_vm0, %v8544_v2  ;;  %51 = vst.msk [vmem:[#allocation2 + $0xe0] sm:$0xff] %vm21_vm0, %v8544_v2  ;;  %v95_v19 = vld [vmem:[%s8538_s0 + $0x90] sm:$0xff]  ;;  %v96_v20 = vld [vmem:[%s8538_s0 + $0x98] sm:$0xff] }
   0xb   :  { %53 = vst.msk [vmem:[#allocation2 + $0xf0] sm:$0xff] %vm21_vm0, %v8544_v2  ;;  %54 = vst.msk [vmem:[#allocation2 + $0xf8] sm:$0xff] %vm21_vm0, %v8544_v2  ;;  %v97_v21 = vld [vmem:[%s8538_s0 + $0xa0] sm:$0xff]  ;;  %v98_v22 = vld [vmem:[%s8538_s0 + $0xa8] sm:$0xff] }
   0xc   :  { %56 = vst.msk [vmem:[#allocation2 + $0x108] sm:$0xff] %vm21_vm0, %v8544_v2  ;;  %57 = vst.msk [vmem:[#allocation2 + $0x110] sm:$0xff] %vm21_vm0, %v8544_v2  ;;  %v99_v23 = vld [vmem:[%s8538_s0 + $0xb0] sm:$0xff]  ;;  %v206_v24 = vld [vmem:[#allocation2 + $0x1] sm:$0xff] }
   0xd   :  { %59 = vst.msk [vmem:[#allocation2 + $0x120] sm:$0xff] %vm21_vm0, %v8544_v2  ;;  %60 = vst.msk [vmem:[#allocation2 + $0x128] sm:$0xff] %vm21_vm0, %v8544_v2  ;;  %v100_v25 = vld [vmem:[%s8538_s0 + $0xb8] sm:$0xff]  ;;  %270 = vrot.lane.b32.xlu0 %v206_v24, %s5338_s16  ;;  %v101_v32 = vld [vmem:[%s8538_s0 + $0xc0] sm:$0xff] }
   0xe   :  { %62 = vst.msk [vmem:[#allocation2 + $0x138] sm:$0xff] %vm21_vm0, %v8544_v2  ;;  %63 = vst.msk [vmem:[#allocation2 + $0x140] sm:$0xff] %vm21_vm0, %v8544_v2  ;;  %v102_v33 = vld [vmem:[%s8538_s0 + $0xc8] sm:$0xff]  ;;  %v103_v34 = vld [vmem:[%s8538_s0 + $0xd0] sm:$0xff] }
   0xf   :  { %65 = vst.msk [vmem:[#allocation2 + $0x150] sm:$0xff] %vm21_vm0, %v8544_v2  ;;  %66 = vst.msk [vmem:[#allocation2 + $0x158] sm:$0xff] %vm21_vm0, %v8544_v2  ;;  %v104_v35 = vld [vmem:[%s8538_s0 + $0xd8] sm:$0xff]  ;;  %v105_v36 = vld [vmem:[%s8538_s0 + $0xe0] sm:$0xff] }
  0x10   :  { %68 = vst.msk [vmem:[#allocation2 + $0x168] sm:$0xff] %vm21_vm0, %v8544_v2  ;;  %69 = vst.msk [vmem:[#allocation2 + $0x170] sm:$0xff] %vm21_vm0, %v8544_v2  ;;  %v106_v37 = vld [vmem:[%s8538_s0 + $0xe8] sm:$0xff]  ;;  %v142_v46 = vld [vmem:[#allocation2] sm:$0xff] }
  0x11   :  { %71 = vst.msk [vmem:[#allocation2 + $0x180] sm:$0xff] %vm21_vm0, %v8544_v2  ;;  %72 = vst.msk [vmem:[#allocation2 + $0x188] sm:$0xff] %vm21_vm0, %v8544_v2  ;;  %v5654_v45 = vld [vmem:[#allocation2 + $0x2] sm:$0xff] }
  0x12   :  { %74 = vst.msk [vmem:[#allocation2 + $0x198] sm:$0xff] %vm21_vm0, %v8544_v2  ;;  %75 = vst.msk [vmem:[#allocation2 + $0x1a0] sm:$0xff] %vm21_vm0, %v8544_v2  ;;  %v143_v51 = vld [vmem:[#allocation2 + $0x8] sm:$0xff] }
  0x13   :  { %25 = vst.msk [vmem:[#allocation2 + $0x10] sm:$0x3] %vm24_vm1, %v8544_v2  ;;  %28 = vst.msk [vmem:[#allocation2 + $0x28] sm:$0x3] %vm24_vm1, %v8544_v2 }
  0x14   :  { %31 = vst.msk [vmem:[#allocation2 + $0x40] sm:$0x3] %vm24_vm1, %v8544_v2  ;;  %34 = vst.msk [vmem:[#allocation2 + $0x58] sm:$0x3] %vm24_vm1, %v8544_v2 }
  0x15   :  { %37 = vst.msk [vmem:[#allocation2 + $0x70] sm:$0x3] %vm24_vm1, %v8544_v2  ;;  %40 = vst.msk [vmem:[#allocation2 + $0x88] sm:$0x3] %vm24_vm1, %v8544_v2 }
  0x16   :  { %43 = vst.msk [vmem:[#allocation2 + $0xa0] sm:$0x3] %vm24_vm1, %v8544_v2  ;;  %46 = vst.msk [vmem:[#allocation2 + $0xb8] sm:$0x3] %vm24_vm1, %v8544_v2 }
  0x17   :  { %49 = vst.msk [vmem:[#allocation2 + $0xd0] sm:$0x3] %vm24_vm1, %v8544_v2  ;;  %52 = vst.msk [vmem:[#allocation2 + $0xe8] sm:$0x3] %vm24_vm1, %v8544_v2 }
  0x18   :  { %55 = vst.msk [vmem:[#allocation2 + $0x100] sm:$0x3] %vm24_vm1, %v8544_v2  ;;  %58 = vst.msk [vmem:[#allocation2 + $0x118] sm:$0x3] %vm24_vm1, %v8544_v2 }
  0x19   :  { %61 = vst.msk [vmem:[#allocation2 + $0x130] sm:$0x3] %vm24_vm1, %v8544_v2  ;;  %64 = vst.msk [vmem:[#allocation2 + $0x148] sm:$0x3] %vm24_vm1, %v8544_v2 }
  0x1a   :  { %67 = vst.msk [vmem:[#allocation2 + $0x160] sm:$0x3] %vm24_vm1, %v8544_v2  ;;  %70 = vst.msk [vmem:[#allocation2 + $0x178] sm:$0x3] %vm24_vm1, %v8544_v2  ;;  %v207_v27 = vld [vmem:[#allocation2 + $0x9] sm:$0xff] }
  0x1b   :  { %73 = vst.msk [vmem:[#allocation2 + $0x190] sm:$0x3] %vm24_vm1, %v8544_v2  ;;  %76 = vst.msk [vmem:[#allocation2 + $0x1a8] sm:$0x3] %vm24_vm1, %v8544_v2  ;;  %272 = vrot.lane.b32.xlu0 %v207_v27, %s5338_s16  ;;  %v5628_v39 = vld [vmem:[#allocation2 + $0xa] sm:$0xff] }
  0x1c   :  { %110 = vst.msk [vmem:[#allocation2 + $0x19] sm:$0xff] %vm21_vm0, %v77_v0  ;;  %111 = vst.msk [vmem:[#allocation2 + $0x21] sm:$0xff] %vm21_vm0, %v78_v1 }
  0x1d   :  { %112 = vst.msk [vmem:[#allocation2 + $0x31] sm:$0xff] %vm21_vm0, %v79_v3  ;;  %113 = vst.msk [vmem:[#allocation2 + $0x39] sm:$0xff] %vm21_vm0, %v80_v4 }
  0x1e   :  { %114 = vst.msk [vmem:[#allocation2 + $0x49] sm:$0xff] %vm21_vm0, %v81_v5  ;;  %115 = vst.msk [vmem:[#allocation2 + $0x51] sm:$0xff] %vm21_vm0, %v82_v6 }
  0x1f   :  { %116 = vst.msk [vmem:[#allocation2 + $0x61] sm:$0xff] %vm21_vm0, %v83_v7  ;;  %117 = vst.msk [vmem:[#allocation2 + $0x69] sm:$0xff] %vm21_vm0, %v84_v8 }
  0x20   :  { %118 = vst.msk [vmem:[#allocation2 + $0x79] sm:$0xff] %vm21_vm0, %v85_v9  ;;  %119 = vst.msk [vmem:[#allocation2 + $0x81] sm:$0xff] %vm21_vm0, %v86_v10 }
  0x21   :  { %120 = vst.msk [vmem:[#allocation2 + $0x91] sm:$0xff] %vm21_vm0, %v87_v11  ;;  %121 = vst.msk [vmem:[#allocation2 + $0x99] sm:$0xff] %vm21_vm0, %v88_v12 }
  0x22   :  { %122 = vst.msk [vmem:[#allocation2 + $0xa9] sm:$0xff] %vm21_vm0, %v89_v13  ;;  %123 = vst.msk [vmem:[#allocation2 + $0xb1] sm:$0xff] %vm21_vm0, %v90_v14 }
  0x23   :  { %124 = vst.msk [vmem:[#allocation2 + $0xc1] sm:$0xff] %vm21_vm0, %v91_v15  ;;  %125 = vst.msk [vmem:[#allocation2 + $0xc9] sm:$0xff] %vm21_vm0, %v92_v16  ;;  %v5582_v26 = vld [vmem:[#allocation2 + $0x19] sm:$0xff]  ;;  %v5587_v28 = vld [vmem:[#allocation2 + $0x21] sm:$0xff] }
  0x24   :  { %126 = vst.msk [vmem:[#allocation2 + $0xd9] sm:$0xff] %vm21_vm0, %v93_v17  ;;  %127 = vst.msk [vmem:[#allocation2 + $0xe1] sm:$0xff] %vm21_vm0, %v94_v18  ;;  %274 = vrot.lane.b32.xlu1 %v5582_v26, %s5338_s16  ;;  %v5592_v29 = vld [vmem:[#allocation2 + $0x31] sm:$0xff]  ;;  %v5594_v30 = vld [vmem:[#allocation2 + $0x39] sm:$0xff] }
  0x25   :  { %128 = vst.msk [vmem:[#allocation2 + $0xf1] sm:$0xff] %vm21_vm0, %v95_v19  ;;  %129 = vst.msk [vmem:[#allocation2 + $0xf9] sm:$0xff] %vm21_vm0, %v96_v20  ;;  %v5596_v31 = vld [vmem:[#allocation2 + $0x49] sm:$0xff]  ;;  %278 = vrot.lane.b32.xlu0 %v5592_v29, %s5338_s16  ;;  %v5623_v38 = vld [vmem:[#allocation2 + $0x51] sm:$0xff] }
  0x26   :  { %130 = vst.msk [vmem:[#allocation2 + $0x109] sm:$0xff] %vm21_vm0, %v97_v21  ;;  %131 = vst.msk [vmem:[#allocation2 + $0x111] sm:$0xff] %vm21_vm0, %v98_v22  ;;  %v5632_v40 = vld [vmem:[#allocation2 + $0x22] sm:$0xff]  ;;  %v5660_v48 = vld [vmem:[#allocation2 + $0x1a] sm:$0xff] }
  0x27   :  { %132 = vst.msk [vmem:[#allocation2 + $0x121] sm:$0xff] %vm21_vm0, %v99_v23  ;;  %133 = vst.msk [vmem:[#allocation2 + $0x129] sm:$0xff] %vm21_vm0, %v100_v25  ;;  %v5640_v41 = vld [vmem:[#allocation2 + $0x61] sm:$0xff]  ;;  %v5642_v42 = vld [vmem:[#allocation2 + $0x69] sm:$0xff] }
  0x28   :  { %276 = vrot.lane.b32.xlu1 %v5587_v28, %s5338_s16  ;;  %134 = vst.msk [vmem:[#allocation2 + $0x139] sm:$0xff] %vm21_vm0, %v101_v32  ;;  %135 = vst.msk [vmem:[#allocation2 + $0x141] sm:$0xff] %vm21_vm0, %v102_v33  ;;  %v5648_v43 = vld [vmem:[#allocation2 + $0x79] sm:$0xff]  ;;  %v5650_v44 = vld [vmem:[#allocation2 + $0x81] sm:$0xff] }
  0x29   :  { %136 = vst.msk [vmem:[#allocation2 + $0x151] sm:$0xff] %vm21_vm0, %v103_v34  ;;  %137 = vst.msk [vmem:[#allocation2 + $0x159] sm:$0xff] %vm21_vm0, %v104_v35  ;;  %282 = vrot.lane.b32.xlu0 %v5596_v31, %s5338_s16  ;;  %v5658_v47 = vld [vmem:[#allocation2 + $0x91] sm:$0xff]  ;;  %v5667_v50 = vld [vmem:[#allocation2 + $0x99] sm:$0xff] }
  0x2a   :  { %138 = vst.msk [vmem:[#allocation2 + $0x169] sm:$0xff] %vm21_vm0, %v105_v36  ;;  %139 = vst.msk [vmem:[#allocation2 + $0x171] sm:$0xff] %vm21_vm0, %v106_v37  ;;  %v5665_v49 = vld [vmem:[#allocation2 + $0x18] sm:$0xff]  ;;  %v5671_v52 = vld [vmem:[#allocation2 + $0x20] sm:$0xff] }
  0x2b   :  { %2193 = vst.msk [vmem:[#allocation2 + $0x10] sm:$0x3] %vm24_vm1, %v8544_v2  ;;  %8634 = vst [vmem:[#allocation8_spill] sm:$0xff] %v5632_v40  ;;  %v5680_v53 = vld [vmem:[#allocation2 + $0x30] sm:$0xff]  ;;  %v5682_v54 = vld [vmem:[#allocation2 + $0x38] sm:$0xff] }
  0x2c   :  { %280 = vrot.lane.b32.xlu1 %v5594_v30, %s5338_s16  ;;  %2196 = vst.msk [vmem:[#allocation2 + $0x28] sm:$0x3] %vm24_vm1, %v8544_v2  ;;  %8635 = vst [vmem:[#allocation9_spill] sm:$0xff] %v5660_v48  ;;  %v5688_v55 = vld [vmem:[#allocation2 + $0xa9] sm:$0xff]  ;;  %v5690_v56 = vld [vmem:[#allocation2 + $0xb1] sm:$0xff] }
  0x2d   :  { %286 = vrot.lane.b32.xlu0 %v5640_v41, %s5338_s16  ;;  %174 = vst.msk [vmem:[#allocation3] sm:$0xff] %vm21_vm0, %v142_v46  ;;  %2191 = vst.msk [vmem:[#allocation2] sm:$0xff] %vm21_vm0, %v8544_v2  ;;  %v5696_v57 = vld [vmem:[#allocation2 + $0x48] sm:$0xff]  ;;  %v5702_v58 = vld [vmem:[#allocation2 + $0x50] sm:$0xff] }
  0x2e   :  { %176 = vst.msk [vmem:[#allocation3 + $0x10] sm:$0xff] %vm21_vm0, %v5665_v49  ;;  %2194 = vst.msk [vmem:[#allocation2 + $0x18] sm:$0xff] %vm21_vm0, %v8544_v2  ;;  %v5704_v59 = vld [vmem:[#allocation2 + $0x60] sm:$0xff]  ;;  %v5706_v60 = vld [vmem:[#allocation2 + $0x68] sm:$0xff] }
  0x2f   :  { %175 = vst.msk [vmem:[#allocation3 + $0x8] sm:$0xff] %vm21_vm0, %v143_v51  ;;  %2192 = vst.msk [vmem:[#allocation2 + $0x8] sm:$0xff] %vm21_vm0, %v8544_v2  ;;  %v5714_v61 = vld [vmem:[#allocation2 + $0x78] sm:$0xff]  ;;  %v5716_v62 = vld [vmem:[#allocation2 + $0x80] sm:$0xff] }
  0x30   :  { %284 = vrot.lane.b32.xlu1 %v5623_v38, %s5338_s16  ;;  %177 = vst.msk [vmem:[#allocation3 + $0x18] sm:$0xff] %vm21_vm0, %v5671_v52  ;;  %2195 = vst.msk [vmem:[#allocation2 + $0x20] sm:$0xff] %vm21_vm0, %v8544_v2  ;;  %v5718_v63 = vld [vmem:[#allocation2 + $0x90] sm:$0xff]  ;;  %v5720_v0 = vld [vmem:[#allocation2 + $0xc1] sm:$0xff] }
  0x31   :  { %290 = vrot.lane.b32.xlu0 %v5648_v43, %s5338_s16  ;;  %178 = vst.msk [vmem:[#allocation3 + $0x20] sm:$0xff] %vm21_vm0, %v5680_v53  ;;  %179 = vst.msk [vmem:[#allocation3 + $0x28] sm:$0xff] %vm21_vm0, %v5682_v54  ;;  %v5728_v1 = vld [vmem:[#allocation2 + $0x98] sm:$0xff]  ;;  %v5730_v3 = vld [vmem:[#allocation2 + $0xa8] sm:$0xff] }
  0x32   :  { %180 = vst.msk [vmem:[#allocation3 + $0x30] sm:$0xff] %vm21_vm0, %v5696_v57  ;;  %181 = vst.msk [vmem:[#allocation3 + $0x38] sm:$0xff] %vm21_vm0, %v5702_v58  ;;  %v5732_v4 = vld [vmem:[#allocation2 + $0xb0] sm:$0xff]  ;;  %v5744_v6 = vld [vmem:[#allocation2 + $0xc0] sm:$0xff] }
  0x33   :  { %182 = vst.msk [vmem:[#allocation3 + $0x40] sm:$0xff] %vm21_vm0, %v5704_v59  ;;  %183 = vst.msk [vmem:[#allocation3 + $0x48] sm:$0xff] %vm21_vm0, %v5706_v60  ;;  %v5736_v5 = vld [vmem:[#allocation2 + $0xc9] sm:$0xff]  ;;  %v5748_v8 = vld [vmem:[#allocation2 + $0xd8] sm:$0xff] }
  0x34   :  { %288 = vrot.lane.b32.xlu1 %v5642_v42, %s5338_s16  ;;  %184 = vst.msk [vmem:[#allocation3 + $0x50] sm:$0xff] %vm21_vm0, %v5714_v61  ;;  %185 = vst.msk [vmem:[#allocation3 + $0x58] sm:$0xff] %vm21_vm0, %v5716_v62  ;;  %v5746_v7 = vld [vmem:[#allocation2 + $0xc8] sm:$0xff]  ;;  %v5758_v9 = vld [vmem:[#allocation2 + $0xe0] sm:$0xff] }
  0x35   :  { %294 = vrot.lane.b32.xlu0 %v5658_v47, %s5338_s16  ;;  %186 = vst.msk [vmem:[#allocation3 + $0x60] sm:$0xff] %vm21_vm0, %v5718_v63  ;;  %187 = vst.msk [vmem:[#allocation3 + $0x68] sm:$0xff] %vm21_vm0, %v5728_v1  ;;  %v5760_v10 = vld [vmem:[#allocation2 + $0xf0] sm:$0xff]  ;;  %v5762_v11 = vld [vmem:[#allocation2 + $0xf8] sm:$0xff] }
  0x36   :  { %188 = vst.msk [vmem:[#allocation3 + $0x70] sm:$0xff] %vm21_vm0, %v5730_v3  ;;  %189 = vst.msk [vmem:[#allocation3 + $0x78] sm:$0xff] %vm21_vm0, %v5732_v4  ;;  %v5770_v12 = vld [vmem:[#allocation2 + $0x108] sm:$0xff]  ;;  %v5772_v13 = vld [vmem:[#allocation2 + $0x110] sm:$0xff] }
  0x37   :  { %190 = vst.msk [vmem:[#allocation3 + $0x80] sm:$0xff] %vm21_vm0, %v5744_v6  ;;  %191 = vst.msk [vmem:[#allocation3 + $0x88] sm:$0xff] %vm21_vm0, %v5746_v7 }
  0x38   :  { %292 = vrot.lane.b32.xlu1 %v5650_v44, %s5338_s16  ;;  %192 = vst.msk [vmem:[#allocation3 + $0x90] sm:$0xff] %vm21_vm0, %v5748_v8  ;;  %193 = vst.msk [vmem:[#allocation3 + $0x98] sm:$0xff] %vm21_vm0, %v5758_v9 }
  0x39   :  { %298 = vrot.lane.b32.xlu0 %v5688_v55, %s5338_s16  ;;  %194 = vst.msk [vmem:[#allocation3 + $0xa0] sm:$0xff] %vm21_vm0, %v5760_v10  ;;  %195 = vst.msk [vmem:[#allocation3 + $0xa8] sm:$0xff] %vm21_vm0, %v5762_v11 }
  0x3c   :  { %296 = vrot.lane.b32.xlu1 %v5667_v50, %s5338_s16 }
  0x40   :  { %300 = vrot.lane.b32.xlu1 %v5690_v56, %s5338_s16 }
  0x41   :  { %10 = vsyncpa [#allocation6], 0  ;;  %196 = vst.msk [vmem:[#allocation3 + $0xb0] sm:$0xff] %vm21_vm0, %v5770_v12  ;;  %302 = vrot.lane.b32.xlu0 %v5720_v0, %s5338_s16  ;;  %v5782_v14 = vld [vmem:[#allocation2 + $0xd9] sm:$0xff]  ;;  %v5786_v16 = vld [vmem:[#allocation2 + $0xe1] sm:$0xff]  ;;  %s5339_s8 = smov 8  }
  0x42   :  { %197 = vst.msk [vmem:[#allocation3 + $0xb8] sm:$0xff] %vm21_vm0, %v5772_v13  ;;  %v5784_v15 = vld [vmem:[#allocation2 + $0x120] sm:$0xff]  ;;  %v5790_v17 = vld [vmem:[#allocation2 + $0x128] sm:$0xff]  ;;  %v5798_v18 = vld [vmem:[#allocation2 + $0xf1] sm:$0xff]  ;;  %vm366_vm2 = vcmask 64544   ;;  %s5340_s9 = smov 12  }
  0x43   :  { %198 = vst.msk [vmem:[#allocation3 + $0xc0] sm:$0xff] %vm21_vm0, %v5784_v15  ;;  %199 = vst.msk [vmem:[#allocation3 + $0xc8] sm:$0xff] %vm21_vm0, %v5790_v17  ;;  %v5800_v19 = vld [vmem:[#allocation2 + $0x138] sm:$0xff]  ;;  %v5806_v21 = vld [vmem:[#allocation2 + $0x140] sm:$0xff]  ;;  %vm559_vm3 = vcmask 97344   ;;  %s5341_s12 = smov 16  }
  0x44   :  { %304 = vrot.lane.b32.xlu1 %v5736_v5, %s5338_s16  ;;  %v5802_v20 = vld [vmem:[#allocation2 + $0xf9] sm:$0xff]  ;;  %200 = vst.msk [vmem:[#allocation3 + $0xd0] sm:$0xff] %vm21_vm0, %v5800_v19  ;;  %201 = vst.msk [vmem:[#allocation3 + $0xd8] sm:$0xff] %vm21_vm0, %v5806_v21  ;;  %v5814_v22 = vld [vmem:[#allocation2 + $0x109] sm:$0xff]  ;;  %vm752_vm4 = vcmask 130144   ;;  %s5342_s13 = smov 20  }
  0x45   :  { %306 = vrot.lane.b32.xlu0 %v5782_v14, %s5338_s16  ;;  %v5816_v23 = vld [vmem:[#allocation2 + $0x150] sm:$0xff]  ;;  %v5822_v25 = vld [vmem:[#allocation2 + $0x158] sm:$0xff]  ;;  %v5830_v27 = vld [vmem:[#allocation2 + $0x121] sm:$0xff]  ;;  %vm945_vm5 = vcmask 162944   ;;  %s5343_s14 = smov 24   ;;  %vm1138_vm6 = vcmask 195744  }
  0x46   :  { %v5818_v24 = vld [vmem:[#allocation2 + $0x111] sm:$0xff]  ;;  %202 = vst.msk [vmem:[#allocation3 + $0xe0] sm:$0xff] %vm21_vm0, %v5816_v23  ;;  %8636 = vst [vmem:[#allocation10_spill] sm:$0xff] %v5822_v25  ;;  %v5832_v32 = vld [vmem:[#allocation2 + $0x168] sm:$0xff]  ;;  %s5344_s22 = smov 28   ;;  %vm1332_vm7 = vcmask 228544  }
  0x47   :  { %203 = vst.msk [vmem:[#allocation3 + $0xe8] sm:$0xff] %vm21_vm0, %v5822_v25  ;;  %8637 = vst [vmem:[#allocation11_spill] sm:$0xff] %v5832_v32  ;;  %v5834_v33 = vld [vmem:[#allocation2 + $0x129] sm:$0xff]  ;;  %v5846_v35 = vld [vmem:[#allocation2 + $0x139] sm:$0xff]  ;;  %vm1892_vm8 = vcmask 1043456   ;;  %s5345_s10 = smov 32  }
  0x48   :  { %308 = vrot.lane.b32.xlu1 %v5786_v16, %s5338_s16  ;;  %204 = vst.msk [vmem:[#allocation3 + $0xf0] sm:$0xff] %vm21_vm0, %v5832_v32  ;;  %v5838_v34 = vld [vmem:[#allocation2 + $0x170] sm:$0xff]  ;;  %8639 = vst [vmem:[#allocation13_spill] sm:$0xff] %v5846_v35  ;;  %v5848_v36 = vld [vmem:[#allocation2 + $0x141] sm:$0xff]  ;;  %vm1525_vm9 = vcmask 261344   ;;  %vm1718_vm10 = vcmask 294144  }
  0x49   :  { %310 = vrot.lane.b32.xlu0 %v5798_v18, %s5338_s16  ;;  %8638 = vst [vmem:[#allocation12_spill] sm:$0xff] %v5838_v34  ;;  %205 = vst.msk [vmem:[#allocation3 + $0xf8] sm:$0xff] %vm21_vm0, %v5838_v34  ;;  %v107_v37 = vld [vmem:[%s8538_s0 + $0xf0] sm:$0xff]  ;;  %v108_v46 = vld [vmem:[%s8538_s0 + $0xf8] sm:$0xff]  ;;  %vm1795_vm11 = vcmask 293888  }
  0x4a   :  { %140 = vst.msk [vmem:[#allocation2 + $0x181] sm:$0xff] %vm21_vm0, %v107_v37  ;;  %v5861_v51 = vld [vmem:[#allocation2 + $0x151] sm:$0xff]  ;;  %141 = vst.msk [vmem:[#allocation2 + $0x189] sm:$0xff] %vm21_vm0, %v108_v46  ;;  %v5864_v2 = vld [vmem:[#allocation2 + $0x159] sm:$0xff] }
  0x4b   :  { %8640 = vst [vmem:[#allocation14_spill] sm:$0xff] %v5864_v2  ;;  %v5870_v37 = vld [vmem:[#allocation2 + $0x169] sm:$0xff]  ;;  %v5886_v46 = vld [vmem:[#allocation2 + $0x32] sm:$0xff] }
  0x4c   :  { %312 = vrot.lane.b32.xlu1 %v5802_v20, %s5338_s16  ;;  %8641 = vst [vmem:[#allocation15_spill] sm:$0xff] %v5870_v37  ;;  %8643 = vst [vmem:[#allocation17_spill] sm:$0xff] %v5886_v46 }
  0x4d   :  { %314 = vrot.lane.b32.xlu0 %v5814_v22, %s5338_s16 }
  0x50   :  { %316 = vrot.lane.b32.xlu1 %v5818_v24, %s5338_s16 }
  0x51   :  { %318 = vrot.lane.b32.xlu0 %v5830_v27, %s5338_s16 }
  0x54   :  { %320 = vrot.lane.b32.xlu1 %v5834_v33, %s5338_s16 }
  0x55   :  { %322 = vrot.lane.b32.xlu0 %v5846_v35, %s5338_s16  ;;  %v5872_v35 = vld [vmem:[#allocation2 + $0x171] sm:$0xff] }
  0x56   :  { %8642 = vst [vmem:[#allocation16_spill] sm:$0xff] %v5872_v35 }
  0x58   :  { %324 = vrot.lane.b32.xlu1 %v5848_v36, %s5338_s16 }
  0x59   :  { %326 = vrot.lane.b32.xlu0 %v5861_v51, %s5338_s16 }
  0x5c   :  { %328 = vrot.lane.b32.xlu1 %v5864_v2, %s5338_s16  ;;  %v5888_v2 = vld [vmem:[#allocation2 + $0x3a] sm:$0xff] }
  0x5d   :  { %330 = vrot.lane.b32.xlu0 %v5870_v37, %s5338_s16  ;;  %8644 = vst [vmem:[#allocation18_spill] sm:$0xff] %v5888_v2 }
  0x60   :  { %332 = vrot.lane.b32.xlu1 %v5872_v35, %s5338_s16  ;;  %v5896_v35 = vld [vmem:[#allocation2 + $0x52] sm:$0xff] }
  0x61   :  { %463 = vrot.lane.b32.xlu0 %v5654_v45, %s5339_s8  ;;  %v5894_v45 = vld [vmem:[#allocation2 + $0x4a] sm:$0xff]  ;;  %8646 = vst [vmem:[#allocation20_spill] sm:$0xff] %v5896_v35 }
  0x62   :  { %8645 = vst [vmem:[#allocation19_spill] sm:$0xff] %v5894_v45 }
  0x64   :  { %465 = vrot.lane.b32.xlu1 %v5628_v39, %s5339_s8  ;;  %v5902_v39 = vld [vmem:[#allocation2 + $0x62] sm:$0xff] }
  0x65   :  { %467 = vrot.lane.b32.xlu0 %v5660_v48, %s5339_s8  ;;  %8647 = vst [vmem:[#allocation21_spill] sm:$0xff] %v5902_v39  ;;  %v5976_v48 = vld [vmem:[#allocation2 + $0x142] sm:$0xff] }
  0x66   :  { %8666 = vst [vmem:[#allocation40_spill] sm:$0xff] %v5976_v48 }
  0x68   :  { %469 = vrot.lane.b32.xlu1 %v5632_v40, %s5339_s8  ;;  %v5904_v40 = vld [vmem:[#allocation2 + $0x6a] sm:$0xff] }
  0x69   :  { %471 = vrot.lane.b32.xlu0 %v5886_v46, %s5339_s8  ;;  %8648 = vst [vmem:[#allocation22_spill] sm:$0xff] %v5904_v40  ;;  %v5912_v46 = vld [vmem:[#allocation2 + $0x82] sm:$0xff] }
  0x6a   :  { %8650 = vst [vmem:[#allocation24_spill] sm:$0xff] %v5912_v46 }
  0x6c   :  { %473 = vrot.lane.b32.xlu1 %v5888_v2, %s5339_s8  ;;  %v5910_v2 = vld [vmem:[#allocation2 + $0x7a] sm:$0xff] }
  0x6d   :  { %475 = vrot.lane.b32.xlu0 %v5894_v45, %s5339_s8  ;;  %8649 = vst [vmem:[#allocation23_spill] sm:$0xff] %v5910_v2  ;;  %v5920_v45 = vld [vmem:[#allocation2 + $0x9a] sm:$0xff] }
  0x6e   :  { %8652 = vst [vmem:[#allocation26_spill] sm:$0xff] %v5920_v45 }
  0x70   :  { %477 = vrot.lane.b32.xlu1 %v5896_v35, %s5339_s8  ;;  %v5918_v35 = vld [vmem:[#allocation2 + $0x92] sm:$0xff] }
  0x71   :  { %479 = vrot.lane.b32.xlu0 %v5902_v39, %s5339_s8  ;;  %8651 = vst [vmem:[#allocation25_spill] sm:$0xff] %v5918_v35  ;;  %v5928_v39 = vld [vmem:[#allocation2 + $0xb2] sm:$0xff] }
  0x72   :  { %8654 = vst [vmem:[#allocation28_spill] sm:$0xff] %v5928_v39 }
  0x74   :  { %481 = vrot.lane.b32.xlu1 %v5904_v40, %s5339_s8  ;;  %v5926_v40 = vld [vmem:[#allocation2 + $0xaa] sm:$0xff] }
  0x75   :  { %483 = vrot.lane.b32.xlu0 %v5910_v2, %s5339_s8  ;;  %8653 = vst [vmem:[#allocation27_spill] sm:$0xff] %v5926_v40  ;;  %v5936_v2 = vld [vmem:[#allocation2 + $0xca] sm:$0xff] }
  0x76   :  { %8656 = vst [vmem:[#allocation30_spill] sm:$0xff] %v5936_v2 }
  0x78   :  { %485 = vrot.lane.b32.xlu1 %v5912_v46, %s5339_s8  ;;  %v5934_v46 = vld [vmem:[#allocation2 + $0xc2] sm:$0xff] }
  0x79   :  { %487 = vrot.lane.b32.xlu0 %v5918_v35, %s5339_s8  ;;  %8655 = vst [vmem:[#allocation29_spill] sm:$0xff] %v5934_v46  ;;  %v5944_v35 = vld [vmem:[#allocation2 + $0xe2] sm:$0xff] }
  0x7a   :  { %8658 = vst [vmem:[#allocation32_spill] sm:$0xff] %v5944_v35 }
  0x7c   :  { %489 = vrot.lane.b32.xlu1 %v5920_v45, %s5339_s8  ;;  %v5942_v45 = vld [vmem:[#allocation2 + $0xda] sm:$0xff] }
  0x7d   :  { %491 = vrot.lane.b32.xlu0 %v5926_v40, %s5339_s8  ;;  %8657 = vst [vmem:[#allocation31_spill] sm:$0xff] %v5942_v45  ;;  %v5952_v40 = vld [vmem:[#allocation2 + $0xfa] sm:$0xff] }
  0x7e   :  { %8660 = vst [vmem:[#allocation34_spill] sm:$0xff] %v5952_v40 }
  0x80   :  { %493 = vrot.lane.b32.xlu1 %v5928_v39, %s5339_s8  ;;  %v5950_v39 = vld [vmem:[#allocation2 + $0xf2] sm:$0xff] }
  0x81   :  { %495 = vrot.lane.b32.xlu0 %v5934_v46, %s5339_s8  ;;  %8659 = vst [vmem:[#allocation33_spill] sm:$0xff] %v5950_v39  ;;  %v5960_v46 = vld [vmem:[#allocation2 + $0x112] sm:$0xff] }
  0x82   :  { %8662 = vst [vmem:[#allocation36_spill] sm:$0xff] %v5960_v46 }
  0x84   :  { %497 = vrot.lane.b32.xlu1 %v5936_v2, %s5339_s8  ;;  %v5958_v2 = vld [vmem:[#allocation2 + $0x10a] sm:$0xff] }
  0x85   :  { %499 = vrot.lane.b32.xlu0 %v5942_v45, %s5339_s8  ;;  %8661 = vst [vmem:[#allocation35_spill] sm:$0xff] %v5958_v2  ;;  %v5968_v45 = vld [vmem:[#allocation2 + $0x12a] sm:$0xff] }
  0x86   :  { %8664 = vst [vmem:[#allocation38_spill] sm:$0xff] %v5968_v45 }
  0x88   :  { %501 = vrot.lane.b32.xlu1 %v5944_v35, %s5339_s8  ;;  %v5966_v35 = vld [vmem:[#allocation2 + $0x122] sm:$0xff] }
  0x89   :  { %503 = vrot.lane.b32.xlu0 %v5950_v39, %s5339_s8  ;;  %8663 = vst [vmem:[#allocation37_spill] sm:$0xff] %v5966_v35  ;;  %v271_v39 = vpop.permute.xlu0 %270 }
  0x8a   :  { %367 = vst.msk [vmem:[#allocation3] sm:$0xff] %vm366_vm2, %v271_v39 }
  0x8c   :  { %505 = vrot.lane.b32.xlu1 %v5952_v40, %s5339_s8  ;;  %v5974_v40 = vld [vmem:[#allocation2 + $0x13a] sm:$0xff] }
  0x8d   :  { %507 = vrot.lane.b32.xlu0 %v5958_v2, %s5339_s8  ;;  %8665 = vst [vmem:[#allocation39_spill] sm:$0xff] %v5974_v40 }
  0x90   :  { %509 = vrot.lane.b32.xlu1 %v5960_v46, %s5339_s8  ;;  %v273_v46 = vpop.permute.xlu0 %272 }
  0x91   :  { %511 = vrot.lane.b32.xlu0 %v5966_v35, %s5339_s8  ;;  %v5984_v35 = vld [vmem:[#allocation2 + $0x152] sm:$0xff]  ;;  %368 = vst.msk [vmem:[#allocation3 + $0x8] sm:$0xff] %vm366_vm2, %v273_v46 }
  0x94   :  { %513 = vrot.lane.b32.xlu1 %v5968_v45, %s5339_s8  ;;  %v5986_v45 = vld [vmem:[#allocation2 + $0x15a] sm:$0xff] }
  0x95   :  { %515 = vrot.lane.b32.xlu0 %v5974_v40, %s5339_s8 }
  0x96   :  { %v275_v2 = vpop.permute.xlu1 %274 }
  0x97   :  { %369 = vst.msk [vmem:[#allocation3 + $0x10] sm:$0xff] %vm366_vm2, %v275_v2  ;;  %v5994_v2 = vld [vmem:[#allocation2 + $0x16a] sm:$0xff]  ;;  %v279_v39 = vpop.permute.xlu0 %278 }
  0x98   :  { %517 = vrot.lane.b32.xlu1 %v5976_v48, %s5339_s8  ;;  %v5996_v48 = vld [vmem:[#allocation2 + $0x172] sm:$0xff]  ;;  %371 = vst.msk [vmem:[#allocation3 + $0x20] sm:$0xff] %vm366_vm2, %v279_v39 }
  0x99   :  { %519 = vrot.lane.b32.xlu0 %v5984_v35, %s5339_s8 }
  0x9a   :  { %v277_v37 = vpop.permute.xlu1 %276 }
  0x9b   :  { %370 = vst.msk [vmem:[#allocation3 + $0x18] sm:$0xff] %vm366_vm2, %v277_v37  ;;  %v283_v37 = vpop.permute.xlu0 %282 }
  0x9c   :  { %521 = vrot.lane.b32.xlu1 %v5986_v45, %s5339_s8  ;;  %373 = vst.msk [vmem:[#allocation3 + $0x30] sm:$0xff] %vm366_vm2, %v283_v37 }
  0x9d   :  { %523 = vrot.lane.b32.xlu0 %v5994_v2, %s5339_s8 }
  0x9e   :  { %v281_v40 = vpop.permute.xlu1 %280 }
  0x9f   :  { %372 = vst.msk [vmem:[#allocation3 + $0x28] sm:$0xff] %vm366_vm2, %v281_v40  ;;  %v5047_v40 = vld [vmem:[%s8538_s0 + $0x108] sm:$0xff]  ;;  %v287_v39 = vpop.permute.xlu0 %286 }
  0xa0   :  { %525 = vrot.lane.b32.xlu1 %v5996_v48, %s5339_s8  ;;  %2279 = vst.msk [vmem:[#allocation2 + $0x21] sm:$0xff] %vm21_vm0, %v5047_v40 }
  0xa1   :  { %656 = vrot.lane.b32.xlu0 %v5665_v49, %s5340_s9  ;;  %375 = vst.msk [vmem:[#allocation3 + $0x40] sm:$0xff] %vm366_vm2, %v287_v39 }
  0xa2   :  { %v285_v46 = vpop.permute.xlu1 %284 }
  0xa3   :  { %374 = vst.msk [vmem:[#allocation3 + $0x38] sm:$0xff] %vm366_vm2, %v285_v46  ;;  %v291_v49 = vpop.permute.xlu0 %290 }
  0xa4   :  { %658 = vrot.lane.b32.xlu1 %v5671_v52, %s5340_s9  ;;  %377 = vst.msk [vmem:[#allocation3 + $0x50] sm:$0xff] %vm366_vm2, %v291_v49 }
  0xa5   :  { %660 = vrot.lane.b32.xlu0 %v5680_v53, %s5340_s9 }
  0xa6   :  { %v289_v37 = vpop.permute.xlu1 %288 }
  0xa7   :  { %376 = vst.msk [vmem:[#allocation3 + $0x48] sm:$0xff] %vm366_vm2, %v289_v37  ;;  %v295_v52 = vpop.permute.xlu0 %294 }
  0xa8   :  { %662 = vrot.lane.b32.xlu1 %v5682_v54, %s5340_s9  ;;  %379 = vst.msk [vmem:[#allocation3 + $0x60] sm:$0xff] %vm366_vm2, %v295_v52 }
  0xa9   :  { %664 = vrot.lane.b32.xlu0 %v5696_v57, %s5340_s9 }
  0xaa   :  { %v293_v46 = vpop.permute.xlu1 %292 }
  0xab   :  { %378 = vst.msk [vmem:[#allocation3 + $0x58] sm:$0xff] %vm366_vm2, %v293_v46  ;;  %v299_v39 = vpop.permute.xlu0 %298 }
  0xac   :  { %666 = vrot.lane.b32.xlu1 %v5702_v58, %s5340_s9  ;;  %381 = vst.msk [vmem:[#allocation3 + $0x70] sm:$0xff] %vm366_vm2, %v299_v39 }
  0xad   :  { %668 = vrot.lane.b32.xlu0 %v5704_v59, %s5340_s9 }
  0xae   :  { %v297_v40 = vpop.permute.xlu1 %296 }
  0xaf   :  { %380 = vst.msk [vmem:[#allocation3 + $0x68] sm:$0xff] %vm366_vm2, %v297_v40 }
  0xb0   :  { %670 = vrot.lane.b32.xlu1 %v5706_v60, %s5340_s9 }
  0xb1   :  { %672 = vrot.lane.b32.xlu0 %v5714_v61, %s5340_s9 }
  0xb2   :  { %v301_v37 = vpop.permute.xlu1 %300 }
  0xb3   :  { %382 = vst.msk [vmem:[#allocation3 + $0x78] sm:$0xff] %vm366_vm2, %v301_v37  ;;  %v303_v49 = vpop.permute.xlu0 %302 }
  0xb4   :  { %674 = vrot.lane.b32.xlu1 %v5716_v62, %s5340_s9  ;;  %383 = vst.msk [vmem:[#allocation3 + $0x80] sm:$0xff] %vm366_vm2, %v303_v49 }
  0xb5   :  { %676 = vrot.lane.b32.xlu0 %v5718_v63, %s5340_s9 }
  0xb6   :  { %v305_v46 = vpop.permute.xlu1 %304 }
  0xb7   :  { %384 = vst.msk [vmem:[#allocation3 + $0x88] sm:$0xff] %vm366_vm2, %v305_v46  ;;  %v307_v52 = vpop.permute.xlu0 %306 }
  0xb8   :  { %678 = vrot.lane.b32.xlu1 %v5728_v1, %s5340_s9  ;;  %385 = vst.msk [vmem:[#allocation3 + $0x90] sm:$0xff] %vm366_vm2, %v307_v52 }
  0xb9   :  { %680 = vrot.lane.b32.xlu0 %v5730_v3, %s5340_s9 }
  0xba   :  { %v309_v40 = vpop.permute.xlu1 %308 }
  0xbb   :  { %386 = vst.msk [vmem:[#allocation3 + $0x98] sm:$0xff] %vm366_vm2, %v309_v40  ;;  %v311_v39 = vpop.permute.xlu0 %310 }
  0xbc   :  { %682 = vrot.lane.b32.xlu1 %v5732_v4, %s5340_s9  ;;  %387 = vst.msk [vmem:[#allocation3 + $0xa0] sm:$0xff] %vm366_vm2, %v311_v39 }
  0xbd   :  { %684 = vrot.lane.b32.xlu0 %v5744_v6, %s5340_s9 }
  0xbe   :  { %v313_v37 = vpop.permute.xlu1 %312 }
  0xbf   :  { %388 = vst.msk [vmem:[#allocation3 + $0xa8] sm:$0xff] %vm366_vm2, %v313_v37  ;;  %v315_v49 = vpop.permute.xlu0 %314 }
  0xc0   :  { %686 = vrot.lane.b32.xlu1 %v5746_v7, %s5340_s9  ;;  %389 = vst.msk [vmem:[#allocation3 + $0xb0] sm:$0xff] %vm366_vm2, %v315_v49 }
  0xc1   :  { %688 = vrot.lane.b32.xlu0 %v5748_v8, %s5340_s9 }
  0xc2   :  { %v317_v46 = vpop.permute.xlu1 %316 }
  0xc3   :  { %390 = vst.msk [vmem:[#allocation3 + $0xb8] sm:$0xff] %vm366_vm2, %v317_v46  ;;  %v319_v52 = vpop.permute.xlu0 %318 }
  0xc4   :  { %690 = vrot.lane.b32.xlu1 %v5758_v9, %s5340_s9  ;;  %391 = vst.msk [vmem:[#allocation3 + $0xc0] sm:$0xff] %vm366_vm2, %v319_v52 }
  0xc5   :  { %692 = vrot.lane.b32.xlu0 %v5760_v10, %s5340_s9 }
  0xc6   :  { %v321_v40 = vpop.permute.xlu1 %320 }
  0xc7   :  { %392 = vst.msk [vmem:[#allocation3 + $0xc8] sm:$0xff] %vm366_vm2, %v321_v40  ;;  %v323_v39 = vpop.permute.xlu0 %322 }
  0xc8   :  { %694 = vrot.lane.b32.xlu1 %v5762_v11, %s5340_s9  ;;  %393 = vst.msk [vmem:[#allocation3 + $0xd0] sm:$0xff] %vm366_vm2, %v323_v39 }
  0xc9   :  { %696 = vrot.lane.b32.xlu0 %v5770_v12, %s5340_s9 }
  0xca   :  { %v325_v37 = vpop.permute.xlu1 %324 }
  0xcb   :  { %394 = vst.msk [vmem:[#allocation3 + $0xd8] sm:$0xff] %vm366_vm2, %v325_v37  ;;  %v327_v49 = vpop.permute.xlu0 %326 }
  0xcc   :  { %698 = vrot.lane.b32.xlu1 %v5772_v13, %s5340_s9  ;;  %395 = vst.msk [vmem:[#allocation3 + $0xe0] sm:$0xff] %vm366_vm2, %v327_v49 }
  0xcd   :  { %700 = vrot.lane.b32.xlu0 %v5784_v15, %s5340_s9 }
  0xce   :  { %v329_v46 = vpop.permute.xlu1 %328 }
  0xcf   :  { %396 = vst.msk [vmem:[#allocation3 + $0xe8] sm:$0xff] %vm366_vm2, %v329_v46  ;;  %v331_v52 = vpop.permute.xlu0 %330 }
  0xd0   :  { %702 = vrot.lane.b32.xlu1 %v5790_v17, %s5340_s9  ;;  %397 = vst.msk [vmem:[#allocation3 + $0xf0] sm:$0xff] %vm366_vm2, %v331_v52  ;;  %v6098_v52 = vld [vmem:[#allocation2 + $0x180] sm:$0xff] }
  0xd1   :  { %704 = vrot.lane.b32.xlu0 %v5800_v19, %s5340_s9  ;;  %8667 = vst [vmem:[#allocation41_spill] sm:$0xff] %v6098_v52 }
  0xd2   :  { %v333_v40 = vpop.permute.xlu1 %332 }
  0xd3   :  { %398 = vst.msk [vmem:[#allocation3 + $0xf8] sm:$0xff] %vm366_vm2, %v333_v40  ;;  %v464_v39 = vpop.permute.xlu0 %463 }
  0xd4   :  { %706 = vrot.lane.b32.xlu1 %v5806_v21, %s5340_s9  ;;  %560 = vst.msk [vmem:[#allocation3] sm:$0xff] %vm559_vm3, %v464_v39  ;;  %v6100_v39 = vld [vmem:[#allocation2 + $0x188] sm:$0xff] }
  0xd5   :  { %708 = vrot.lane.b32.xlu0 %v5816_v23, %s5340_s9  ;;  %8668 = vst [vmem:[#allocation42_spill] sm:$0xff] %v6100_v39 }
  0xd6   :  { %v466_v37 = vpop.permute.xlu1 %465 }
  0xd7   :  { %561 = vst.msk [vmem:[#allocation3 + $0x8] sm:$0xff] %vm559_vm3, %v466_v37  ;;  %v468_v49 = vpop.permute.xlu0 %467 }
  0xd8   :  { %710 = vrot.lane.b32.xlu1 %v5822_v25, %s5340_s9  ;;  %562 = vst.msk [vmem:[#allocation3 + $0x10] sm:$0xff] %vm559_vm3, %v468_v49  ;;  %v6103_v25 = vld [vmem:[#allocation2 + $0x181] sm:$0xff] }
  0xd9   :  { %712 = vrot.lane.b32.xlu0 %v5832_v32, %s5340_s9  ;;  %v6105_v49 = vld [vmem:[#allocation2 + $0x182] sm:$0xff]  ;;  %v8671_v32 = vmov 0.0  }
  0xda   :  { %v470_v46 = vpop.permute.xlu1 %469  ;;  %8669 = vst [vmem:[#allocation43_spill] sm:$0xff] %v6105_v49  ;;  %2239 = vst.msk [vmem:[#allocation2 + $0x180] sm:$0xff] %vm21_vm0, %v8671_v32 }
  0xdb   :  { %563 = vst.msk [vmem:[#allocation3 + $0x18] sm:$0xff] %vm559_vm3, %v470_v46  ;;  %v472_v40 = vpop.permute.xlu0 %471  ;;  %v6110_v46 = vld [vmem:[#allocation2 + $0x189] sm:$0xff] }
  0xdc   :  { %714 = vrot.lane.b32.xlu1 %v5838_v34, %s5340_s9  ;;  %564 = vst.msk [vmem:[#allocation3 + $0x20] sm:$0xff] %vm559_vm3, %v472_v40  ;;  %v6112_v34 = vld [vmem:[#allocation2 + $0x18a] sm:$0xff] }
  0xdd   :  { %716 = vrot.lane.b32.xlu0 %v6098_v52, %s5340_s9  ;;  %8670 = vst [vmem:[#allocation44_spill] sm:$0xff] %v6112_v34  ;;  %2240 = vst.msk [vmem:[#allocation2 + $0x188] sm:$0xff] %vm21_vm0, %v8671_v32 }
  0xde   :  { %v474_v37 = vpop.permute.xlu1 %473  ;;  %2241 = vst.msk [vmem:[#allocation2 + $0x190] sm:$0x3] %vm24_vm1, %v8671_v32 }
  0xdf   :  { %565 = vst.msk [vmem:[#allocation3 + $0x28] sm:$0xff] %vm559_vm3, %v474_v37  ;;  %v476_v40 = vpop.permute.xlu0 %475 }
  0xe0   :  { %718 = vrot.lane.b32.xlu1 %v6100_v39, %s5340_s9  ;;  %566 = vst.msk [vmem:[#allocation3 + $0x30] sm:$0xff] %vm559_vm3, %v476_v40 }
  0xe1   :  { %849 = vrot.lane.b32.xlu0 %v5582_v26, %s5341_s12 }
  0xe2   :  { %v478_v37 = vpop.permute.xlu1 %477 }
  0xe3   :  { %567 = vst.msk [vmem:[#allocation3 + $0x38] sm:$0xff] %vm559_vm3, %v478_v37  ;;  %v480_v39 = vpop.permute.xlu0 %479 }
  0xe4   :  { %851 = vrot.lane.b32.xlu1 %v5587_v28, %s5341_s12  ;;  %568 = vst.msk [vmem:[#allocation3 + $0x40] sm:$0xff] %vm559_vm3, %v480_v39 }
  0xe5   :  { %853 = vrot.lane.b32.xlu0 %v5592_v29, %s5341_s12 }
  0xe6   :  { %v482_v52 = vpop.permute.xlu1 %481 }
  0xe7   :  { %569 = vst.msk [vmem:[#allocation3 + $0x48] sm:$0xff] %vm559_vm3, %v482_v52  ;;  %v484_v40 = vpop.permute.xlu0 %483 }
  0xe8   :  { %855 = vrot.lane.b32.xlu1 %v5594_v30, %s5341_s12  ;;  %570 = vst.msk [vmem:[#allocation3 + $0x50] sm:$0xff] %vm559_vm3, %v484_v40  ;;  %v8675_v40 = vld [vmem:[#allocation16_spill] sm:$0xff] }
  0xe9   :  { %857 = vrot.lane.b32.xlu0 %v5596_v31, %s5341_s12 }
  0xea   :  { %v486_v37 = vpop.permute.xlu1 %485 }
  0xeb   :  { %571 = vst.msk [vmem:[#allocation3 + $0x58] sm:$0xff] %vm559_vm3, %v486_v37  ;;  %v488_v26 = vpop.permute.xlu0 %487 }
  0xec   :  { %859 = vrot.lane.b32.xlu1 %v5623_v38, %s5341_s12  ;;  %572 = vst.msk [vmem:[#allocation3 + $0x60] sm:$0xff] %vm559_vm3, %v488_v26 }
  0xed   :  { %861 = vrot.lane.b32.xlu0 %v5640_v41, %s5341_s12 }
  0xee   :  { %v490_v28 = vpop.permute.xlu1 %489 }
  0xef   :  { %573 = vst.msk [vmem:[#allocation3 + $0x68] sm:$0xff] %vm559_vm3, %v490_v28  ;;  %v492_v29 = vpop.permute.xlu0 %491 }
  0xf0   :  { %863 = vrot.lane.b32.xlu1 %v5642_v42, %s5341_s12  ;;  %574 = vst.msk [vmem:[#allocation3 + $0x70] sm:$0xff] %vm559_vm3, %v492_v29  ;;  %v8676_v29 = vld [vmem:[#allocation9_spill] sm:$0xff] }
  0xf1   :  { %865 = vrot.lane.b32.xlu0 %v5648_v43, %s5341_s12 }
  0xf2   :  { %v494_v30 = vpop.permute.xlu1 %493 }
  0xf3   :  { %575 = vst.msk [vmem:[#allocation3 + $0x78] sm:$0xff] %vm559_vm3, %v494_v30  ;;  %v496_v31 = vpop.permute.xlu0 %495  ;;  %v8677_v30 = vld [vmem:[#allocation8_spill] sm:$0xff] }
  0xf4   :  { %867 = vrot.lane.b32.xlu1 %v5650_v44, %s5341_s12  ;;  %576 = vst.msk [vmem:[#allocation3 + $0x80] sm:$0xff] %vm559_vm3, %v496_v31 }
  0xf5   :  { %869 = vrot.lane.b32.xlu0 %v5658_v47, %s5341_s12 }
  0xf6   :  { %v498_v38 = vpop.permute.xlu1 %497 }
  0xf7   :  { %577 = vst.msk [vmem:[#allocation3 + $0x88] sm:$0xff] %vm559_vm3, %v498_v38  ;;  %v500_v41 = vpop.permute.xlu0 %499 }
  0xf8   :  { %871 = vrot.lane.b32.xlu1 %v5667_v50, %s5341_s12  ;;  %578 = vst.msk [vmem:[#allocation3 + $0x90] sm:$0xff] %vm559_vm3, %v500_v41  ;;  %v8678_v41 = vld [vmem:[#allocation17_spill] sm:$0xff] }
  0xf9   :  { %873 = vrot.lane.b32.xlu0 %v5688_v55, %s5341_s12 }
  0xfa   :  { %v502_v42 = vpop.permute.xlu1 %501 }
  0xfb   :  { %579 = vst.msk [vmem:[#allocation3 + $0x98] sm:$0xff] %vm559_vm3, %v502_v42  ;;  %v504_v43 = vpop.permute.xlu0 %503  ;;  %v8679_v42 = vld [vmem:[#allocation18_spill] sm:$0xff] }
  0xfc   :  { %875 = vrot.lane.b32.xlu1 %v5690_v56, %s5341_s12  ;;  %580 = vst.msk [vmem:[#allocation3 + $0xa0] sm:$0xff] %vm559_vm3, %v504_v43 }
  0xfd   :  { %877 = vrot.lane.b32.xlu0 %v5720_v0, %s5341_s12 }
  0xfe   :  { %v506_v44 = vpop.permute.xlu1 %505 }
  0xff   :  { %581 = vst.msk [vmem:[#allocation3 + $0xa8] sm:$0xff] %vm559_vm3, %v506_v44  ;;  %v508_v47 = vpop.permute.xlu0 %507 }
 0x100   :  { %879 = vrot.lane.b32.xlu1 %v5736_v5, %s5341_s12  ;;  %582 = vst.msk [vmem:[#allocation3 + $0xb0] sm:$0xff] %vm559_vm3, %v508_v47  ;;  %v8680_v47 = vld [vmem:[#allocation19_spill] sm:$0xff] }
 0x101   :  { %881 = vrot.lane.b32.xlu0 %v5782_v14, %s5341_s12 }
 0x102   :  { %v510_v50 = vpop.permute.xlu1 %509 }
 0x103   :  { %583 = vst.msk [vmem:[#allocation3 + $0xb8] sm:$0xff] %vm559_vm3, %v510_v50  ;;  %v512_v55 = vpop.permute.xlu0 %511  ;;  %v8681_v50 = vld [vmem:[#allocation20_spill] sm:$0xff] }
 0x104   :  { %883 = vrot.lane.b32.xlu1 %v5786_v16, %s5341_s12  ;;  %584 = vst.msk [vmem:[#allocation3 + $0xc0] sm:$0xff] %vm559_vm3, %v512_v55 }
 0x105   :  { %885 = vrot.lane.b32.xlu0 %v5798_v18, %s5341_s12 }
 0x106   :  { %v514_v56 = vpop.permute.xlu1 %513 }
 0x107   :  { %585 = vst.msk [vmem:[#allocation3 + $0xc8] sm:$0xff] %vm559_vm3, %v514_v56  ;;  %v516_v0 = vpop.permute.xlu0 %515 }
 0x108   :  { %887 = vrot.lane.b32.xlu1 %v5802_v20, %s5341_s12  ;;  %586 = vst.msk [vmem:[#allocation3 + $0xd0] sm:$0xff] %vm559_vm3, %v516_v0  ;;  %v8682_v0 = vld [vmem:[#allocation21_spill] sm:$0xff] }
 0x109   :  { %889 = vrot.lane.b32.xlu0 %v5814_v22, %s5341_s12  ;;  %v8672_v22 = vld [vmem:[#allocation13_spill] sm:$0xff] }
 0x10a   :  { %v518_v5 = vpop.permute.xlu1 %517 }
 0x10b   :  { %587 = vst.msk [vmem:[#allocation3 + $0xd8] sm:$0xff] %vm559_vm3, %v518_v5  ;;  %v520_v14 = vpop.permute.xlu0 %519  ;;  %v8683_v5 = vld [vmem:[#allocation22_spill] sm:$0xff] }
 0x10c   :  { %891 = vrot.lane.b32.xlu1 %v5818_v24, %s5341_s12  ;;  %588 = vst.msk [vmem:[#allocation3 + $0xe0] sm:$0xff] %vm559_vm3, %v520_v14 }
 0x10d   :  { %893 = vrot.lane.b32.xlu0 %v5830_v27, %s5341_s12 }
 0x10e   :  { %v522_v16 = vpop.permute.xlu1 %521 }
 0x10f   :  { %589 = vst.msk [vmem:[#allocation3 + $0xe8] sm:$0xff] %vm559_vm3, %v522_v16  ;;  %v524_v18 = vpop.permute.xlu0 %523 }
 0x110   :  { %895 = vrot.lane.b32.xlu1 %v5834_v33, %s5341_s12  ;;  %590 = vst.msk [vmem:[#allocation3 + $0xf0] sm:$0xff] %vm559_vm3, %v524_v18  ;;  %v8673_v33 = vld [vmem:[#allocation14_spill] sm:$0xff]  ;;  %v8684_v18 = vld [vmem:[#allocation23_spill] sm:$0xff] }
 0x111   :  { %897 = vrot.lane.b32.xlu0 %v8672_v22, %s5341_s12 }
 0x112   :  { %v526_v20 = vpop.permute.xlu1 %525 }
 0x113   :  { %591 = vst.msk [vmem:[#allocation3 + $0xf8] sm:$0xff] %vm559_vm3, %v526_v20  ;;  %v657_v24 = vpop.permute.xlu0 %656  ;;  %v8685_v20 = vld [vmem:[#allocation24_spill] sm:$0xff] }
 0x114   :  { %899 = vrot.lane.b32.xlu1 %v5848_v36, %s5341_s12  ;;  %753 = vst.msk [vmem:[#allocation3] sm:$0xff] %vm752_vm4, %v657_v24  ;;  %v8674_v36 = vld [vmem:[#allocation15_spill] sm:$0xff] }
 0x115   :  { %901 = vrot.lane.b32.xlu0 %v5861_v51, %s5341_s12 }
 0x116   :  { %v659_v27 = vpop.permute.xlu1 %658 }
 0x117   :  { %754 = vst.msk [vmem:[#allocation3 + $0x8] sm:$0xff] %vm752_vm4, %v659_v27  ;;  %v661_v52 = vpop.permute.xlu0 %660  ;;  %v8686_v27 = vld [vmem:[#allocation25_spill] sm:$0xff] }
 0x118   :  { %903 = vrot.lane.b32.xlu1 %v8673_v33, %s5341_s12  ;;  %755 = vst.msk [vmem:[#allocation3 + $0x10] sm:$0xff] %vm752_vm4, %v661_v52  ;;  %v8687_v33 = vld [vmem:[#allocation26_spill] sm:$0xff] }
 0x119   :  { %905 = vrot.lane.b32.xlu0 %v8674_v36, %s5341_s12  ;;  %v8688_v36 = vld [vmem:[#allocation27_spill] sm:$0xff] }
 0x11a   :  { %v663_v39 = vpop.permute.xlu1 %662 }
 0x11b   :  { %756 = vst.msk [vmem:[#allocation3 + $0x18] sm:$0xff] %vm752_vm4, %v663_v39  ;;  %v665_v37 = vpop.permute.xlu0 %664 }
 0x11c   :  { %907 = vrot.lane.b32.xlu1 %v8675_v40, %s5341_s12  ;;  %757 = vst.msk [vmem:[#allocation3 + $0x20] sm:$0xff] %vm752_vm4, %v665_v37  ;;  %v8689_v40 = vld [vmem:[#allocation28_spill] sm:$0xff] }
 0x11d   :  { %909 = vrot.lane.b32.xlu0 %v6103_v25, %s5341_s12 }
 0x11e   :  { %v667_v26 = vpop.permute.xlu1 %666 }
 0x11f   :  { %758 = vst.msk [vmem:[#allocation3 + $0x28] sm:$0xff] %vm752_vm4, %v667_v26  ;;  %v669_v51 = vpop.permute.xlu0 %668 }
 0x120   :  { %911 = vrot.lane.b32.xlu1 %v6110_v46, %s5341_s12  ;;  %759 = vst.msk [vmem:[#allocation3 + $0x30] sm:$0xff] %vm752_vm4, %v669_v51  ;;  %v8690_v51 = vld [vmem:[#allocation29_spill] sm:$0xff] }
 0x121   :  { %1042 = vrot.lane.b32.xlu0 %v8676_v29, %s5342_s13 }
 0x122   :  { %v671_v28 = vpop.permute.xlu1 %670 }
 0x123   :  { %760 = vst.msk [vmem:[#allocation3 + $0x38] sm:$0xff] %vm752_vm4, %v671_v28  ;;  %v673_v31 = vpop.permute.xlu0 %672  ;;  %v8691_v28 = vld [vmem:[#allocation30_spill] sm:$0xff] }
 0x124   :  { %1044 = vrot.lane.b32.xlu1 %v8677_v30, %s5342_s13  ;;  %761 = vst.msk [vmem:[#allocation3 + $0x40] sm:$0xff] %vm752_vm4, %v673_v31  ;;  %v8692_v31 = vld [vmem:[#allocation31_spill] sm:$0xff] }
 0x125   :  { %1046 = vrot.lane.b32.xlu0 %v8678_v41, %s5342_s13 }
 0x126   :  { %v675_v38 = vpop.permute.xlu1 %674 }
 0x127   :  { %762 = vst.msk [vmem:[#allocation3 + $0x48] sm:$0xff] %vm752_vm4, %v675_v38  ;;  %v677_v43 = vpop.permute.xlu0 %676  ;;  %v8693_v38 = vld [vmem:[#allocation32_spill] sm:$0xff] }
 0x128   :  { %1048 = vrot.lane.b32.xlu1 %v8679_v42, %s5342_s13  ;;  %763 = vst.msk [vmem:[#allocation3 + $0x50] sm:$0xff] %vm752_vm4, %v677_v43  ;;  %v8694_v43 = vld [vmem:[#allocation33_spill] sm:$0xff] }
 0x129   :  { %1050 = vrot.lane.b32.xlu0 %v8680_v47, %s5342_s13 }
 0x12a   :  { %v679_v44 = vpop.permute.xlu1 %678 }
 0x12b   :  { %764 = vst.msk [vmem:[#allocation3 + $0x58] sm:$0xff] %vm752_vm4, %v679_v44  ;;  %v681_v55 = vpop.permute.xlu0 %680  ;;  %v8695_v44 = vld [vmem:[#allocation34_spill] sm:$0xff] }
 0x12c   :  { %1052 = vrot.lane.b32.xlu1 %v8681_v50, %s5342_s13  ;;  %765 = vst.msk [vmem:[#allocation3 + $0x60] sm:$0xff] %vm752_vm4, %v681_v55  ;;  %v8696_v55 = vld [vmem:[#allocation35_spill] sm:$0xff] }
 0x12d   :  { %1054 = vrot.lane.b32.xlu0 %v8682_v0, %s5342_s13 }
 0x12e   :  { %v683_v56 = vpop.permute.xlu1 %682 }
 0x12f   :  { %766 = vst.msk [vmem:[#allocation3 + $0x68] sm:$0xff] %vm752_vm4, %v683_v56  ;;  %v685_v14 = vpop.permute.xlu0 %684  ;;  %v8697_v56 = vld [vmem:[#allocation36_spill] sm:$0xff] }
 0x130   :  { %1056 = vrot.lane.b32.xlu1 %v8683_v5, %s5342_s13  ;;  %767 = vst.msk [vmem:[#allocation3 + $0x70] sm:$0xff] %vm752_vm4, %v685_v14  ;;  %v8698_v14 = vld [vmem:[#allocation37_spill] sm:$0xff] }
 0x131   :  { %1058 = vrot.lane.b32.xlu0 %v8684_v18, %s5342_s13 }
 0x132   :  { %v687_v16 = vpop.permute.xlu1 %686 }
 0x133   :  { %768 = vst.msk [vmem:[#allocation3 + $0x78] sm:$0xff] %vm752_vm4, %v687_v16  ;;  %v689_v22 = vpop.permute.xlu0 %688  ;;  %v8699_v16 = vld [vmem:[#allocation38_spill] sm:$0xff] }
 0x134   :  { %1060 = vrot.lane.b32.xlu1 %v8685_v20, %s5342_s13  ;;  %769 = vst.msk [vmem:[#allocation3 + $0x80] sm:$0xff] %vm752_vm4, %v689_v22  ;;  %v8700_v22 = vld [vmem:[#allocation39_spill] sm:$0xff] }
 0x135   :  { %1062 = vrot.lane.b32.xlu0 %v8686_v27, %s5342_s13 }
 0x136   :  { %v691_v24 = vpop.permute.xlu1 %690 }
 0x137   :  { %770 = vst.msk [vmem:[#allocation3 + $0x88] sm:$0xff] %vm752_vm4, %v691_v24  ;;  %v693_v52 = vpop.permute.xlu0 %692  ;;  %v8701_v24 = vld [vmem:[#allocation40_spill] sm:$0xff] }
 0x138   :  { %1064 = vrot.lane.b32.xlu1 %v8687_v33, %s5342_s13  ;;  %771 = vst.msk [vmem:[#allocation3 + $0x90] sm:$0xff] %vm752_vm4, %v693_v52 }
 0x139   :  { %1066 = vrot.lane.b32.xlu0 %v8688_v36, %s5342_s13 }
 0x13a   :  { %v695_v39 = vpop.permute.xlu1 %694 }
 0x13b   :  { %772 = vst.msk [vmem:[#allocation3 + $0x98] sm:$0xff] %vm752_vm4, %v695_v39  ;;  %v697_v37 = vpop.permute.xlu0 %696 }
 0x13c   :  { %1068 = vrot.lane.b32.xlu1 %v8689_v40, %s5342_s13  ;;  %773 = vst.msk [vmem:[#allocation3 + $0xa0] sm:$0xff] %vm752_vm4, %v697_v37  ;;  %v6317_v37 = vld [vmem:[#allocation2 + $0x32] sm:$0xff] }
 0x13d   :  { %1070 = vrot.lane.b32.xlu0 %v8690_v51, %s5342_s13 }
 0x13e   :  { %v699_v26 = vpop.permute.xlu1 %698 }
 0x13f   :  { %774 = vst.msk [vmem:[#allocation3 + $0xa8] sm:$0xff] %vm752_vm4, %v699_v26  ;;  %v701_v29 = vpop.permute.xlu0 %700  ;;  %v6326_v26 = vld [vmem:[#allocation2 + $0x3a] sm:$0xff] }
 0x140   :  { %1072 = vrot.lane.b32.xlu1 %v8691_v28, %s5342_s13  ;;  %775 = vst.msk [vmem:[#allocation3 + $0xb0] sm:$0xff] %vm752_vm4, %v701_v29  ;;  %v6335_v28 = vld [vmem:[#allocation2 + $0x49] sm:$0xff] }
 0x141   :  { %1074 = vrot.lane.b32.xlu0 %v8692_v31, %s5342_s13  ;;  %v6337_v29 = vld [vmem:[#allocation2 + $0x4a] sm:$0xff] }
 0x142   :  { %v703_v30 = vpop.permute.xlu1 %702  ;;  %2200 = vst.msk [vmem:[#allocation2 + $0x48] sm:$0xff] %vm21_vm0, %v8671_v32 }
 0x143   :  { %776 = vst.msk [vmem:[#allocation3 + $0xb8] sm:$0xff] %vm752_vm4, %v703_v30  ;;  %v705_v41 = vpop.permute.xlu0 %704  ;;  %v6346_v30 = vld [vmem:[#allocation2 + $0x52] sm:$0xff] }
 0x144   :  { %1076 = vrot.lane.b32.xlu1 %v8693_v38, %s5342_s13  ;;  %777 = vst.msk [vmem:[#allocation3 + $0xc0] sm:$0xff] %vm752_vm4, %v705_v41  ;;  %v6355_v38 = vld [vmem:[#allocation2 + $0x61] sm:$0xff] }
 0x145   :  { %1078 = vrot.lane.b32.xlu0 %v8694_v43, %s5342_s13  ;;  %v6357_v41 = vld [vmem:[#allocation2 + $0x62] sm:$0xff] }
 0x146   :  { %v707_v42 = vpop.permute.xlu1 %706  ;;  %2203 = vst.msk [vmem:[#allocation2 + $0x60] sm:$0xff] %vm21_vm0, %v8671_v32 }
 0x147   :  { %778 = vst.msk [vmem:[#allocation3 + $0xc8] sm:$0xff] %vm752_vm4, %v707_v42  ;;  %v709_v47 = vpop.permute.xlu0 %708  ;;  %v6366_v42 = vld [vmem:[#allocation2 + $0x6a] sm:$0xff] }
 0x148   :  { %1080 = vrot.lane.b32.xlu1 %v8695_v44, %s5342_s13  ;;  %779 = vst.msk [vmem:[#allocation3 + $0xd0] sm:$0xff] %vm752_vm4, %v709_v47  ;;  %v6375_v44 = vld [vmem:[#allocation2 + $0x79] sm:$0xff] }
 0x149   :  { %1082 = vrot.lane.b32.xlu0 %v8696_v55, %s5342_s13  ;;  %v6377_v47 = vld [vmem:[#allocation2 + $0x7a] sm:$0xff] }
 0x14a   :  { %v711_v50 = vpop.permute.xlu1 %710  ;;  %2206 = vst.msk [vmem:[#allocation2 + $0x78] sm:$0xff] %vm21_vm0, %v8671_v32 }
 0x14b   :  { %780 = vst.msk [vmem:[#allocation3 + $0xd8] sm:$0xff] %vm752_vm4, %v711_v50  ;;  %v713_v0 = vpop.permute.xlu0 %712  ;;  %v6386_v50 = vld [vmem:[#allocation2 + $0x82] sm:$0xff] }
 0x14c   :  { %1084 = vrot.lane.b32.xlu1 %v8697_v56, %s5342_s13  ;;  %781 = vst.msk [vmem:[#allocation3 + $0xe0] sm:$0xff] %vm752_vm4, %v713_v0  ;;  %v6395_v56 = vld [vmem:[#allocation2 + $0x91] sm:$0xff] }
 0x14d   :  { %1086 = vrot.lane.b32.xlu0 %v8698_v14, %s5342_s13  ;;  %v6397_v0 = vld [vmem:[#allocation2 + $0x92] sm:$0xff] }
 0x14e   :  { %v715_v5 = vpop.permute.xlu1 %714  ;;  %2209 = vst.msk [vmem:[#allocation2 + $0x90] sm:$0xff] %vm21_vm0, %v8671_v32 }
 0x14f   :  { %782 = vst.msk [vmem:[#allocation3 + $0xe8] sm:$0xff] %vm752_vm4, %v715_v5  ;;  %v717_v18 = vpop.permute.xlu0 %716  ;;  %v6406_v5 = vld [vmem:[#allocation2 + $0x9a] sm:$0xff] }
 0x150   :  { %1088 = vrot.lane.b32.xlu1 %v8699_v16, %s5342_s13  ;;  %783 = vst.msk [vmem:[#allocation3 + $0xf0] sm:$0xff] %vm752_vm4, %v717_v18  ;;  %v6415_v16 = vld [vmem:[#allocation2 + $0xa9] sm:$0xff] }
 0x151   :  { %1090 = vrot.lane.b32.xlu0 %v8700_v22, %s5342_s13  ;;  %v6417_v18 = vld [vmem:[#allocation2 + $0xaa] sm:$0xff] }
 0x152   :  { %v719_v20 = vpop.permute.xlu1 %718  ;;  %2212 = vst.msk [vmem:[#allocation2 + $0xa8] sm:$0xff] %vm21_vm0, %v8671_v32 }
 0x153   :  { %784 = vst.msk [vmem:[#allocation3 + $0xf8] sm:$0xff] %vm752_vm4, %v719_v20  ;;  %v850_v27 = vpop.permute.xlu0 %849  ;;  %v6426_v20 = vld [vmem:[#allocation2 + $0xb2] sm:$0xff] }
 0x154   :  { %1092 = vrot.lane.b32.xlu1 %v8701_v24, %s5342_s13  ;;  %946 = vst.msk [vmem:[#allocation3] sm:$0xff] %vm945_vm5, %v850_v27  ;;  %v6435_v24 = vld [vmem:[#allocation2 + $0xc1] sm:$0xff] }
 0x155   :  { %1094 = vrot.lane.b32.xlu0 %v5984_v35, %s5342_s13  ;;  %v6437_v27 = vld [vmem:[#allocation2 + $0xc2] sm:$0xff] }
 0x156   :  { %v852_v33 = vpop.permute.xlu1 %851  ;;  %2215 = vst.msk [vmem:[#allocation2 + $0xc0] sm:$0xff] %vm21_vm0, %v8671_v32 }
 0x157   :  { %947 = vst.msk [vmem:[#allocation3 + $0x8] sm:$0xff] %vm945_vm5, %v852_v33  ;;  %v854_v52 = vpop.permute.xlu0 %853  ;;  %v6446_v33 = vld [vmem:[#allocation2 + $0xca] sm:$0xff] }
 0x158   :  { %1096 = vrot.lane.b32.xlu1 %v5986_v45, %s5342_s13  ;;  %948 = vst.msk [vmem:[#allocation3 + $0x10] sm:$0xff] %vm945_vm5, %v854_v52 }
 0x159   :  { %1098 = vrot.lane.b32.xlu0 %v5994_v2, %s5342_s13  ;;  %v6315_v2 = vld [vmem:[#allocation2 + $0x31] sm:$0xff] }
 0x15a   :  { %v856_v39 = vpop.permute.xlu1 %855  ;;  %2197 = vst.msk [vmem:[#allocation2 + $0x30] sm:$0xff] %vm21_vm0, %v8671_v32 }
 0x15b   :  { %949 = vst.msk [vmem:[#allocation3 + $0x18] sm:$0xff] %vm945_vm5, %v856_v39  ;;  %v858_v36 = vpop.permute.xlu0 %857  ;;  %v6455_v39 = vld [vmem:[#allocation2 + $0xd9] sm:$0xff] }
 0x15c   :  { %1100 = vrot.lane.b32.xlu1 %v5996_v48, %s5342_s13  ;;  %950 = vst.msk [vmem:[#allocation3 + $0x20] sm:$0xff] %vm945_vm5, %v858_v36  ;;  %v6322_v48 = vld [vmem:[#allocation2 + $0x39] sm:$0xff] }
 0x15d   :  { %1102 = vrot.lane.b32.xlu0 %v6105_v49, %s5342_s13  ;;  %2199 = vst.msk [vmem:[#allocation2 + $0x40] sm:$0x3] %vm24_vm1, %v8671_v32  ;;  %v6457_v36 = vld [vmem:[#allocation2 + $0xda] sm:$0xff] }
 0x15e   :  { %v860_v40 = vpop.permute.xlu1 %859  ;;  %2198 = vst.msk [vmem:[#allocation2 + $0x38] sm:$0xff] %vm21_vm0, %v8671_v32  ;;  %2218 = vst.msk [vmem:[#allocation2 + $0xd8] sm:$0xff] %vm21_vm0, %v8671_v32  ;;  %v5077_v49 = vld [vmem:[%s8538_s0 + $0x1f8] sm:$0xff] }
 0x15f   :  { %951 = vst.msk [vmem:[#allocation3 + $0x28] sm:$0xff] %vm945_vm5, %v860_v40  ;;  %v862_v35 = vpop.permute.xlu0 %861  ;;  %v6466_v40 = vld [vmem:[#allocation2 + $0xe2] sm:$0xff] }
 0x160   :  { %1104 = vrot.lane.b32.xlu1 %v6112_v34, %s5342_s13  ;;  %952 = vst.msk [vmem:[#allocation3 + $0x30] sm:$0xff] %vm945_vm5, %v862_v35  ;;  %v8708_v34 = vld [vmem:[#allocation12_spill] sm:$0xff] }
 0x161   :  { %1236 = vrot.lane.b32.xlu0 %v5680_v53, %s5343_s14  ;;  %2309 = vst.msk [vmem:[#allocation2 + $0x189] sm:$0xff] %vm21_vm0, %v5077_v49  ;;  %v6618_v49 = vld [vmem:[#allocation2 + $0x1a2] sm:$0xff] }
 0x162   :  { %v864_v45 = vpop.permute.xlu1 %863 }
 0x163   :  { %953 = vst.msk [vmem:[#allocation3 + $0x38] sm:$0xff] %vm945_vm5, %v864_v45  ;;  %v866_v51 = vpop.permute.xlu0 %865  ;;  %v6475_v45 = vld [vmem:[#allocation2 + $0xf1] sm:$0xff] }
 0x164   :  { %1238 = vrot.lane.b32.xlu1 %v5682_v54, %s5343_s14  ;;  %954 = vst.msk [vmem:[#allocation3 + $0x40] sm:$0xff] %vm945_vm5, %v866_v51  ;;  %v6342_v54 = vld [vmem:[#allocation2 + $0x51] sm:$0xff] }
 0x165   :  { %1240 = vrot.lane.b32.xlu0 %v5696_v57, %s5343_s14  ;;  %2202 = vst.msk [vmem:[#allocation2 + $0x58] sm:$0x3] %vm24_vm1, %v8671_v32  ;;  %v6477_v51 = vld [vmem:[#allocation2 + $0xf2] sm:$0xff] }
 0x166   :  { %v868_v53 = vpop.permute.xlu1 %867  ;;  %2201 = vst.msk [vmem:[#allocation2 + $0x50] sm:$0xff] %vm21_vm0, %v8671_v32  ;;  %2221 = vst.msk [vmem:[#allocation2 + $0xf0] sm:$0xff] %vm21_vm0, %v8671_v32 }
 0x167   :  { %955 = vst.msk [vmem:[#allocation3 + $0x48] sm:$0xff] %vm945_vm5, %v868_v53  ;;  %v870_v31 = vpop.permute.xlu0 %869  ;;  %v6486_v53 = vld [vmem:[#allocation2 + $0xfa] sm:$0xff] }
 0x168   :  { %1242 = vrot.lane.b32.xlu1 %v5702_v58, %s5343_s14  ;;  %956 = vst.msk [vmem:[#allocation3 + $0x50] sm:$0xff] %vm945_vm5, %v870_v31  ;;  %v6362_v58 = vld [vmem:[#allocation2 + $0x69] sm:$0xff] }
 0x169   :  { %1244 = vrot.lane.b32.xlu0 %v5704_v59, %s5343_s14  ;;  %2205 = vst.msk [vmem:[#allocation2 + $0x70] sm:$0x3] %vm24_vm1, %v8671_v32 }
 0x16a   :  { %v872_v57 = vpop.permute.xlu1 %871  ;;  %2204 = vst.msk [vmem:[#allocation2 + $0x68] sm:$0xff] %vm21_vm0, %v8671_v32 }
 0x16b   :  { %957 = vst.msk [vmem:[#allocation3 + $0x58] sm:$0xff] %vm945_vm5, %v872_v57  ;;  %v874_v43 = vpop.permute.xlu0 %873  ;;  %v6495_v57 = vld [vmem:[#allocation2 + $0x109] sm:$0xff] }
 0x16c   :  { %1246 = vrot.lane.b32.xlu1 %v5706_v60, %s5343_s14  ;;  %958 = vst.msk [vmem:[#allocation3 + $0x60] sm:$0xff] %vm945_vm5, %v874_v43  ;;  %v6382_v60 = vld [vmem:[#allocation2 + $0x81] sm:$0xff]  ;;  %v6497_v43 = vld [vmem:[#allocation2 + $0x10a] sm:$0xff] }
 0x16d   :  { %1248 = vrot.lane.b32.xlu0 %v5714_v61, %s5343_s14  ;;  %2208 = vst.msk [vmem:[#allocation2 + $0x88] sm:$0x3] %vm24_vm1, %v8671_v32 }
 0x16e   :  { %v876_v59 = vpop.permute.xlu1 %875  ;;  %2207 = vst.msk [vmem:[#allocation2 + $0x80] sm:$0xff] %vm21_vm0, %v8671_v32  ;;  %2224 = vst.msk [vmem:[#allocation2 + $0x108] sm:$0xff] %vm21_vm0, %v8671_v32 }
 0x16f   :  { %959 = vst.msk [vmem:[#allocation3 + $0x68] sm:$0xff] %vm945_vm5, %v876_v59  ;;  %v878_v55 = vpop.permute.xlu0 %877  ;;  %v6506_v59 = vld [vmem:[#allocation2 + $0x112] sm:$0xff] }
 0x170   :  { %1250 = vrot.lane.b32.xlu1 %v5716_v62, %s5343_s14  ;;  %960 = vst.msk [vmem:[#allocation3 + $0x70] sm:$0xff] %vm945_vm5, %v878_v55  ;;  %v6402_v62 = vld [vmem:[#allocation2 + $0x99] sm:$0xff] }
 0x171   :  { %1252 = vrot.lane.b32.xlu0 %v5718_v63, %s5343_s14  ;;  %2211 = vst.msk [vmem:[#allocation2 + $0xa0] sm:$0x3] %vm24_vm1, %v8671_v32 }
 0x172   :  { %v880_v61 = vpop.permute.xlu1 %879  ;;  %2210 = vst.msk [vmem:[#allocation2 + $0x98] sm:$0xff] %vm21_vm0, %v8671_v32 }
 0x173   :  { %961 = vst.msk [vmem:[#allocation3 + $0x78] sm:$0xff] %vm945_vm5, %v880_v61  ;;  %v882_v14 = vpop.permute.xlu0 %881  ;;  %v6515_v61 = vld [vmem:[#allocation2 + $0x121] sm:$0xff] }
 0x174   :  { %1254 = vrot.lane.b32.xlu1 %v5728_v1, %s5343_s14  ;;  %962 = vst.msk [vmem:[#allocation3 + $0x80] sm:$0xff] %vm945_vm5, %v882_v14  ;;  %v6422_v1 = vld [vmem:[#allocation2 + $0xb1] sm:$0xff]  ;;  %v6517_v14 = vld [vmem:[#allocation2 + $0x122] sm:$0xff] }
 0x175   :  { %1256 = vrot.lane.b32.xlu0 %v5730_v3, %s5343_s14  ;;  %2214 = vst.msk [vmem:[#allocation2 + $0xb8] sm:$0x3] %vm24_vm1, %v8671_v32 }
 0x176   :  { %v884_v63 = vpop.permute.xlu1 %883  ;;  %2213 = vst.msk [vmem:[#allocation2 + $0xb0] sm:$0xff] %vm21_vm0, %v8671_v32  ;;  %2227 = vst.msk [vmem:[#allocation2 + $0x120] sm:$0xff] %vm21_vm0, %v8671_v32 }
 0x177   :  { %963 = vst.msk [vmem:[#allocation3 + $0x88] sm:$0xff] %vm945_vm5, %v884_v63  ;;  %v886_v22 = vpop.permute.xlu0 %885  ;;  %v6526_v63 = vld [vmem:[#allocation2 + $0x12a] sm:$0xff] }
 0x178   :  { %1258 = vrot.lane.b32.xlu1 %v5732_v4, %s5343_s14  ;;  %964 = vst.msk [vmem:[#allocation3 + $0x90] sm:$0xff] %vm945_vm5, %v886_v22  ;;  %v6442_v4 = vld [vmem:[#allocation2 + $0xc9] sm:$0xff] }
 0x179   :  { %1260 = vrot.lane.b32.xlu0 %v5744_v6, %s5343_s14  ;;  %2217 = vst.msk [vmem:[#allocation2 + $0xd0] sm:$0x3] %vm24_vm1, %v8671_v32 }
 0x17a   :  { %v888_v3 = vpop.permute.xlu1 %887  ;;  %2216 = vst.msk [vmem:[#allocation2 + $0xc8] sm:$0xff] %vm21_vm0, %v8671_v32 }
 0x17b   :  { %965 = vst.msk [vmem:[#allocation3 + $0x98] sm:$0xff] %vm945_vm5, %v888_v3  ;;  %v890_v52 = vpop.permute.xlu0 %889  ;;  %v6535_v3 = vld [vmem:[#allocation2 + $0x139] sm:$0xff] }
 0x17c   :  { %1262 = vrot.lane.b32.xlu1 %v5746_v7, %s5343_s14  ;;  %966 = vst.msk [vmem:[#allocation3 + $0xa0] sm:$0xff] %vm945_vm5, %v890_v52  ;;  %v6462_v7 = vld [vmem:[#allocation2 + $0xe1] sm:$0xff] }
 0x17d   :  { %1264 = vrot.lane.b32.xlu0 %v5748_v8, %s5343_s14  ;;  %2220 = vst.msk [vmem:[#allocation2 + $0xe8] sm:$0x3] %vm24_vm1, %v8671_v32  ;;  %v6537_v52 = vld [vmem:[#allocation2 + $0x13a] sm:$0xff] }
 0x17e   :  { %v892_v6 = vpop.permute.xlu1 %891  ;;  %2219 = vst.msk [vmem:[#allocation2 + $0xe0] sm:$0xff] %vm21_vm0, %v8671_v32  ;;  %2230 = vst.msk [vmem:[#allocation2 + $0x138] sm:$0xff] %vm21_vm0, %v8671_v32 }
 0x17f   :  { %967 = vst.msk [vmem:[#allocation3 + $0xa8] sm:$0xff] %vm945_vm5, %v892_v6  ;;  %v894_v35 = vpop.permute.xlu0 %893  ;;  %v6546_v6 = vld [vmem:[#allocation2 + $0x142] sm:$0xff] }
 0x180   :  { %1266 = vrot.lane.b32.xlu1 %v5758_v9, %s5343_s14  ;;  %968 = vst.msk [vmem:[#allocation3 + $0xb0] sm:$0xff] %vm945_vm5, %v894_v35  ;;  %v6482_v9 = vld [vmem:[#allocation2 + $0xf9] sm:$0xff] }
 0x181   :  { %1268 = vrot.lane.b32.xlu0 %v5760_v10, %s5343_s14  ;;  %2223 = vst.msk [vmem:[#allocation2 + $0x100] sm:$0x3] %vm24_vm1, %v8671_v32 }
 0x182   :  { %v896_v8 = vpop.permute.xlu1 %895  ;;  %2222 = vst.msk [vmem:[#allocation2 + $0xf8] sm:$0xff] %vm21_vm0, %v8671_v32 }
 0x183   :  { %969 = vst.msk [vmem:[#allocation3 + $0xb8] sm:$0xff] %vm945_vm5, %v896_v8  ;;  %v898_v31 = vpop.permute.xlu0 %897  ;;  %v6555_v8 = vld [vmem:[#allocation2 + $0x151] sm:$0xff] }
 0x184   :  { %1270 = vrot.lane.b32.xlu1 %v5762_v11, %s5343_s14  ;;  %970 = vst.msk [vmem:[#allocation3 + $0xc0] sm:$0xff] %vm945_vm5, %v898_v31  ;;  %v6502_v11 = vld [vmem:[#allocation2 + $0x111] sm:$0xff] }
 0x185   :  { %1272 = vrot.lane.b32.xlu0 %v5770_v12, %s5343_s14  ;;  %2226 = vst.msk [vmem:[#allocation2 + $0x118] sm:$0x3] %vm24_vm1, %v8671_v32  ;;  %v6557_v31 = vld [vmem:[#allocation2 + $0x152] sm:$0xff] }
 0x186   :  { %v900_v10 = vpop.permute.xlu1 %899  ;;  %2225 = vst.msk [vmem:[#allocation2 + $0x110] sm:$0xff] %vm21_vm0, %v8671_v32  ;;  %8702 = vst [vmem:[#allocation13_spill] sm:$0xff] %v6557_v31  ;;  %v6605_v31 = vld [vmem:[#allocation2 + $0x199] sm:$0xff] }
 0x187   :  { %971 = vst.msk [vmem:[#allocation3 + $0xc8] sm:$0xff] %vm945_vm5, %v900_v10  ;;  %v902_v55 = vpop.permute.xlu0 %901  ;;  %v6566_v10 = vld [vmem:[#allocation2 + $0x15a] sm:$0xff] }
 0x188   :  { %1274 = vrot.lane.b32.xlu1 %v5772_v13, %s5343_s14  ;;  %972 = vst.msk [vmem:[#allocation3 + $0xd0] sm:$0xff] %vm945_vm5, %v902_v55  ;;  %v6522_v13 = vld [vmem:[#allocation2 + $0x129] sm:$0xff]  ;;  %8703 = vst [vmem:[#allocation14_spill] sm:$0xff] %v6566_v10  ;;  %v8704_v55 = vld [vmem:[#allocation10_spill] sm:$0xff] }
 0x189   :  { %1276 = vrot.lane.b32.xlu0 %v5784_v15, %s5343_s14  ;;  %2229 = vst.msk [vmem:[#allocation2 + $0x130] sm:$0x3] %vm24_vm1, %v8671_v32  ;;  %v1203_v10 = vld [vmem:[#allocation2 + $0x1a0] sm:$0xff] }
 0x18a   :  { %v904_v12 = vpop.permute.xlu1 %903  ;;  %2228 = vst.msk [vmem:[#allocation2 + $0x128] sm:$0xff] %vm21_vm0, %v8671_v32  ;;  %2233 = vst.msk [vmem:[#allocation2 + $0x150] sm:$0xff] %vm21_vm0, %v8671_v32 }
 0x18b   :  { %973 = vst.msk [vmem:[#allocation3 + $0xd8] sm:$0xff] %vm945_vm5, %v904_v12  ;;  %v906_v22 = vpop.permute.xlu0 %905 }
 0x18c   :  { %1278 = vrot.lane.b32.xlu1 %v5790_v17, %s5343_s14  ;;  %974 = vst.msk [vmem:[#allocation3 + $0xe0] sm:$0xff] %vm945_vm5, %v906_v22  ;;  %v6542_v17 = vld [vmem:[#allocation2 + $0x141] sm:$0xff]  ;;  %v6575_v22 = vld [vmem:[#allocation2 + $0x169] sm:$0xff] }
 0x18d   :  { %1280 = vrot.lane.b32.xlu0 %v5800_v19, %s5343_s14  ;;  %2232 = vst.msk [vmem:[#allocation2 + $0x148] sm:$0x3] %vm24_vm1, %v8671_v32 }
 0x18e   :  { %v908_v15 = vpop.permute.xlu1 %907  ;;  %2231 = vst.msk [vmem:[#allocation2 + $0x140] sm:$0xff] %vm21_vm0, %v8671_v32 }
 0x18f   :  { %975 = vst.msk [vmem:[#allocation3 + $0xe8] sm:$0xff] %vm945_vm5, %v908_v15  ;;  %v910_v35 = vpop.permute.xlu0 %909  ;;  %v6577_v15 = vld [vmem:[#allocation2 + $0x16a] sm:$0xff] }
 0x190   :  { %1282 = vrot.lane.b32.xlu1 %v5806_v21, %s5343_s14  ;;  %976 = vst.msk [vmem:[#allocation3 + $0xf0] sm:$0xff] %vm945_vm5, %v910_v35  ;;  %v6562_v21 = vld [vmem:[#allocation2 + $0x159] sm:$0xff]  ;;  %8705 = vst [vmem:[#allocation15_spill] sm:$0xff] %v6577_v15  ;;  %v8706_v35 = vld [vmem:[#allocation11_spill] sm:$0xff] }
 0x191   :  { %1284 = vrot.lane.b32.xlu0 %v5816_v23, %s5343_s14  ;;  %2235 = vst.msk [vmem:[#allocation2 + $0x160] sm:$0x3] %vm24_vm1, %v8671_v32 }
 0x192   :  { %v912_v19 = vpop.permute.xlu1 %911  ;;  %2234 = vst.msk [vmem:[#allocation2 + $0x158] sm:$0xff] %vm21_vm0, %v8671_v32  ;;  %2236 = vst.msk [vmem:[#allocation2 + $0x168] sm:$0xff] %vm21_vm0, %v8671_v32 }
 0x193   :  { %977 = vst.msk [vmem:[#allocation3 + $0xf8] sm:$0xff] %vm945_vm5, %v912_v19  ;;  %v1043_v12 = vpop.permute.xlu0 %1042  ;;  %v6582_v19 = vld [vmem:[#allocation2 + $0x171] sm:$0xff] }
 0x194   :  { %1286 = vrot.lane.b32.xlu1 %v8704_v55, %s5343_s14  ;;  %1139 = vst.msk [vmem:[#allocation3] sm:$0xff] %vm1138_vm6, %v1043_v12  ;;  %v6586_v55 = vld [vmem:[#allocation2 + $0x172] sm:$0xff] }
 0x195   :  { %1288 = vrot.lane.b32.xlu0 %v8706_v35, %s5343_s14  ;;  %8707 = vst [vmem:[#allocation16_spill] sm:$0xff] %v6586_v55  ;;  %2238 = vst.msk [vmem:[#allocation2 + $0x178] sm:$0x3] %vm24_vm1, %v8671_v32  ;;  %v8709_v35 = vld [vmem:[#allocation41_spill] sm:$0xff] }
 0x196   :  { %v1045_v23 = vpop.permute.xlu1 %1044  ;;  %2237 = vst.msk [vmem:[#allocation2 + $0x170] sm:$0xff] %vm21_vm0, %v8671_v32  ;;  %v1202_v55 = vld [vmem:[#allocation2 + $0x198] sm:$0xff] }
 0x197   :  { %1140 = vst.msk [vmem:[#allocation3 + $0x8] sm:$0xff] %vm1138_vm6, %v1045_v23  ;;  %v1047_v12 = vpop.permute.xlu0 %1046 }
 0x198   :  { %1290 = vrot.lane.b32.xlu1 %v8708_v34, %s5343_s14  ;;  %1141 = vst.msk [vmem:[#allocation3 + $0x10] sm:$0xff] %vm1138_vm6, %v1047_v12  ;;  %v8710_v34 = vld [vmem:[#allocation42_spill] sm:$0xff] }
 0x199   :  { %1292 = vrot.lane.b32.xlu0 %v8709_v35, %s5343_s14  ;;  %v5046_v35 = vld [vmem:[%s8538_s0 + $0x100] sm:$0xff] }
 0x19a   :  { %v1049_v23 = vpop.permute.xlu1 %1048  ;;  %2278 = vst.msk [vmem:[#allocation2 + $0x19] sm:$0xff] %vm21_vm0, %v5046_v35 }
 0x19b   :  { %1142 = vst.msk [vmem:[#allocation3 + $0x18] sm:$0xff] %vm1138_vm6, %v1049_v23  ;;  %v1051_v15 = vpop.permute.xlu0 %1050  ;;  %v6607_v23 = vld [vmem:[#allocation2 + $0x19a] sm:$0xff] }
 0x19c   :  { %1294 = vrot.lane.b32.xlu1 %v8710_v34, %s5343_s14  ;;  %1143 = vst.msk [vmem:[#allocation3 + $0x20] sm:$0xff] %vm1138_vm6, %v1051_v15  ;;  %v6614_v34 = vld [vmem:[#allocation2 + $0x1a1] sm:$0xff] }
 0x19d   :  { %1296 = vrot.lane.b32.xlu0 %v1202_v55, %s5343_s14  ;;  %2242 = vst.msk [vmem:[#allocation2 + $0x198] sm:$0xff] %vm21_vm0, %v8671_v32  ;;  %2243 = vst.msk [vmem:[#allocation2 + $0x1a0] sm:$0xff] %vm21_vm0, %v8671_v32 }
 0x19e   :  { %v1053_v12 = vpop.permute.xlu1 %1052  ;;  %2244 = vst.msk [vmem:[#allocation2 + $0x1a8] sm:$0x3] %vm24_vm1, %v8671_v32  ;;  %v5049_v32 = vld [vmem:[%s8538_s0 + $0x118] sm:$0xff] }
 0x19f   :  { %1144 = vst.msk [vmem:[#allocation3 + $0x28] sm:$0xff] %vm1138_vm6, %v1053_v12  ;;  %v1055_v15 = vpop.permute.xlu0 %1054  ;;  %v5048_v12 = vld [vmem:[%s8538_s0 + $0x110] sm:$0xff] }
 0x1a0   :  { %1298 = vrot.lane.b32.xlu1 %v1203_v10, %s5343_s14  ;;  %1145 = vst.msk [vmem:[#allocation3 + $0x30] sm:$0xff] %vm1138_vm6, %v1055_v15  ;;  %v5050_v15 = vld [vmem:[%s8538_s0 + $0x120] sm:$0xff] }
 0x1a1   :  { %1429 = vrot.lane.b32.xlu0 %v6315_v2, %s5344_s22  ;;  %2280 = vst.msk [vmem:[#allocation2 + $0x31] sm:$0xff] %vm21_vm0, %v5048_v12  ;;  %2281 = vst.msk [vmem:[#allocation2 + $0x39] sm:$0xff] %vm21_vm0, %v5049_v32  ;;  %v5051_v2 = vld [vmem:[%s8538_s0 + $0x128] sm:$0xff]  ;;  %v5052_v12 = vld [vmem:[%s8538_s0 + $0x130] sm:$0xff] }
 0x1a2   :  { %v1057_v55 = vpop.permute.xlu1 %1056  ;;  %2282 = vst.msk [vmem:[#allocation2 + $0x49] sm:$0xff] %vm21_vm0, %v5050_v15  ;;  %2283 = vst.msk [vmem:[#allocation2 + $0x51] sm:$0xff] %vm21_vm0, %v5051_v2  ;;  %v5056_v15 = vld [vmem:[%s8538_s0 + $0x150] sm:$0xff] }
 0x1a3   :  { %1146 = vst.msk [vmem:[#allocation3 + $0x38] sm:$0xff] %vm1138_vm6, %v1057_v55  ;;  %v1059_v10 = vpop.permute.xlu0 %1058 }
 0x1a4   :  { %1431 = vrot.lane.b32.xlu1 %v6322_v48, %s5344_s22  ;;  %1147 = vst.msk [vmem:[#allocation3 + $0x40] sm:$0xff] %vm1138_vm6, %v1059_v10  ;;  %v5054_v10 = vld [vmem:[%s8538_s0 + $0x140] sm:$0xff] }
 0x1a5   :  { %1433 = vrot.lane.b32.xlu0 %v6335_v28, %s5344_s22  ;;  %2284 = vst.msk [vmem:[#allocation2 + $0x61] sm:$0xff] %vm21_vm0, %v5052_v12  ;;  %v5053_v28 = vld [vmem:[%s8538_s0 + $0x138] sm:$0xff]  ;;  %2286 = vst.msk [vmem:[#allocation2 + $0x79] sm:$0xff] %vm21_vm0, %v5054_v10  ;;  %v5060_v12 = vld [vmem:[%s8538_s0 + $0x170] sm:$0xff] }
 0x1a6   :  { %v1061_v35 = vpop.permute.xlu1 %1060  ;;  %2285 = vst.msk [vmem:[#allocation2 + $0x69] sm:$0xff] %vm21_vm0, %v5053_v28  ;;  %2288 = vst.msk [vmem:[#allocation2 + $0x91] sm:$0xff] %vm21_vm0, %v5056_v15  ;;  %v5064_v10 = vld [vmem:[%s8538_s0 + $0x190] sm:$0xff] }
 0x1a7   :  { %1148 = vst.msk [vmem:[#allocation3 + $0x48] sm:$0xff] %vm1138_vm6, %v1061_v35  ;;  %v1063_v48 = vpop.permute.xlu0 %1062  ;;  %v5068_v15 = vld [vmem:[%s8538_s0 + $0x1b0] sm:$0xff] }
 0x1a8   :  { %1435 = vrot.lane.b32.xlu1 %v6342_v54, %s5344_s22  ;;  %1149 = vst.msk [vmem:[#allocation3 + $0x50] sm:$0xff] %vm1138_vm6, %v1063_v48  ;;  %v5058_v48 = vld [vmem:[%s8538_s0 + $0x160] sm:$0xff] }
 0x1a9   :  { %1437 = vrot.lane.b32.xlu0 %v6355_v38, %s5344_s22  ;;  %v5055_v38 = vld [vmem:[%s8538_s0 + $0x148] sm:$0xff]  ;;  %2290 = vst.msk [vmem:[#allocation2 + $0xa9] sm:$0xff] %vm21_vm0, %v5058_v48  ;;  %2292 = vst.msk [vmem:[#allocation2 + $0xc1] sm:$0xff] %vm21_vm0, %v5060_v12  ;;  %v5072_v48 = vld [vmem:[%s8538_s0 + $0x1d0] sm:$0xff] }
 0x1aa   :  { %v1065_v55 = vpop.permute.xlu1 %1064  ;;  %2287 = vst.msk [vmem:[#allocation2 + $0x81] sm:$0xff] %vm21_vm0, %v5055_v38  ;;  %2296 = vst.msk [vmem:[#allocation2 + $0xf1] sm:$0xff] %vm21_vm0, %v5064_v10  ;;  %v1785_v12 = vld [vmem:[%s8539_s1 + $0x10] sm:$0xff] }
 0x1ab   :  { %1150 = vst.msk [vmem:[#allocation3 + $0x58] sm:$0xff] %vm1138_vm6, %v1065_v55  ;;  %v1067_v54 = vpop.permute.xlu0 %1066  ;;  %v8714_v10 = vld [vmem:[#allocation16_spill] sm:$0xff] }
 0x1ac   :  { %1439 = vrot.lane.b32.xlu1 %v6362_v58, %s5344_s22  ;;  %1151 = vst.msk [vmem:[#allocation3 + $0x60] sm:$0xff] %vm1138_vm6, %v1067_v54  ;;  %v5062_v54 = vld [vmem:[%s8538_s0 + $0x180] sm:$0xff] }
 0x1ad   :  { %1441 = vrot.lane.b32.xlu0 %v6375_v44, %s5344_s22  ;;  %v5057_v44 = vld [vmem:[%s8538_s0 + $0x158] sm:$0xff]  ;;  %2294 = vst.msk [vmem:[#allocation2 + $0xd9] sm:$0xff] %vm21_vm0, %v5062_v54  ;;  %2300 = vst.msk [vmem:[#allocation2 + $0x121] sm:$0xff] %vm21_vm0, %v5068_v15 }
 0x1ae   :  { %v1069_v32 = vpop.permute.xlu1 %1068  ;;  %2289 = vst.msk [vmem:[#allocation2 + $0x99] sm:$0xff] %vm21_vm0, %v5057_v44  ;;  %2304 = vst.msk [vmem:[#allocation2 + $0x151] sm:$0xff] %vm21_vm0, %v5072_v48 }
 0x1af   :  { %1152 = vst.msk [vmem:[#allocation3 + $0x68] sm:$0xff] %vm1138_vm6, %v1069_v32  ;;  %v1071_v58 = vpop.permute.xlu0 %1070 }
 0x1b0   :  { %1443 = vrot.lane.b32.xlu1 %v6382_v60, %s5344_s22  ;;  %1153 = vst.msk [vmem:[#allocation3 + $0x70] sm:$0xff] %vm1138_vm6, %v1071_v58  ;;  %v5066_v58 = vld [vmem:[%s8538_s0 + $0x1a0] sm:$0xff] }
 0x1b1   :  { %1445 = vrot.lane.b32.xlu0 %v6395_v56, %s5344_s22  ;;  %v5059_v56 = vld [vmem:[%s8538_s0 + $0x168] sm:$0xff]  ;;  %2298 = vst.msk [vmem:[#allocation2 + $0x109] sm:$0xff] %vm21_vm0, %v5066_v58  ;;  %v8716_v58 = vld [vmem:[#allocation44_spill] sm:$0xff] }
 0x1b2   :  { %v1073_v35 = vpop.permute.xlu1 %1072  ;;  %2291 = vst.msk [vmem:[#allocation2 + $0xb1] sm:$0xff] %vm21_vm0, %v5059_v56 }
 0x1b3   :  { %1154 = vst.msk [vmem:[#allocation3 + $0x78] sm:$0xff] %vm1138_vm6, %v1073_v35  ;;  %v1075_v60 = vpop.permute.xlu0 %1074 }
 0x1b4   :  { %1447 = vrot.lane.b32.xlu1 %v6402_v62, %s5344_s22  ;;  %1155 = vst.msk [vmem:[#allocation3 + $0x80] sm:$0xff] %vm1138_vm6, %v1075_v60  ;;  %v5070_v60 = vld [vmem:[%s8538_s0 + $0x1c0] sm:$0xff] }
 0x1b5   :  { %1449 = vrot.lane.b32.xlu0 %v6415_v16, %s5344_s22  ;;  %v5061_v16 = vld [vmem:[%s8538_s0 + $0x178] sm:$0xff]  ;;  %2302 = vst.msk [vmem:[#allocation2 + $0x139] sm:$0xff] %vm21_vm0, %v5070_v60 }
 0x1b6   :  { %v1077_v2 = vpop.permute.xlu1 %1076  ;;  %2293 = vst.msk [vmem:[#allocation2 + $0xc9] sm:$0xff] %vm21_vm0, %v5061_v16 }
 0x1b7   :  { %1156 = vst.msk [vmem:[#allocation3 + $0x88] sm:$0xff] %vm1138_vm6, %v1077_v2  ;;  %v1079_v62 = vpop.permute.xlu0 %1078 }
 0x1b8   :  { %1451 = vrot.lane.b32.xlu1 %v6422_v1, %s5344_s22  ;;  %1157 = vst.msk [vmem:[#allocation3 + $0x90] sm:$0xff] %vm1138_vm6, %v1079_v62  ;;  %v1786_v62 = vld [vmem:[%s8539_s1 + $0x18] sm:$0xff] }
 0x1b9   :  { %1453 = vrot.lane.b32.xlu0 %v6435_v24, %s5344_s22  ;;  %v5063_v24 = vld [vmem:[%s8538_s0 + $0x188] sm:$0xff] }
 0x1ba   :  { %v1081_v55 = vpop.permute.xlu1 %1080  ;;  %2295 = vst.msk [vmem:[#allocation2 + $0xe1] sm:$0xff] %vm21_vm0, %v5063_v24 }
 0x1bb   :  { %1158 = vst.msk [vmem:[#allocation3 + $0x98] sm:$0xff] %vm1138_vm6, %v1081_v55  ;;  %v1083_v1 = vpop.permute.xlu0 %1082  ;;  %v5075_v55 = vld [vmem:[%s8538_s0 + $0x1e8] sm:$0xff] }
 0x1bc   :  { %1455 = vrot.lane.b32.xlu1 %v6442_v4, %s5344_s22  ;;  %1159 = vst.msk [vmem:[#allocation3 + $0xa0] sm:$0xff] %vm1138_vm6, %v1083_v1  ;;  %v1784_v1 = vld [vmem:[%s8539_s1 + $0x8] sm:$0xff] }
 0x1bd   :  { %1457 = vrot.lane.b32.xlu0 %v6455_v39, %s5344_s22  ;;  %v5065_v39 = vld [vmem:[%s8538_s0 + $0x198] sm:$0xff]  ;;  %2307 = vst.msk [vmem:[#allocation2 + $0x171] sm:$0xff] %vm21_vm0, %v5075_v55  ;;  %v2383_v55 = vld [vmem:[#allocation2 + $0x69] sm:$0xff] }
 0x1be   :  { %v1085_v28 = vpop.permute.xlu1 %1084  ;;  %2297 = vst.msk [vmem:[#allocation2 + $0xf9] sm:$0xff] %vm21_vm0, %v5065_v39 }
 0x1bf   :  { %1160 = vst.msk [vmem:[#allocation3 + $0xa8] sm:$0xff] %vm1138_vm6, %v1085_v28  ;;  %v1087_v4 = vpop.permute.xlu0 %1086 }
 0x1c0   :  { %1459 = vrot.lane.b32.xlu1 %v6462_v7, %s5344_s22  ;;  %1161 = vst.msk [vmem:[#allocation3 + $0xb0] sm:$0xff] %vm1138_vm6, %v1087_v4 }
 0x1c1   :  { %1461 = vrot.lane.b32.xlu0 %v6475_v45, %s5344_s22  ;;  %v5067_v45 = vld [vmem:[%s8538_s0 + $0x1a8] sm:$0xff] }
 0x1c2   :  { %v1089_v32 = vpop.permute.xlu1 %1088  ;;  %2299 = vst.msk [vmem:[#allocation2 + $0x111] sm:$0xff] %vm21_vm0, %v5067_v45 }
 0x1c3   :  { %1162 = vst.msk [vmem:[#allocation3 + $0xb8] sm:$0xff] %vm1138_vm6, %v1089_v32  ;;  %v1091_v7 = vpop.permute.xlu0 %1090 }
 0x1c4   :  { %1463 = vrot.lane.b32.xlu1 %v6482_v9, %s5344_s22  ;;  %1163 = vst.msk [vmem:[#allocation3 + $0xc0] sm:$0xff] %vm1138_vm6, %v1091_v7 }
 0x1c5   :  { %1465 = vrot.lane.b32.xlu0 %v6495_v57, %s5344_s22  ;;  %v5069_v57 = vld [vmem:[%s8538_s0 + $0x1b8] sm:$0xff] }
 0x1c6   :  { %v1093_v38 = vpop.permute.xlu1 %1092  ;;  %2301 = vst.msk [vmem:[#allocation2 + $0x129] sm:$0xff] %vm21_vm0, %v5069_v57  ;;  %v2375_v57 = vld [vmem:[#allocation2 + $0x9] sm:$0xff] }
 0x1c7   :  { %1164 = vst.msk [vmem:[#allocation3 + $0xc8] sm:$0xff] %vm1138_vm6, %v1093_v38  ;;  %v1095_v9 = vpop.permute.xlu0 %1094  ;;  %v8715_v38 = vld [vmem:[#allocation43_spill] sm:$0xff] }
 0x1c8   :  { %1467 = vrot.lane.b32.xlu1 %v6502_v11, %s5344_s22  ;;  %1165 = vst.msk [vmem:[#allocation3 + $0xd0] sm:$0xff] %vm1138_vm6, %v1095_v9 }
 0x1c9   :  { %1469 = vrot.lane.b32.xlu0 %v6515_v61, %s5344_s22  ;;  %v5071_v61 = vld [vmem:[%s8538_s0 + $0x1c8] sm:$0xff] }
 0x1ca   :  { %v1097_v35 = vpop.permute.xlu1 %1096  ;;  %2303 = vst.msk [vmem:[#allocation2 + $0x141] sm:$0xff] %vm21_vm0, %v5071_v61  ;;  %v6953_v61 = vld [vmem:[#allocation2 + $0x21] sm:$0xff] }
 0x1cb   :  { %1166 = vst.msk [vmem:[#allocation3 + $0xd8] sm:$0xff] %vm1138_vm6, %v1097_v35  ;;  %v1099_v11 = vpop.permute.xlu0 %1098  ;;  %v2374_v35 = vld [vmem:[#allocation2 + $0x1] sm:$0xff] }
 0x1cc   :  { %1471 = vrot.lane.b32.xlu1 %v6522_v13, %s5344_s22  ;;  %1167 = vst.msk [vmem:[#allocation3 + $0xe0] sm:$0xff] %vm1138_vm6, %v1099_v11 }
 0x1cd   :  { %1473 = vrot.lane.b32.xlu0 %v6535_v3, %s5344_s22  ;;  %v5073_v3 = vld [vmem:[%s8538_s0 + $0x1d8] sm:$0xff] }
 0x1ce   :  { %v1101_v44 = vpop.permute.xlu1 %1100  ;;  %2305 = vst.msk [vmem:[#allocation2 + $0x159] sm:$0xff] %vm21_vm0, %v5073_v3  ;;  %v6971_v3 = vld [vmem:[#allocation2 + $0x49] sm:$0xff] }
 0x1cf   :  { %1168 = vst.msk [vmem:[#allocation3 + $0xe8] sm:$0xff] %vm1138_vm6, %v1101_v44  ;;  %v1103_v13 = vpop.permute.xlu0 %1102  ;;  %v6951_v44 = vld [vmem:[#allocation2 + $0x19] sm:$0xff] }
 0x1d0   :  { %1475 = vrot.lane.b32.xlu1 %v6542_v17, %s5344_s22  ;;  %1169 = vst.msk [vmem:[#allocation3 + $0xf0] sm:$0xff] %vm1138_vm6, %v1103_v13  ;;  %v1787_v17 = vld [vmem:[%s8539_s1 + $0x20] sm:$0xf] }
 0x1d1   :  { %1477 = vrot.lane.b32.xlu0 %v6555_v8, %s5344_s22  ;;  %5186 = vmatprep.subr.msk.mxu0 %vm1892_vm8, %v1787_v17 }
 0x1d2   :  { %v1105_v2 = vpop.permute.xlu1 %1104  ;;  %5187 = vmatpush3.msk.msra.mxu0 %vm1892_vm8, %v1787_v17 }
 0x1d3   :  { %1170 = vst.msk [vmem:[#allocation3 + $0xf8] sm:$0xff] %vm1138_vm6, %v1105_v2  ;;  %v1237_v56 = vpop.permute.xlu0 %1236  ;;  %5188 = vmatprep.subr.mxu0 %v1786_v62  ;;  %v6963_v2 = vld [vmem:[#allocation2 + $0x39] sm:$0xff] }
 0x1d4   :  { %1479 = vrot.lane.b32.xlu1 %v6562_v21, %s5344_s22  ;;  %1333 = vst.msk [vmem:[#allocation3] sm:$0xff] %vm1332_vm7, %v1237_v56  ;;  %v5074_v21 = vld [vmem:[%s8538_s0 + $0x1e0] sm:$0xff]  ;;  %5189 = vmatpush3.msra.mxu0 %v1786_v62  ;;  %v2381_v56 = vld [vmem:[#allocation2 + $0x51] sm:$0xff] }
 0x1d5   :  { %1481 = vrot.lane.b32.xlu0 %v6575_v22, %s5344_s22  ;;  %2306 = vst.msk [vmem:[#allocation2 + $0x169] sm:$0xff] %vm21_vm0, %v5074_v21  ;;  %5190 = vmatprep.subr.mxu0 %v1785_v12  ;;  %v2382_v62 = vld [vmem:[#allocation2 + $0x61] sm:$0xff] }
 0x1d6   :  { %v1239_v8 = vpop.permute.xlu1 %1238  ;;  %5191 = vmatpush3.msra.mxu0 %v1785_v12 }
 0x1d7   :  { %1334 = vst.msk [vmem:[#allocation3 + $0x8] sm:$0xff] %vm1332_vm7, %v1239_v8  ;;  %v1241_v16 = vpop.permute.xlu0 %1240  ;;  %5192 = vmatprep.subr.mxu0 %v1784_v1 }
 0x1d8   :  { %1483 = vrot.lane.b32.xlu1 %v6582_v19, %s5344_s22  ;;  %1335 = vst.msk [vmem:[#allocation3 + $0x10] sm:$0xff] %vm1332_vm7, %v1241_v16  ;;  %5193 = vmatpush3.msra.mxu0 %v1784_v1  ;;  %v1783_v19 = vld [vmem:[%s8539_s1] sm:$0xff] }
 0x1d9   :  { %1485 = vrot.lane.b32.xlu0 %v6103_v25, %s5344_s22  ;;  %5194 = vmatprep.subr.mxu0 %v1783_v19  ;;  %v2384_v16 = vld [vmem:[#allocation2 + $0x79] sm:$0xff]  ;;  %v2385_v1 = vld [vmem:[#allocation2 + $0x81] sm:$0xff] }
 0x1da   :  { %v1243_v22 = vpop.permute.xlu1 %1242  ;;  %5195 = vmatpush3.msra.mxu0 %v1783_v19 }
 0x1db   :  { %1336 = vst.msk [vmem:[#allocation3 + $0x18] sm:$0xff] %vm1332_vm7, %v1243_v22  ;;  %v1245_v28 = vpop.permute.xlu0 %1244 }
 0x1dc   :  { %1487 = vrot.lane.b32.xlu1 %v6110_v46, %s5344_s22  ;;  %1337 = vst.msk [vmem:[#allocation3 + $0x20] sm:$0xff] %vm1332_vm7, %v1245_v28  ;;  %v2386_v28 = vld [vmem:[#allocation2 + $0x91] sm:$0xff] }
 0x1dd   :  { %1489 = vrot.lane.b32.xlu0 %v6605_v31, %s5344_s22 }
 0x1de   :  { %v1247_v54 = vpop.permute.xlu1 %1246 }
 0x1df   :  { %1338 = vst.msk [vmem:[#allocation3 + $0x28] sm:$0xff] %vm1332_vm7, %v1247_v54  ;;  %v1249_v25 = vpop.permute.xlu0 %1248 }
 0x1e0   :  { %1491 = vrot.lane.b32.xlu1 %v6614_v34, %s5344_s22  ;;  %1339 = vst.msk [vmem:[#allocation3 + $0x30] sm:$0xff] %vm1332_vm7, %v1249_v25  ;;  %v2387_v25 = vld [vmem:[#allocation2 + $0x99] sm:$0xff] }
 0x1e1   :  { %1622 = vrot.lane.b32.xlu0 %v6317_v37, %s5345_s10 }
 0x1e2   :  { %v1251_v46 = vpop.permute.xlu1 %1250 }
 0x1e3   :  { %1340 = vst.msk [vmem:[#allocation3 + $0x38] sm:$0xff] %vm1332_vm7, %v1251_v46  ;;  %v1253_v24 = vpop.permute.xlu0 %1252 }
 0x1e4   :  { %1624 = vrot.lane.b32.xlu1 %v6326_v26, %s5345_s10  ;;  %1341 = vst.msk [vmem:[#allocation3 + $0x40] sm:$0xff] %vm1332_vm7, %v1253_v24  ;;  %v2388_v24 = vld [vmem:[#allocation2 + $0xa9] sm:$0xff] }
 0x1e5   :  { %1626 = vrot.lane.b32.xlu0 %v6337_v29, %s5345_s10 }
 0x1e6   :  { %v1255_v31 = vpop.permute.xlu1 %1254 }
 0x1e7   :  { %1342 = vst.msk [vmem:[#allocation3 + $0x48] sm:$0xff] %vm1332_vm7, %v1255_v31  ;;  %v1257_v34 = vpop.permute.xlu0 %1256 }
 0x1e8   :  { %1628 = vrot.lane.b32.xlu1 %v6346_v30, %s5345_s10  ;;  %1343 = vst.msk [vmem:[#allocation3 + $0x50] sm:$0xff] %vm1332_vm7, %v1257_v34  ;;  %v2389_v34 = vld [vmem:[#allocation2 + $0xb1] sm:$0xff] }
 0x1e9   :  { %1630 = vrot.lane.b32.xlu0 %v6357_v41, %s5345_s10 }
 0x1ea   :  { %v1259_v4 = vpop.permute.xlu1 %1258 }
 0x1eb   :  { %1344 = vst.msk [vmem:[#allocation3 + $0x58] sm:$0xff] %vm1332_vm7, %v1259_v4  ;;  %v1261_v37 = vpop.permute.xlu0 %1260 }
 0x1ec   :  { %1632 = vrot.lane.b32.xlu1 %v6366_v42, %s5345_s10  ;;  %1345 = vst.msk [vmem:[#allocation3 + $0x60] sm:$0xff] %vm1332_vm7, %v1261_v37  ;;  %v2390_v37 = vld [vmem:[#allocation2 + $0xc1] sm:$0xff] }
 0x1ed   :  { %1634 = vrot.lane.b32.xlu0 %v6377_v47, %s5345_s10 }
 0x1ee   :  { %v1263_v26 = vpop.permute.xlu1 %1262 }
 0x1ef   :  { %1346 = vst.msk [vmem:[#allocation3 + $0x68] sm:$0xff] %vm1332_vm7, %v1263_v26  ;;  %v1265_v29 = vpop.permute.xlu0 %1264 }
 0x1f0   :  { %1636 = vrot.lane.b32.xlu1 %v6386_v50, %s5345_s10  ;;  %1347 = vst.msk [vmem:[#allocation3 + $0x70] sm:$0xff] %vm1332_vm7, %v1265_v29  ;;  %v2391_v29 = vld [vmem:[#allocation2 + $0xc9] sm:$0xff] }
 0x1f1   :  { %1638 = vrot.lane.b32.xlu0 %v6397_v0, %s5345_s10 }
 0x1f2   :  { %v1267_v30 = vpop.permute.xlu1 %1266 }
 0x1f3   :  { %1348 = vst.msk [vmem:[#allocation3 + $0x78] sm:$0xff] %vm1332_vm7, %v1267_v30  ;;  %v1269_v41 = vpop.permute.xlu0 %1268 }
 0x1f4   :  { %1640 = vrot.lane.b32.xlu1 %v6406_v5, %s5345_s10  ;;  %1349 = vst.msk [vmem:[#allocation3 + $0x80] sm:$0xff] %vm1332_vm7, %v1269_v41  ;;  %v2392_v41 = vld [vmem:[#allocation2 + $0xd9] sm:$0xff] }
 0x1f5   :  { %1642 = vrot.lane.b32.xlu0 %v6417_v18, %s5345_s10 }
 0x1f6   :  { %v1271_v42 = vpop.permute.xlu1 %1270 }
 0x1f7   :  { %1350 = vst.msk [vmem:[#allocation3 + $0x88] sm:$0xff] %vm1332_vm7, %v1271_v42  ;;  %v1273_v47 = vpop.permute.xlu0 %1272 }
 0x1f8   :  { %1644 = vrot.lane.b32.xlu1 %v6426_v20, %s5345_s10  ;;  %1351 = vst.msk [vmem:[#allocation3 + $0x90] sm:$0xff] %vm1332_vm7, %v1273_v47  ;;  %v2393_v47 = vld [vmem:[#allocation2 + $0xe1] sm:$0xff] }
 0x1f9   :  { %1646 = vrot.lane.b32.xlu0 %v6437_v27, %s5345_s10 }
 0x1fa   :  { %v1275_v50 = vpop.permute.xlu1 %1274 }
 0x1fb   :  { %1352 = vst.msk [vmem:[#allocation3 + $0x98] sm:$0xff] %vm1332_vm7, %v1275_v50  ;;  %v1277_v0 = vpop.permute.xlu0 %1276 }
 0x1fc   :  { %1648 = vrot.lane.b32.xlu1 %v6446_v33, %s5345_s10  ;;  %1353 = vst.msk [vmem:[#allocation3 + $0xa0] sm:$0xff] %vm1332_vm7, %v1277_v0  ;;  %v2394_v0 = vld [vmem:[#allocation2 + $0xf1] sm:$0xff] }
 0x1fd   :  { %1650 = vrot.lane.b32.xlu0 %v6457_v36, %s5345_s10 }
 0x1fe   :  { %v1279_v5 = vpop.permute.xlu1 %1278 }
 0x1ff   :  { %1354 = vst.msk [vmem:[#allocation3 + $0xa8] sm:$0xff] %vm1332_vm7, %v1279_v5  ;;  %v1281_v18 = vpop.permute.xlu0 %1280 }
 0x200   :  { %1652 = vrot.lane.b32.xlu1 %v6466_v40, %s5345_s10  ;;  %1355 = vst.msk [vmem:[#allocation3 + $0xb0] sm:$0xff] %vm1332_vm7, %v1281_v18  ;;  %v2395_v18 = vld [vmem:[#allocation2 + $0xf9] sm:$0xff] }
 0x201   :  { %1654 = vrot.lane.b32.xlu0 %v6477_v51, %s5345_s10 }
 0x202   :  { %v1283_v20 = vpop.permute.xlu1 %1282 }
 0x203   :  { %1356 = vst.msk [vmem:[#allocation3 + $0xb8] sm:$0xff] %vm1332_vm7, %v1283_v20  ;;  %v1285_v27 = vpop.permute.xlu0 %1284 }
 0x204   :  { %1656 = vrot.lane.b32.xlu1 %v6486_v53, %s5345_s10  ;;  %1357 = vst.msk [vmem:[#allocation3 + $0xc0] sm:$0xff] %vm1332_vm7, %v1285_v27  ;;  %v2396_v27 = vld [vmem:[#allocation2 + $0x109] sm:$0xff] }
 0x205   :  { %1658 = vrot.lane.b32.xlu0 %v6497_v43, %s5345_s10 }
 0x206   :  { %v1287_v33 = vpop.permute.xlu1 %1286 }
 0x207   :  { %1358 = vst.msk [vmem:[#allocation3 + $0xc8] sm:$0xff] %vm1332_vm7, %v1287_v33  ;;  %v1289_v36 = vpop.permute.xlu0 %1288 }
 0x208   :  { %1660 = vrot.lane.b32.xlu1 %v6506_v59, %s5345_s10  ;;  %1359 = vst.msk [vmem:[#allocation3 + $0xd0] sm:$0xff] %vm1332_vm7, %v1289_v36  ;;  %v2397_v36 = vld [vmem:[#allocation2 + $0x111] sm:$0xff] }
 0x209   :  { %1662 = vrot.lane.b32.xlu0 %v6517_v14, %s5345_s10  ;;  %v8711_v14 = vld [vmem:[#allocation13_spill] sm:$0xff] }
 0x20a   :  { %v1291_v40 = vpop.permute.xlu1 %1290 }
 0x20b   :  { %1360 = vst.msk [vmem:[#allocation3 + $0xd8] sm:$0xff] %vm1332_vm7, %v1291_v40  ;;  %v1293_v51 = vpop.permute.xlu0 %1292 }
 0x20c   :  { %1664 = vrot.lane.b32.xlu1 %v6526_v63, %s5345_s10  ;;  %1361 = vst.msk [vmem:[#allocation3 + $0xe0] sm:$0xff] %vm1332_vm7, %v1293_v51  ;;  %v8712_v63 = vld [vmem:[#allocation14_spill] sm:$0xff] }
 0x20d   :  { %1666 = vrot.lane.b32.xlu0 %v6537_v52, %s5345_s10  ;;  %v2398_v51 = vld [vmem:[#allocation2 + $0x121] sm:$0xff] }
 0x20e   :  { %v1295_v53 = vpop.permute.xlu1 %1294 }
 0x20f   :  { %1362 = vst.msk [vmem:[#allocation3 + $0xe8] sm:$0xff] %vm1332_vm7, %v1295_v53  ;;  %v1297_v43 = vpop.permute.xlu0 %1296 }
 0x210   :  { %1668 = vrot.lane.b32.xlu1 %v6546_v6, %s5345_s10  ;;  %1363 = vst.msk [vmem:[#allocation3 + $0xf0] sm:$0xff] %vm1332_vm7, %v1297_v43  ;;  %v8713_v6 = vld [vmem:[#allocation15_spill] sm:$0xff] }
 0x211   :  { %1670 = vrot.lane.b32.xlu0 %v8711_v14, %s5345_s10  ;;  %v2399_v43 = vld [vmem:[#allocation2 + $0x129] sm:$0xff]  ;;  %v2400_v14 = vld [vmem:[#allocation2 + $0x139] sm:$0xff] }
 0x212   :  { %v1299_v59 = vpop.permute.xlu1 %1298 }
 0x213   :  { %1364 = vst.msk [vmem:[#allocation3 + $0xf8] sm:$0xff] %vm1332_vm7, %v1299_v59  ;;  %v1430_v32 = vpop.permute.xlu0 %1429 }
 0x214   :  { %1672 = vrot.lane.b32.xlu1 %v8712_v63, %s5345_s10  ;;  %1526 = vst.msk [vmem:[#allocation3] sm:$0xff] %vm1525_vm9, %v1430_v32  ;;  %v2401_v32 = vld [vmem:[#allocation2 + $0x141] sm:$0xff] }
 0x215   :  { %1674 = vrot.lane.b32.xlu0 %v8713_v6, %s5345_s10  ;;  %v2402_v6 = vld [vmem:[#allocation2 + $0x151] sm:$0xff] }
 0x216   :  { %v1432_v52 = vpop.permute.xlu1 %1431 }
 0x217   :  { %1527 = vst.msk [vmem:[#allocation3 + $0x8] sm:$0xff] %vm1525_vm9, %v1432_v52  ;;  %v1434_v39 = vpop.permute.xlu0 %1433 }
 0x218   :  { %1676 = vrot.lane.b32.xlu1 %v8714_v10, %s5345_s10  ;;  %1528 = vst.msk [vmem:[#allocation3 + $0x10] sm:$0xff] %vm1525_vm9, %v1434_v39  ;;  %v2403_v39 = vld [vmem:[#allocation2 + $0x159] sm:$0xff] }
 0x219   :  { %1678 = vrot.lane.b32.xlu0 %v8715_v38, %s5345_s10  ;;  %v2310_v38 = vld [vmem:[#allocation2] sm:$0xff] }
 0x21a   :  { %v1436_v7 = vpop.permute.xlu1 %1435 }
 0x21b   :  { %1529 = vst.msk [vmem:[#allocation3 + $0x18] sm:$0xff] %vm1525_vm9, %v1436_v7  ;;  %v1438_v45 = vpop.permute.xlu0 %1437 }
 0x21c   :  { %1680 = vrot.lane.b32.xlu1 %v8716_v58, %s5345_s10  ;;  %1530 = vst.msk [vmem:[#allocation3 + $0x20] sm:$0xff] %vm1525_vm9, %v1438_v45  ;;  %v2404_v58 = vld [vmem:[#allocation2 + $0x169] sm:$0xff] }
 0x21d   :  { %1682 = vrot.lane.b32.xlu0 %v6607_v23, %s5345_s10  ;;  %v2311_v45 = vld [vmem:[#allocation2 + $0x8] sm:$0xff] }
 0x21e   :  { %v1440_v9 = vpop.permute.xlu1 %1439 }
 0x21f   :  { %1531 = vst.msk [vmem:[#allocation3 + $0x28] sm:$0xff] %vm1525_vm9, %v1440_v9  ;;  %v1442_v15 = vpop.permute.xlu0 %1441 }
 0x220   :  { %1684 = vrot.lane.b32.xlu1 %v6618_v49, %s5345_s10  ;;  %1532 = vst.msk [vmem:[#allocation3 + $0x30] sm:$0xff] %vm1525_vm9, %v1442_v15  ;;  %v6961_v49 = vld [vmem:[#allocation2 + $0x31] sm:$0xff] }
 0x221   :  { %2438 = vrot.lane.b32.xlu0 %v2374_v35, %s5338_s16  ;;  %v2405_v15 = vld [vmem:[#allocation2 + $0x171] sm:$0xff] }
 0x222   :  { %v1444_v11 = vpop.permute.xlu1 %1443 }
 0x223   :  { %1533 = vst.msk [vmem:[#allocation3 + $0x38] sm:$0xff] %vm1525_vm9, %v1444_v11  ;;  %v1446_v60 = vpop.permute.xlu0 %1445 }
 0x224   :  { %2440 = vrot.lane.b32.xlu1 %v2375_v57, %s5338_s16  ;;  %1534 = vst.msk [vmem:[#allocation3 + $0x40] sm:$0xff] %vm1525_vm9, %v1446_v60  ;;  %v7029_v60 = vld [vmem:[#allocation2 + $0x18] sm:$0xff] }
 0x225   :  { %2442 = vrot.lane.b32.xlu0 %v6951_v44, %s5338_s16 }
 0x226   :  { %v1448_v23 = vpop.permute.xlu1 %1447 }
 0x227   :  { %1535 = vst.msk [vmem:[#allocation3 + $0x48] sm:$0xff] %vm1525_vm9, %v1448_v23  ;;  %v1450_v13 = vpop.permute.xlu0 %1449  ;;  %v2566_v23 = vld [vmem:[#allocation2 + $0x2] sm:$0xff] }
 0x228   :  { %2444 = vrot.lane.b32.xlu1 %v6953_v61, %s5338_s16  ;;  %1536 = vst.msk [vmem:[#allocation3 + $0x50] sm:$0xff] %vm1525_vm9, %v1450_v13  ;;  %v7032_v13 = vld [vmem:[#allocation2 + $0x20] sm:$0xff] }
 0x229   :  { %2446 = vrot.lane.b32.xlu0 %v6961_v49, %s5338_s16 }
 0x22a   :  { %v1452_v48 = vpop.permute.xlu1 %1451 }
 0x22b   :  { %1537 = vst.msk [vmem:[#allocation3 + $0x58] sm:$0xff] %vm1525_vm9, %v1452_v48  ;;  %v1454_v17 = vpop.permute.xlu0 %1453 }
 0x22c   :  { %2448 = vrot.lane.b32.xlu1 %v6963_v2, %s5338_s16  ;;  %1538 = vst.msk [vmem:[#allocation3 + $0x60] sm:$0xff] %vm1525_vm9, %v1454_v17 }
 0x22d   :  { %2450 = vrot.lane.b32.xlu0 %v6971_v3, %s5338_s16 }
 0x22e   :  { %v1456_v8 = vpop.permute.xlu1 %1455 }
 0x22f   :  { %1539 = vst.msk [vmem:[#allocation3 + $0x68] sm:$0xff] %vm1525_vm9, %v1456_v8  ;;  %v1458_v21 = vpop.permute.xlu0 %1457 }
 0x230   :  { %2452 = vrot.lane.b32.xlu1 %v2381_v56, %s5338_s16  ;;  %1540 = vst.msk [vmem:[#allocation3 + $0x70] sm:$0xff] %vm1525_vm9, %v1458_v21  ;;  %v2567_v56 = vld [vmem:[#allocation2 + $0xa] sm:$0xff] }
 0x231   :  { %2454 = vrot.lane.b32.xlu0 %v2382_v62, %s5338_s16  ;;  %v7043_v21 = vld [vmem:[#allocation2 + $0x30] sm:$0xff] }
 0x232   :  { %v1460_v12 = vpop.permute.xlu1 %1459 }
 0x233   :  { %1541 = vst.msk [vmem:[#allocation3 + $0x78] sm:$0xff] %vm1525_vm9, %v1460_v12  ;;  %v1462_v22 = vpop.permute.xlu0 %1461  ;;  %v7048_v12 = vld [vmem:[#allocation2 + $0x38] sm:$0xff] }
 0x234   :  { %2456 = vrot.lane.b32.xlu1 %v2383_v55, %s5338_s16  ;;  %1542 = vst.msk [vmem:[#allocation3 + $0x80] sm:$0xff] %vm1525_vm9, %v1462_v22  ;;  %v7046_v55 = vld [vmem:[#allocation2 + $0x1a] sm:$0xff] }
 0x235   :  { %2458 = vrot.lane.b32.xlu0 %v2384_v16, %s5338_s16 }
 0x236   :  { %v1464_v19 = vpop.permute.xlu1 %1463 }
 0x237   :  { %1543 = vst.msk [vmem:[#allocation3 + $0x88] sm:$0xff] %vm1525_vm9, %v1464_v19  ;;  %v1466_v54 = vpop.permute.xlu0 %1465 }
 0x238   :  { %2460 = vrot.lane.b32.xlu1 %v2385_v1, %s5338_s16  ;;  %1544 = vst.msk [vmem:[#allocation3 + $0x90] sm:$0xff] %vm1525_vm9, %v1466_v54  ;;  %v7050_v1 = vld [vmem:[#allocation2 + $0x22] sm:$0xff] }
 0x239   :  { %2462 = vrot.lane.b32.xlu0 %v2386_v28, %s5338_s16  ;;  %v7062_v54 = vld [vmem:[#allocation2 + $0x48] sm:$0xff] }
 0x23a   :  { %v1468_v46 = vpop.permute.xlu1 %1467 }
 0x23b   :  { %1545 = vst.msk [vmem:[#allocation3 + $0x98] sm:$0xff] %vm1525_vm9, %v1468_v46  ;;  %v1470_v31 = vpop.permute.xlu0 %1469  ;;  %v7068_v46 = vld [vmem:[#allocation2 + $0x50] sm:$0xff] }
 0x23c   :  { %2464 = vrot.lane.b32.xlu1 %v2387_v25, %s5338_s16  ;;  %1546 = vst.msk [vmem:[#allocation3 + $0xa0] sm:$0xff] %vm1525_vm9, %v1470_v31  ;;  %v7066_v25 = vld [vmem:[#allocation2 + $0x32] sm:$0xff] }
 0x23d   :  { %2466 = vrot.lane.b32.xlu0 %v2388_v24, %s5338_s16 }
 0x23e   :  { %v1472_v4 = vpop.permute.xlu1 %1471 }
 0x23f   :  { %1547 = vst.msk [vmem:[#allocation3 + $0xa8] sm:$0xff] %vm1525_vm9, %v1472_v4  ;;  %v1474_v26 = vpop.permute.xlu0 %1473 }
 0x240   :  { %2468 = vrot.lane.b32.xlu1 %v2389_v34, %s5338_s16  ;;  %1548 = vst.msk [vmem:[#allocation3 + $0xb0] sm:$0xff] %vm1525_vm9, %v1474_v26  ;;  %v7070_v34 = vld [vmem:[#allocation2 + $0x3a] sm:$0xff] }
 0x241   :  { %2470 = vrot.lane.b32.xlu0 %v2390_v37, %s5338_s16  ;;  %v7082_v26 = vld [vmem:[#allocation2 + $0x60] sm:$0xff] }
 0x242   :  { %v1476_v30 = vpop.permute.xlu1 %1475 }
 0x243   :  { %1549 = vst.msk [vmem:[#allocation3 + $0xb8] sm:$0xff] %vm1525_vm9, %v1476_v30  ;;  %v1478_v42 = vpop.permute.xlu0 %1477  ;;  %v7088_v30 = vld [vmem:[#allocation2 + $0x68] sm:$0xff] }
 0x244   :  { %2472 = vrot.lane.b32.xlu1 %v2391_v29, %s5338_s16  ;;  %1550 = vst.msk [vmem:[#allocation3 + $0xc0] sm:$0xff] %vm1525_vm9, %v1478_v42  ;;  %v7086_v29 = vld [vmem:[#allocation2 + $0x4a] sm:$0xff] }
 0x245   :  { %2474 = vrot.lane.b32.xlu0 %v2392_v41, %s5338_s16 }
 0x246   :  { %v1480_v50 = vpop.permute.xlu1 %1479 }
 0x247   :  { %1551 = vst.msk [vmem:[#allocation3 + $0xc8] sm:$0xff] %vm1525_vm9, %v1480_v50  ;;  %v1482_v5 = vpop.permute.xlu0 %1481 }
 0x248   :  { %2476 = vrot.lane.b32.xlu1 %v2393_v47, %s5338_s16  ;;  %1552 = vst.msk [vmem:[#allocation3 + $0xd0] sm:$0xff] %vm1525_vm9, %v1482_v5  ;;  %v7090_v47 = vld [vmem:[#allocation2 + $0x52] sm:$0xff] }
 0x249   :  { %2478 = vrot.lane.b32.xlu0 %v2394_v0, %s5338_s16  ;;  %v7102_v5 = vld [vmem:[#allocation2 + $0x78] sm:$0xff] }
 0x24a   :  { %v1484_v20 = vpop.permute.xlu1 %1483 }
 0x24b   :  { %1553 = vst.msk [vmem:[#allocation3 + $0xd8] sm:$0xff] %vm1525_vm9, %v1484_v20  ;;  %v1486_v33 = vpop.permute.xlu0 %1485  ;;  %v7108_v20 = vld [vmem:[#allocation2 + $0x80] sm:$0xff] }
 0x24c   :  { %2480 = vrot.lane.b32.xlu1 %v2395_v18, %s5338_s16  ;;  %1554 = vst.msk [vmem:[#allocation3 + $0xe0] sm:$0xff] %vm1525_vm9, %v1486_v33  ;;  %v7106_v18 = vld [vmem:[#allocation2 + $0x62] sm:$0xff] }
 0x24d   :  { %2482 = vrot.lane.b32.xlu0 %v2396_v27, %s5338_s16 }
 0x24e   :  { %v1488_v40 = vpop.permute.xlu1 %1487 }
 0x24f   :  { %1555 = vst.msk [vmem:[#allocation3 + $0xe8] sm:$0xff] %vm1525_vm9, %v1488_v40  ;;  %v1490_v53 = vpop.permute.xlu0 %1489 }
 0x250   :  { %2484 = vrot.lane.b32.xlu1 %v2397_v36, %s5338_s16  ;;  %1556 = vst.msk [vmem:[#allocation3 + $0xf0] sm:$0xff] %vm1525_vm9, %v1490_v53  ;;  %v7110_v36 = vld [vmem:[#allocation2 + $0x6a] sm:$0xff] }
 0x251   :  { %2486 = vrot.lane.b32.xlu0 %v2398_v51, %s5338_s16  ;;  %v7122_v53 = vld [vmem:[#allocation2 + $0x90] sm:$0xff] }
 0x252   :  { %v1492_v59 = vpop.permute.xlu1 %1491 }
 0x253   :  { %1557 = vst.msk [vmem:[#allocation3 + $0xf8] sm:$0xff] %vm1525_vm9, %v1492_v59  ;;  %v1623_v63 = vpop.permute.xlu0 %1622  ;;  %v7128_v59 = vld [vmem:[#allocation2 + $0x98] sm:$0xff] }
 0x254   :  { %2488 = vrot.lane.b32.xlu1 %v2399_v43, %s5338_s16  ;;  %1719 = vst.msk [vmem:[#allocation3] sm:$0xff] %vm1718_vm10, %v1623_v63  ;;  %v7126_v43 = vld [vmem:[#allocation2 + $0x7a] sm:$0xff] }
 0x255   :  { %2490 = vrot.lane.b32.xlu0 %v2400_v14, %s5338_s16 }
 0x256   :  { %v1625_v52 = vpop.permute.xlu1 %1624 }
 0x257   :  { %1720 = vst.msk [vmem:[#allocation3 + $0x8] sm:$0xff] %vm1718_vm10, %v1625_v52  ;;  %v1627_v10 = vpop.permute.xlu0 %1626 }
 0x258   :  { %2492 = vrot.lane.b32.xlu1 %v2401_v32, %s5338_s16  ;;  %1721 = vst.msk [vmem:[#allocation3 + $0x10] sm:$0xff] %vm1718_vm10, %v1627_v10  ;;  %v7130_v32 = vld [vmem:[#allocation2 + $0x82] sm:$0xff] }
 0x259   :  { %2494 = vrot.lane.b32.xlu0 %v2402_v6, %s5338_s16  ;;  %v7142_v10 = vld [vmem:[#allocation2 + $0xa8] sm:$0xff] }
 0x25a   :  { %v1629_v7 = vpop.permute.xlu1 %1628 }
 0x25b   :  { %1722 = vst.msk [vmem:[#allocation3 + $0x18] sm:$0xff] %vm1718_vm10, %v1629_v7  ;;  %v1631_v9 = vpop.permute.xlu0 %1630  ;;  %v1751_v35 = vld [vmem:[#allocation3] sm:$0xff] }
 0x25c   :  { %2496 = vrot.lane.b32.xlu1 %v2403_v39, %s5338_s16  ;;  %1723 = vst.msk [vmem:[#allocation3 + $0x20] sm:$0xff] %vm1718_vm10, %v1631_v9  ;;  %5196 = vmatprep.mubr.msk.f32.mxu0 %vm1795_vm11, %v1751_v35  ;;  %v7146_v39 = vld [vmem:[#allocation2 + $0x92] sm:$0xff] }
 0x25d   :  { %2342 = vst.msk [vmem:[#allocation3] sm:$0xff] %vm21_vm0, %v2310_v38  ;;  %2498 = vrot.lane.b32.xlu0 %v2404_v58, %s5338_s16  ;;  %v7148_v7 = vld [vmem:[#allocation2 + $0xb0] sm:$0xff] }
 0x25e   :  { %v1633_v57 = vpop.permute.xlu1 %1632  ;;  %v1752_v11 = vld [vmem:[#allocation3 + $0x8] sm:$0xff] }
 0x25f   :  { %1724 = vst.msk [vmem:[#allocation3 + $0x28] sm:$0xff] %vm1718_vm10, %v1633_v57  ;;  %5197 = vmatmul.mubr.msk.f32.vlgmr.msra.gmra.mxu0 %vm1795_vm11, %v1752_v11  ;;  %v1635_v48 = vpop.permute.xlu0 %1634  ;;  %v1753_v17 = vld [vmem:[#allocation3 + $0x10] sm:$0xff]  ;;  %v7166_v57 = vld [vmem:[#allocation2 + $0xaa] sm:$0xff] }
 0x260   :  { %2343 = vst.msk [vmem:[#allocation3 + $0x8] sm:$0xff] %vm21_vm0, %v2311_v45  ;;  %2500 = vrot.lane.b32.xlu1 %v2405_v15, %s5338_s16  ;;  %5199 = vmatprep.mubr.msk.f32.mxu0 %vm1795_vm11, %v1753_v17  ;;  %2344 = vst.msk [vmem:[#allocation3 + $0x10] sm:$0xff] %vm21_vm0, %v7029_v60  ;;  %v7150_v45 = vld [vmem:[#allocation2 + $0x9a] sm:$0xff]  ;;  %v7168_v11 = vld [vmem:[#allocation2 + $0xc8] sm:$0xff] }
 0x261   :  { %1725 = vst.msk [vmem:[#allocation3 + $0x30] sm:$0xff] %vm1718_vm10, %v1635_v48  ;;  %2630 = vrot.lane.b32.xlu0 %v2566_v23, %s5339_s8  ;;  %v7162_v15 = vld [vmem:[#allocation2 + $0xc0] sm:$0xff]  ;;  %v2581_v17 = vld [vmem:[#allocation2 + $0xb2] sm:$0xff] }
 0x262   :  { %v1637_v8 = vpop.permute.xlu1 %1636  ;;  %v1754_v62 = vld [vmem:[#allocation3 + $0x18] sm:$0xff] }
 0x263   :  { %1726 = vst.msk [vmem:[#allocation3 + $0x38] sm:$0xff] %vm1718_vm10, %v1637_v8  ;;  %5200 = vmatmul.mubr.msk.f32.gmra.mxu0 %vm1795_vm11, %v1754_v62  ;;  %v1639_v16 = vpop.permute.xlu0 %1638  ;;  %v1755_v22 = vld [vmem:[#allocation3 + $0x20] sm:$0xff]  ;;  %v7180_v62 = vld [vmem:[#allocation2 + $0xd8] sm:$0xff] }
 0x264   :  { %2345 = vst.msk [vmem:[#allocation3 + $0x18] sm:$0xff] %vm21_vm0, %v7032_v13  ;;  %2632 = vrot.lane.b32.xlu1 %v2567_v56, %s5339_s8  ;;  %5202 = vmatprep.mubr.msk.f32.mxu0 %vm1795_vm11, %v1755_v22  ;;  %2346 = vst.msk [vmem:[#allocation3 + $0x20] sm:$0xff] %vm21_vm0, %v7043_v21  ;;  %v7183_v22 = vld [vmem:[#allocation2 + $0xe0] sm:$0xff] }
 0x265   :  { %1727 = vst.msk [vmem:[#allocation3 + $0x40] sm:$0xff] %vm1718_vm10, %v1639_v16  ;;  %2634 = vrot.lane.b32.xlu0 %v7046_v55, %s5339_s8  ;;  %v2582_v16 = vld [vmem:[#allocation2 + $0xc2] sm:$0xff] }
 0x266   :  { %v1641_v19 = vpop.permute.xlu1 %1640  ;;  %v1756_v28 = vld [vmem:[#allocation3 + $0x28] sm:$0xff] }
 0x267   :  { %1728 = vst.msk [vmem:[#allocation3 + $0x48] sm:$0xff] %vm1718_vm10, %v1641_v19  ;;  %5203 = vmatmul.mubr.msk.f32.gmra.mxu0 %vm1795_vm11, %v1756_v28  ;;  %v1643_v24 = vpop.permute.xlu0 %1642 }
 0x268   :  { %2347 = vst.msk [vmem:[#allocation3 + $0x28] sm:$0xff] %vm21_vm0, %v7048_v12  ;;  %2636 = vrot.lane.b32.xlu1 %v7050_v1, %s5339_s8  ;;  %v1757_v31 = vld [vmem:[#allocation3 + $0x30] sm:$0xff] }
 0x269   :  { %1729 = vst.msk [vmem:[#allocation3 + $0x50] sm:$0xff] %vm1718_vm10, %v1643_v24  ;;  %5205 = vmatprep.mubr.msk.f32.mxu0 %vm1795_vm11, %v1757_v31  ;;  %2638 = vrot.lane.b32.xlu0 %v7066_v25, %s5339_s8  ;;  %v2583_v24 = vld [vmem:[#allocation2 + $0xca] sm:$0xff] }
 0x26a   :  { %v1645_v4 = vpop.permute.xlu1 %1644  ;;  %v1758_v37 = vld [vmem:[#allocation3 + $0x38] sm:$0xff]  ;;  %2348 = vst.msk [vmem:[#allocation3 + $0x30] sm:$0xff] %vm21_vm0, %v7062_v54 }
 0x26b   :  { %1730 = vst.msk [vmem:[#allocation3 + $0x58] sm:$0xff] %vm1718_vm10, %v1645_v4  ;;  %5206 = vmatmul.mubr.msk.f32.gmra.mxu0 %vm1795_vm11, %v1758_v37  ;;  %v1647_v41 = vpop.permute.xlu0 %1646  ;;  %v7194_v37 = vld [vmem:[#allocation2 + $0xf0] sm:$0xff] }
 0x26c   :  { %2349 = vst.msk [vmem:[#allocation3 + $0x38] sm:$0xff] %vm21_vm0, %v7068_v46  ;;  %2640 = vrot.lane.b32.xlu1 %v7070_v34, %s5339_s8  ;;  %v1759_v42 = vld [vmem:[#allocation3 + $0x40] sm:$0xff] }
 0x26d   :  { %1731 = vst.msk [vmem:[#allocation3 + $0x60] sm:$0xff] %vm1718_vm10, %v1647_v41  ;;  %5208 = vmatprep.mubr.msk.f32.mxu0 %vm1795_vm11, %v1759_v42  ;;  %2642 = vrot.lane.b32.xlu0 %v7086_v29, %s5339_s8  ;;  %v2584_v41 = vld [vmem:[#allocation2 + $0xda] sm:$0xff] }
 0x26e   :  { %v1649_v50 = vpop.permute.xlu1 %1648  ;;  %v1760_v0 = vld [vmem:[#allocation3 + $0x48] sm:$0xff]  ;;  %2350 = vst.msk [vmem:[#allocation3 + $0x40] sm:$0xff] %vm21_vm0, %v7082_v26 }
 0x26f   :  { %1732 = vst.msk [vmem:[#allocation3 + $0x68] sm:$0xff] %vm1718_vm10, %v1649_v50  ;;  %5209 = vmatmul.mubr.msk.f32.gmra.mxu0 %vm1795_vm11, %v1760_v0  ;;  %v1651_v27 = vpop.permute.xlu0 %1650  ;;  %v2331_v42 = vld [vmem:[#allocation2 + $0xf8] sm:$0xff] }
 0x270   :  { %2351 = vst.msk [vmem:[#allocation3 + $0x48] sm:$0xff] %vm21_vm0, %v7088_v30  ;;  %2644 = vrot.lane.b32.xlu1 %v7090_v47, %s5339_s8  ;;  %v1761_v33 = vld [vmem:[#allocation3 + $0x50] sm:$0xff] }
 0x271   :  { %1733 = vst.msk [vmem:[#allocation3 + $0x70] sm:$0xff] %vm1718_vm10, %v1651_v27  ;;  %5211 = vmatprep.mubr.msk.f32.mxu0 %vm1795_vm11, %v1761_v33  ;;  %2646 = vrot.lane.b32.xlu0 %v7106_v18, %s5339_s8  ;;  %v2585_v27 = vld [vmem:[#allocation2 + $0xe2] sm:$0xff] }
 0x272   :  { %v1653_v40 = vpop.permute.xlu1 %1652  ;;  %v1762_v51 = vld [vmem:[#allocation3 + $0x58] sm:$0xff]  ;;  %2352 = vst.msk [vmem:[#allocation3 + $0x50] sm:$0xff] %vm21_vm0, %v7102_v5 }
 0x273   :  { %1734 = vst.msk [vmem:[#allocation3 + $0x78] sm:$0xff] %vm1718_vm10, %v1653_v40  ;;  %5212 = vmatmul.mubr.msk.f32.gmra.mxu0 %vm1795_vm11, %v1762_v51  ;;  %v1655_v14 = vpop.permute.xlu0 %1654  ;;  %v2332_v51 = vld [vmem:[#allocation2 + $0x108] sm:$0xff] }
 0x274   :  { %2353 = vst.msk [vmem:[#allocation3 + $0x58] sm:$0xff] %vm21_vm0, %v7108_v20  ;;  %2648 = vrot.lane.b32.xlu1 %v7110_v36, %s5339_s8  ;;  %v1763_v63 = vld [vmem:[#allocation3 + $0x60] sm:$0xff] }
 0x275   :  { %1735 = vst.msk [vmem:[#allocation3 + $0x80] sm:$0xff] %vm1718_vm10, %v1655_v14  ;;  %5214 = vmatprep.mubr.msk.f32.mxu0 %vm1795_vm11, %v1763_v63  ;;  %2650 = vrot.lane.b32.xlu0 %v7126_v43, %s5339_s8  ;;  %v2586_v14 = vld [vmem:[#allocation2 + $0xf2] sm:$0xff] }
 0x276   :  { %v1657_v52 = vpop.permute.xlu1 %1656  ;;  %v1764_v6 = vld [vmem:[#allocation3 + $0x68] sm:$0xff]  ;;  %2354 = vst.msk [vmem:[#allocation3 + $0x60] sm:$0xff] %vm21_vm0, %v7122_v53  ;;  %v2333_v63 = vld [vmem:[#allocation2 + $0x110] sm:$0xff] }
 0x277   :  { %1736 = vst.msk [vmem:[#allocation3 + $0x88] sm:$0xff] %vm1718_vm10, %v1657_v52  ;;  %5215 = vmatmul.mubr.msk.f32.gmra.mxu0 %vm1795_vm11, %v1764_v6  ;;  %v1659_v38 = vpop.permute.xlu0 %1658 }
 0x278   :  { %2355 = vst.msk [vmem:[#allocation3 + $0x68] sm:$0xff] %vm21_vm0, %v7128_v59  ;;  %2652 = vrot.lane.b32.xlu1 %v7130_v32, %s5339_s8  ;;  %v1765_v58 = vld [vmem:[#allocation3 + $0x70] sm:$0xff] }
 0x279   :  { %1737 = vst.msk [vmem:[#allocation3 + $0x90] sm:$0xff] %vm1718_vm10, %v1659_v38  ;;  %5217 = vmatprep.mubr.msk.f32.mxu0 %vm1795_vm11, %v1765_v58  ;;  %2654 = vrot.lane.b32.xlu0 %v7146_v39, %s5339_s8  ;;  %v2587_v38 = vld [vmem:[#allocation2 + $0xfa] sm:$0xff] }
 0x27a   :  { %v1661_v9 = vpop.permute.xlu1 %1660  ;;  %v1766_v35 = vld [vmem:[#allocation3 + $0x78] sm:$0xff]  ;;  %2356 = vst.msk [vmem:[#allocation3 + $0x70] sm:$0xff] %vm21_vm0, %v7142_v10 }
 0x27b   :  { %1738 = vst.msk [vmem:[#allocation3 + $0x98] sm:$0xff] %vm1718_vm10, %v1661_v9  ;;  %5218 = vmatmul.mubr.msk.f32.gmra.mxu0 %vm1795_vm11, %v1766_v35  ;;  %v1663_v23 = vpop.permute.xlu0 %1662  ;;  %v2334_v35 = vld [vmem:[#allocation2 + $0x120] sm:$0xff] }
 0x27c   :  { %2357 = vst.msk [vmem:[#allocation3 + $0x78] sm:$0xff] %vm21_vm0, %v7148_v7  ;;  %2656 = vrot.lane.b32.xlu1 %v7150_v45, %s5339_s8  ;;  %v1767_v48 = vld [vmem:[#allocation3 + $0x80] sm:$0xff] }
 0x27d   :  { %1739 = vst.msk [vmem:[#allocation3 + $0xa0] sm:$0xff] %vm1718_vm10, %v1663_v23  ;;  %5220 = vmatprep.mubr.msk.f32.mxu0 %vm1795_vm11, %v1767_v48  ;;  %2658 = vrot.lane.b32.xlu0 %v7166_v57, %s5339_s8  ;;  %v2588_v23 = vld [vmem:[#allocation2 + $0x10a] sm:$0xff] }
 0x27e   :  { %v1665_v56 = vpop.permute.xlu1 %1664  ;;  %v1768_v8 = vld [vmem:[#allocation3 + $0x88] sm:$0xff]  ;;  %2358 = vst.msk [vmem:[#allocation3 + $0x80] sm:$0xff] %vm21_vm0, %v7162_v15  ;;  %v2335_v48 = vld [vmem:[#allocation2 + $0x128] sm:$0xff] }
 0x27f   :  { %1740 = vst.msk [vmem:[#allocation3 + $0xa8] sm:$0xff] %vm1718_vm10, %v1665_v56  ;;  %5221 = vmatmul.mubr.msk.f32.gmra.mxu0 %vm1795_vm11, %v1768_v8  ;;  %v1667_v19 = vpop.permute.xlu0 %1666  ;;  %v2589_v8 = vld [vmem:[#allocation2 + $0x112] sm:$0xff] }
 0x280   :  { %2359 = vst.msk [vmem:[#allocation3 + $0x88] sm:$0xff] %vm21_vm0, %v7168_v11  ;;  %2660 = vrot.lane.b32.xlu1 %v2581_v17, %s5339_s8  ;;  %v1769_v28 = vld [vmem:[#allocation3 + $0x90] sm:$0xff] }
 0x281   :  { %1741 = vst.msk [vmem:[#allocation3 + $0xb0] sm:$0xff] %vm1718_vm10, %v1667_v19  ;;  %5223 = vmatprep.mubr.msk.f32.mxu0 %vm1795_vm11, %v1769_v28  ;;  %2662 = vrot.lane.b32.xlu0 %v2582_v16, %s5339_s8  ;;  %v2336_v28 = vld [vmem:[#allocation2 + $0x138] sm:$0xff] }
 0x282   :  { %v1669_v31 = vpop.permute.xlu1 %1668  ;;  %v1770_v4 = vld [vmem:[#allocation3 + $0x98] sm:$0xff]  ;;  %2360 = vst.msk [vmem:[#allocation3 + $0x90] sm:$0xff] %vm21_vm0, %v7180_v62 }
 0x283   :  { %1742 = vst.msk [vmem:[#allocation3 + $0xb8] sm:$0xff] %vm1718_vm10, %v1669_v31  ;;  %5224 = vmatmul.mubr.msk.f32.gmra.mxu0 %vm1795_vm11, %v1770_v4  ;;  %v1671_v50 = vpop.permute.xlu0 %1670  ;;  %v2337_v31 = vld [vmem:[#allocation2 + $0x140] sm:$0xff] }
 0x284   :  { %2361 = vst.msk [vmem:[#allocation3 + $0x98] sm:$0xff] %vm21_vm0, %v7183_v22  ;;  %2664 = vrot.lane.b32.xlu1 %v2583_v24, %s5339_s8  ;;  %v1771_v0 = vld [vmem:[#allocation3 + $0xa0] sm:$0xff]  ;;  %v2590_v24 = vld [vmem:[#allocation2 + $0x122] sm:$0xff] }
 0x285   :  { %1743 = vst.msk [vmem:[#allocation3 + $0xc0] sm:$0xff] %vm1718_vm10, %v1671_v50  ;;  %5226 = vmatprep.mubr.msk.f32.mxu0 %vm1795_vm11, %v1771_v0  ;;  %2666 = vrot.lane.b32.xlu0 %v2584_v41, %s5339_s8 }
 0x286   :  { %v1673_v33 = vpop.permute.xlu1 %1672  ;;  %v1772_v40 = vld [vmem:[#allocation3 + $0xa8] sm:$0xff]  ;;  %2362 = vst.msk [vmem:[#allocation3 + $0xa0] sm:$0xff] %vm21_vm0, %v7194_v37 }
 0x287   :  { %1744 = vst.msk [vmem:[#allocation3 + $0xc8] sm:$0xff] %vm1718_vm10, %v1673_v33  ;;  %5227 = vmatmul.mubr.msk.f32.gmra.mxu0 %vm1795_vm11, %v1772_v40  ;;  %v1675_v52 = vpop.permute.xlu0 %1674  ;;  %v2592_v33 = vld [vmem:[#allocation2 + $0x13a] sm:$0xff] }
 0x288   :  { %2363 = vst.msk [vmem:[#allocation3 + $0xa8] sm:$0xff] %vm21_vm0, %v2331_v42  ;;  %2668 = vrot.lane.b32.xlu1 %v2585_v27, %s5339_s8  ;;  %v1773_v6 = vld [vmem:[#allocation3 + $0xb0] sm:$0xff]  ;;  %v2591_v42 = vld [vmem:[#allocation2 + $0x12a] sm:$0xff]  ;;  %v2339_v40 = vld [vmem:[#allocation2 + $0x158] sm:$0xff] }
 0x289   :  { %1745 = vst.msk [vmem:[#allocation3 + $0xd0] sm:$0xff] %vm1718_vm10, %v1675_v52  ;;  %5229 = vmatprep.mubr.msk.f32.mxu0 %vm1795_vm11, %v1773_v6  ;;  %2670 = vrot.lane.b32.xlu0 %v2586_v14, %s5339_s8  ;;  %v2338_v27 = vld [vmem:[#allocation2 + $0x150] sm:$0xff] }
 0x28a   :  { %v1677_v58 = vpop.permute.xlu1 %1676  ;;  %v1774_v9 = vld [vmem:[#allocation3 + $0xb8] sm:$0xff]  ;;  %2364 = vst.msk [vmem:[#allocation3 + $0xb0] sm:$0xff] %vm21_vm0, %v2332_v51 }
 0x28b   :  { %1746 = vst.msk [vmem:[#allocation3 + $0xd8] sm:$0xff] %vm1718_vm10, %v1677_v58  ;;  %5230 = vmatmul.mubr.msk.f32.gmra.mxu0 %vm1795_vm11, %v1774_v9  ;;  %v1679_v17 = vpop.permute.xlu0 %1678  ;;  %v2594_v58 = vld [vmem:[#allocation2 + $0x152] sm:$0xff] }
 0x28c   :  { %2365 = vst.msk [vmem:[#allocation3 + $0xb8] sm:$0xff] %vm21_vm0, %v2333_v63  ;;  %2672 = vrot.lane.b32.xlu1 %v2587_v38, %s5339_s8  ;;  %v1775_v56 = vld [vmem:[#allocation3 + $0xc0] sm:$0xff]  ;;  %v2593_v63 = vld [vmem:[#allocation2 + $0x142] sm:$0xff] }
 0x28d   :  { %1747 = vst.msk [vmem:[#allocation3 + $0xe0] sm:$0xff] %vm1718_vm10, %v1679_v17  ;;  %5232 = vmatprep.mubr.msk.f32.mxu0 %vm1795_vm11, %v1775_v56  ;;  %2674 = vrot.lane.b32.xlu0 %v2588_v23, %s5339_s8  ;;  %v2340_v38 = vld [vmem:[#allocation2 + $0x168] sm:$0xff]  ;;  %v2341_v9 = vld [vmem:[#allocation2 + $0x170] sm:$0xff] }
 0x28e   :  { %v1681_v16 = vpop.permute.xlu1 %1680  ;;  %v1776_v19 = vld [vmem:[#allocation3 + $0xc8] sm:$0xff]  ;;  %2366 = vst.msk [vmem:[#allocation3 + $0xc0] sm:$0xff] %vm21_vm0, %v2334_v35 }
 0x28f   :  { %1748 = vst.msk [vmem:[#allocation3 + $0xe8] sm:$0xff] %vm1718_vm10, %v1681_v16  ;;  %5233 = vmatmul.mubr.msk.f32.gmra.mxu0 %vm1795_vm11, %v1776_v19  ;;  %v1683_v4 = vpop.permute.xlu0 %1682  ;;  %v2597_v19 = vld [vmem:[#allocation2 + $0x172] sm:$0xff] }
 0x290   :  { %2367 = vst.msk [vmem:[#allocation3 + $0xc8] sm:$0xff] %vm21_vm0, %v2335_v48  ;;  %2676 = vrot.lane.b32.xlu1 %v2589_v8, %s5339_s8  ;;  %v1777_v41 = vld [vmem:[#allocation3 + $0xd0] sm:$0xff]  ;;  %v2596_v8 = vld [vmem:[#allocation2 + $0x16a] sm:$0xff] }
 0x291   :  { %1749 = vst.msk [vmem:[#allocation3 + $0xf0] sm:$0xff] %vm1718_vm10, %v1683_v4  ;;  %5235 = vmatprep.mubr.msk.f32.mxu0 %vm1795_vm11, %v1777_v41  ;;  %2678 = vrot.lane.b32.xlu0 %v2590_v24, %s5339_s8  ;;  %v2595_v48 = vld [vmem:[#allocation2 + $0x15a] sm:$0xff] }
 0x292   :  { %v1685_v50 = vpop.permute.xlu1 %1684  ;;  %v1778_v0 = vld [vmem:[#allocation3 + $0xd8] sm:$0xff]  ;;  %2368 = vst.msk [vmem:[#allocation3 + $0xd0] sm:$0xff] %vm21_vm0, %v2336_v28 }
 0x293   :  { %1750 = vst.msk [vmem:[#allocation3 + $0xf8] sm:$0xff] %vm1718_vm10, %v1685_v50  ;;  %5236 = vmatmul.mubr.msk.f32.gmra.mxu0 %vm1795_vm11, %v1778_v0  ;;  %v2439_v51 = vpop.permute.xlu0 %2438 }
 0x294   :  { %2369 = vst.msk [vmem:[#allocation3 + $0xd8] sm:$0xff] %vm21_vm0, %v2337_v31  ;;  %2680 = vrot.lane.b32.xlu1 %v2591_v42, %s5339_s8  ;;  %v1779_v14 = vld [vmem:[#allocation3 + $0xe0] sm:$0xff] }
 0x295   :  { %2534 = vst.msk [vmem:[#allocation3] sm:$0xff] %vm366_vm2, %v2439_v51  ;;  %5238 = vmatprep.mubr.msk.f32.mxu0 %vm1795_vm11, %v1779_v14  ;;  %2682 = vrot.lane.b32.xlu0 %v2592_v33, %s5339_s8 }
 0x296   :  { %v2441_v52 = vpop.permute.xlu1 %2440  ;;  %v1780_v6 = vld [vmem:[#allocation3 + $0xe8] sm:$0xff]  ;;  %2370 = vst.msk [vmem:[#allocation3 + $0xe0] sm:$0xff] %vm21_vm0, %v2338_v27  ;;  %v3944_v27 = vld [vmem:[%s8539_s1 + $0x10] sm:$0xff] }
 0x297   :  { %2535 = vst.msk [vmem:[#allocation3 + $0x8] sm:$0xff] %vm366_vm2, %v2441_v52  ;;  %5239 = vmatmul.mubr.msk.f32.gmra.mxu0 %vm1795_vm11, %v1780_v6  ;;  %v2443_v35 = vpop.permute.xlu0 %2442 }
 0x298   :  { %2371 = vst.msk [vmem:[#allocation3 + $0xe8] sm:$0xff] %vm21_vm0, %v2339_v40  ;;  %2684 = vrot.lane.b32.xlu1 %v2593_v63, %s5339_s8  ;;  %v1781_v23 = vld [vmem:[#allocation3 + $0xf0] sm:$0xff]  ;;  %v3943_v40 = vld [vmem:[%s8539_s1 + $0x8] sm:$0xff] }
 0x299   :  { %2536 = vst.msk [vmem:[#allocation3 + $0x10] sm:$0xff] %vm366_vm2, %v2443_v35  ;;  %5241 = vmatprep.mubr.msk.f32.mxu0 %vm1795_vm11, %v1781_v23  ;;  %2686 = vrot.lane.b32.xlu0 %v2594_v58, %s5339_s8  ;;  %v2954_v58 = vld [vmem:[#allocation2 + $0x49] sm:$0xff] }
 0x29a   :  { %v2445_v17 = vpop.permute.xlu1 %2444  ;;  %v1782_v56 = vld [vmem:[#allocation3 + $0xf8] sm:$0xff]  ;;  %2372 = vst.msk [vmem:[#allocation3 + $0xf0] sm:$0xff] %vm21_vm0, %v2340_v38 }
 0x29b   :  { %2537 = vst.msk [vmem:[#allocation3 + $0x18] sm:$0xff] %vm366_vm2, %v2445_v17  ;;  %5242 = vmatmul.mubr.msk.f32.gmra.mxu0 %vm1795_vm11, %v1782_v56  ;;  %v2447_v16 = vpop.permute.xlu0 %2446 }
 0x29c   :  { %2373 = vst.msk [vmem:[#allocation3 + $0xf8] sm:$0xff] %vm21_vm0, %v2341_v9  ;;  %2688 = vrot.lane.b32.xlu1 %v2595_v48, %s5339_s8 }
 0x29d   :  { %2538 = vst.msk [vmem:[#allocation3 + $0x20] sm:$0xff] %vm366_vm2, %v2447_v16  ;;  %2690 = vrot.lane.b32.xlu0 %v2596_v8, %s5339_s8  ;;  %v3530_v16 = vld [vmem:[#allocation2 + $0x61] sm:$0xff] }
 0x29e   :  { %v2449_v28 = vpop.permute.xlu1 %2448 }
 0x29f   :  { %2539 = vst.msk [vmem:[#allocation3 + $0x28] sm:$0xff] %vm366_vm2, %v2449_v28  ;;  %v2451_v24 = vpop.permute.xlu0 %2450 }
 0x2a0   :  { %2692 = vrot.lane.b32.xlu1 %v2597_v19, %s5339_s8  ;;  %2540 = vst.msk [vmem:[#allocation3 + $0x30] sm:$0xff] %vm366_vm2, %v2451_v24 }
 0x2a1   :  { %2822 = vrot.lane.b32.xlu0 %v7029_v60, %s5340_s9 }
 0x2a2   :  { %v2453_v31 = vpop.permute.xlu1 %2452 }
 0x2a3   :  { %2541 = vst.msk [vmem:[#allocation3 + $0x38] sm:$0xff] %vm366_vm2, %v2453_v31  ;;  %v2455_v4 = vpop.permute.xlu0 %2454 }
 0x2a4   :  { %2824 = vrot.lane.b32.xlu1 %v7032_v13, %s5340_s9  ;;  %2542 = vst.msk [vmem:[#allocation3 + $0x40] sm:$0xff] %vm366_vm2, %v2455_v4 }
 0x2a5   :  { %3014 = vrot.lane.b32.xlu0 %v6951_v44, %s5341_s12 }
 0x2a6   :  { %v2457_v41 = vpop.permute.xlu1 %2456 }
 0x2a7   :  { %2543 = vst.msk [vmem:[#allocation3 + $0x48] sm:$0xff] %vm366_vm2, %v2457_v41  ;;  %v2459_v42 = vpop.permute.xlu0 %2458 }
 0x2a8   :  { %3016 = vrot.lane.b32.xlu1 %v6953_v61, %s5341_s12  ;;  %2544 = vst.msk [vmem:[#allocation3 + $0x50] sm:$0xff] %vm366_vm2, %v2459_v42 }
 0x2a9   :  { %3206 = vrot.lane.b32.xlu0 %v7046_v55, %s5342_s13  ;;  %v3946_v55 = vld [vmem:[%s8539_s1 + $0x20] sm:$0xf] }
 0x2aa   :  { %v2461_v50 = vpop.permute.xlu1 %2460  ;;  %5244 = vmatprep.subr.msk.mxu1 %vm1892_vm8, %v3946_v55 }
 0x2ab   :  { %2545 = vst.msk [vmem:[#allocation3 + $0x58] sm:$0xff] %vm366_vm2, %v2461_v50  ;;  %v2463_v60 = vpop.permute.xlu0 %2462  ;;  %5245 = vmatpush3.msk.msra.mxu1 %vm1892_vm8, %v3946_v55 }
 0x2ac   :  { %3208 = vrot.lane.b32.xlu1 %v7050_v1, %s5342_s13  ;;  %2546 = vst.msk [vmem:[#allocation3 + $0x60] sm:$0xff] %vm366_vm2, %v2463_v60 }
 0x2ad   :  { %3398 = vrot.lane.b32.xlu0 %v7043_v21, %s5343_s14 }
 0x2ae   :  { %v2465_v13 = vpop.permute.xlu1 %2464 }
 0x2af   :  { %2547 = vst.msk [vmem:[#allocation3 + $0x68] sm:$0xff] %vm366_vm2, %v2465_v13  ;;  %v2467_v44 = vpop.permute.xlu0 %2466  ;;  %v3532_v13 = vld [vmem:[#allocation2 + $0x79] sm:$0xff] }
 0x2b0   :  { %2826 = vrot.lane.b32.xlu1 %v7043_v21, %s5340_s9  ;;  %2548 = vst.msk [vmem:[#allocation3 + $0x70] sm:$0xff] %vm366_vm2, %v2467_v44  ;;  %v3945_v21 = vld [vmem:[%s8539_s1 + $0x18] sm:$0xff] }
 0x2b1   :  { %3400 = vrot.lane.b32.xlu0 %v7048_v12, %s5343_s14  ;;  %5246 = vmatprep.subr.mxu1 %v3945_v21 }
 0x2b2   :  { %v2469_v61 = vpop.permute.xlu1 %2468  ;;  %5247 = vmatpush3.msra.mxu1 %v3945_v21 }
 0x2b3   :  { %2549 = vst.msk [vmem:[#allocation3 + $0x78] sm:$0xff] %vm366_vm2, %v2469_v61  ;;  %v2471_v1 = vpop.permute.xlu0 %2470  ;;  %5248 = vmatprep.subr.mxu1 %v3944_v27 }
 0x2b4   :  { %3590 = vrot.lane.b32.xlu1 %v6961_v49, %s5344_s22  ;;  %2550 = vst.msk [vmem:[#allocation3 + $0x80] sm:$0xff] %vm366_vm2, %v2471_v1  ;;  %5249 = vmatpush3.msra.mxu1 %v3944_v27 }
 0x2b5   :  { %2828 = vrot.lane.b32.xlu0 %v7048_v12, %s5340_s9  ;;  %5250 = vmatprep.subr.mxu1 %v3943_v40 }
 0x2b6   :  { %v2473_v0 = vpop.permute.xlu1 %2472  ;;  %5251 = vmatpush3.msra.mxu1 %v3943_v40 }
 0x2b7   :  { %2551 = vst.msk [vmem:[#allocation3 + $0x88] sm:$0xff] %vm366_vm2, %v2473_v0  ;;  %v2475_v33 = vpop.permute.xlu0 %2474 }
 0x2b8   :  { %3018 = vrot.lane.b32.xlu1 %v6961_v49, %s5341_s12  ;;  %2552 = vst.msk [vmem:[#allocation3 + $0x90] sm:$0xff] %vm366_vm2, %v2475_v33  ;;  %v3942_v49 = vld [vmem:[%s8539_s1] sm:$0xff] }
 0x2b9   :  { %3592 = vrot.lane.b32.xlu0 %v6963_v2, %s5344_s22  ;;  %5252 = vmatprep.subr.mxu1 %v3942_v49 }
 0x2ba   :  { %v2477_v51 = vpop.permute.xlu1 %2476  ;;  %5253 = vmatpush3.msra.mxu1 %v3942_v49 }
 0x2bb   :  { %2553 = vst.msk [vmem:[#allocation3 + $0x98] sm:$0xff] %vm366_vm2, %v2477_v51  ;;  %v2479_v12 = vpop.permute.xlu0 %2478  ;;  %v3534_v51 = vld [vmem:[#allocation2 + $0x91] sm:$0xff] }
 0x2bc   :  { %3782 = vrot.lane.b32.xlu1 %v7066_v25, %s5345_s10  ;;  %2554 = vst.msk [vmem:[#allocation3 + $0xa0] sm:$0xff] %vm366_vm2, %v2479_v12 }
 0x2bd   :  { %3020 = vrot.lane.b32.xlu0 %v6963_v2, %s5341_s12 }
 0x2be   :  { %v2481_v14 = vpop.permute.xlu1 %2480 }
 0x2bf   :  { %2555 = vst.msk [vmem:[#allocation3 + $0xa8] sm:$0xff] %vm366_vm2, %v2481_v14  ;;  %v2483_v63 = vpop.permute.xlu0 %2482 }
 0x2c0   :  { %3210 = vrot.lane.b32.xlu1 %v7066_v25, %s5342_s13  ;;  %2556 = vst.msk [vmem:[#allocation3 + $0xb0] sm:$0xff] %vm366_vm2, %v2483_v63 }
 0x2c1   :  { %3784 = vrot.lane.b32.xlu0 %v7070_v34, %s5345_s10 }
 0x2c2   :  { %v2485_v52 = vpop.permute.xlu1 %2484 }
 0x2c3   :  { %2557 = vst.msk [vmem:[#allocation3 + $0xb8] sm:$0xff] %vm366_vm2, %v2485_v52  ;;  %v2487_v6 = vpop.permute.xlu0 %2486 }
 0x2c4   :  { %3212 = vrot.lane.b32.xlu1 %v7070_v34, %s5342_s13  ;;  %2558 = vst.msk [vmem:[#allocation3 + $0xc0] sm:$0xff] %vm366_vm2, %v2487_v6 }
 0x2c5   :  { %3402 = vrot.lane.b32.xlu0 %v7062_v54, %s5343_s14 }
 0x2c6   :  { %v2489_v38 = vpop.permute.xlu1 %2488 }
 0x2c7   :  { %2559 = vst.msk [vmem:[#allocation3 + $0xc8] sm:$0xff] %vm366_vm2, %v2489_v38  ;;  %v2491_v2 = vpop.permute.xlu0 %2490 }
 0x2c8   :  { %2830 = vrot.lane.b32.xlu1 %v7062_v54, %s5340_s9  ;;  %2560 = vst.msk [vmem:[#allocation3 + $0xd0] sm:$0xff] %vm366_vm2, %v2491_v2  ;;  %v3529_v54 = vld [vmem:[#allocation2 + $0x51] sm:$0xff] }
 0x2c9   :  { %3404 = vrot.lane.b32.xlu0 %v7068_v46, %s5343_s14 }
 0x2ca   :  { %v2493_v25 = vpop.permute.xlu1 %2492 }
 0x2cb   :  { %2561 = vst.msk [vmem:[#allocation3 + $0xd8] sm:$0xff] %vm366_vm2, %v2493_v25  ;;  %v2495_v34 = vpop.permute.xlu0 %2494 }
 0x2cc   :  { %3594 = vrot.lane.b32.xlu1 %v6971_v3, %s5344_s22  ;;  %2562 = vst.msk [vmem:[#allocation3 + $0xe0] sm:$0xff] %vm366_vm2, %v2495_v34  ;;  %v3536_v34 = vld [vmem:[#allocation2 + $0xa9] sm:$0xff] }
 0x2cd   :  { %2832 = vrot.lane.b32.xlu0 %v7068_v46, %s5340_s9 }
 0x2ce   :  { %v2497_v9 = vpop.permute.xlu1 %2496 }
 0x2cf   :  { %2563 = vst.msk [vmem:[#allocation3 + $0xe8] sm:$0xff] %vm366_vm2, %v2497_v9  ;;  %v2499_v35 = vpop.permute.xlu0 %2498 }
 0x2d0   :  { %3022 = vrot.lane.b32.xlu1 %v2954_v58, %s5341_s12  ;;  %2564 = vst.msk [vmem:[#allocation3 + $0xf0] sm:$0xff] %vm366_vm2, %v2499_v35 }
 0x2d1   :  { %3596 = vrot.lane.b32.xlu0 %v3529_v54, %s5344_s22 }
 0x2d2   :  { %v2501_v23 = vpop.permute.xlu1 %2500 }
 0x2d3   :  { %2565 = vst.msk [vmem:[#allocation3 + $0xf8] sm:$0xff] %vm366_vm2, %v2501_v23  ;;  %v2631_v3 = vpop.permute.xlu0 %2630 }
 0x2d4   :  { %3786 = vrot.lane.b32.xlu1 %v7086_v29, %s5345_s10  ;;  %2726 = vst.msk [vmem:[#allocation3] sm:$0xff] %vm559_vm3, %v2631_v3 }
 0x2d5   :  { %3024 = vrot.lane.b32.xlu0 %v3529_v54, %s5341_s12 }
 0x2d6   :  { %v2633_v48 = vpop.permute.xlu1 %2632 }
 0x2d7   :  { %2727 = vst.msk [vmem:[#allocation3 + $0x8] sm:$0xff] %vm559_vm3, %v2633_v48  ;;  %v2635_v46 = vpop.permute.xlu0 %2634 }
 0x2d8   :  { %3214 = vrot.lane.b32.xlu1 %v7086_v29, %s5342_s13  ;;  %2728 = vst.msk [vmem:[#allocation3 + $0x10] sm:$0xff] %vm559_vm3, %v2635_v46 }
 0x2d9   :  { %3788 = vrot.lane.b32.xlu0 %v7090_v47, %s5345_s10 }
 0x2da   :  { %v2637_v17 = vpop.permute.xlu1 %2636 }
 0x2db   :  { %2729 = vst.msk [vmem:[#allocation3 + $0x18] sm:$0xff] %vm559_vm3, %v2637_v17  ;;  %v2639_v56 = vpop.permute.xlu0 %2638 }
 0x2dc   :  { %3216 = vrot.lane.b32.xlu1 %v7090_v47, %s5342_s13  ;;  %2730 = vst.msk [vmem:[#allocation3 + $0x20] sm:$0xff] %vm559_vm3, %v2639_v56 }
 0x2dd   :  { %3406 = vrot.lane.b32.xlu0 %v7082_v26, %s5343_s14 }
 0x2de   :  { %v2641_v8 = vpop.permute.xlu1 %2640 }
 0x2df   :  { %2731 = vst.msk [vmem:[#allocation3 + $0x28] sm:$0xff] %vm559_vm3, %v2641_v8  ;;  %v2643_v29 = vpop.permute.xlu0 %2642 }
 0x2e0   :  { %2834 = vrot.lane.b32.xlu1 %v7082_v26, %s5340_s9  ;;  %2732 = vst.msk [vmem:[#allocation3 + $0x30] sm:$0xff] %vm559_vm3, %v2643_v29  ;;  %v3531_v26 = vld [vmem:[#allocation2 + $0x69] sm:$0xff] }
 0x2e1   :  { %3408 = vrot.lane.b32.xlu0 %v7088_v30, %s5343_s14 }
 0x2e2   :  { %v2645_v19 = vpop.permute.xlu1 %2644 }
 0x2e3   :  { %2733 = vst.msk [vmem:[#allocation3 + $0x38] sm:$0xff] %vm559_vm3, %v2645_v19  ;;  %v2647_v47 = vpop.permute.xlu0 %2646 }
 0x2e4   :  { %3598 = vrot.lane.b32.xlu1 %v3530_v16, %s5344_s22  ;;  %2734 = vst.msk [vmem:[#allocation3 + $0x40] sm:$0xff] %vm559_vm3, %v2647_v47 }
 0x2e5   :  { %2836 = vrot.lane.b32.xlu0 %v7088_v30, %s5340_s9 }
 0x2e6   :  { %v2649_v28 = vpop.permute.xlu1 %2648 }
 0x2e7   :  { %2735 = vst.msk [vmem:[#allocation3 + $0x48] sm:$0xff] %vm559_vm3, %v2649_v28  ;;  %v2651_v24 = vpop.permute.xlu0 %2650 }
 0x2e8   :  { %3026 = vrot.lane.b32.xlu1 %v3530_v16, %s5341_s12  ;;  %2736 = vst.msk [vmem:[#allocation3 + $0x50] sm:$0xff] %vm559_vm3, %v2651_v24  ;;  %v3538_v16 = vld [vmem:[#allocation2 + $0xc1] sm:$0xff] }
 0x2e9   :  { %3600 = vrot.lane.b32.xlu0 %v3531_v26, %s5344_s22  ;;  %v3730_v24 = vld [vmem:[#allocation2 + $0xc2] sm:$0xff] }
 0x2ea   :  { %v2653_v31 = vpop.permute.xlu1 %2652 }
 0x2eb   :  { %2737 = vst.msk [vmem:[#allocation3 + $0x58] sm:$0xff] %vm559_vm3, %v2653_v31  ;;  %v2655_v4 = vpop.permute.xlu0 %2654 }
 0x2ec   :  { %3790 = vrot.lane.b32.xlu1 %v7106_v18, %s5345_s10  ;;  %2738 = vst.msk [vmem:[#allocation3 + $0x60] sm:$0xff] %vm559_vm3, %v2655_v4 }
 0x2ed   :  { %3028 = vrot.lane.b32.xlu0 %v3531_v26, %s5341_s12 }
 0x2ee   :  { %v2657_v41 = vpop.permute.xlu1 %2656 }
 0x2ef   :  { %2739 = vst.msk [vmem:[#allocation3 + $0x68] sm:$0xff] %vm559_vm3, %v2657_v41  ;;  %v2659_v30 = vpop.permute.xlu0 %2658 }
 0x2f0   :  { %3218 = vrot.lane.b32.xlu1 %v7106_v18, %s5342_s13  ;;  %2740 = vst.msk [vmem:[#allocation3 + $0x70] sm:$0xff] %vm559_vm3, %v2659_v30 }
 0x2f1   :  { %3792 = vrot.lane.b32.xlu0 %v7110_v36, %s5345_s10 }
 0x2f2   :  { %v2661_v42 = vpop.permute.xlu1 %2660 }
 0x2f3   :  { %2741 = vst.msk [vmem:[#allocation3 + $0x78] sm:$0xff] %vm559_vm3, %v2661_v42  ;;  %v2663_v50 = vpop.permute.xlu0 %2662 }
 0x2f4   :  { %3220 = vrot.lane.b32.xlu1 %v7110_v36, %s5342_s13  ;;  %2742 = vst.msk [vmem:[#allocation3 + $0x80] sm:$0xff] %vm559_vm3, %v2663_v50 }
 0x2f5   :  { %3410 = vrot.lane.b32.xlu0 %v7102_v5, %s5343_s14 }
 0x2f6   :  { %v2665_v60 = vpop.permute.xlu1 %2664 }
 0x2f7   :  { %2743 = vst.msk [vmem:[#allocation3 + $0x88] sm:$0xff] %vm559_vm3, %v2665_v60  ;;  %v2667_v18 = vpop.permute.xlu0 %2666 }
 0x2f8   :  { %2838 = vrot.lane.b32.xlu1 %v7102_v5, %s5340_s9  ;;  %2744 = vst.msk [vmem:[#allocation3 + $0x90] sm:$0xff] %vm559_vm3, %v2667_v18  ;;  %v3533_v5 = vld [vmem:[#allocation2 + $0x81] sm:$0xff] }
 0x2f9   :  { %3412 = vrot.lane.b32.xlu0 %v7108_v20, %s5343_s14 }
 0x2fa   :  { %v2669_v44 = vpop.permute.xlu1 %2668 }
 0x2fb   :  { %2745 = vst.msk [vmem:[#allocation3 + $0x98] sm:$0xff] %vm559_vm3, %v2669_v44  ;;  %v2671_v36 = vpop.permute.xlu0 %2670 }
 0x2fc   :  { %3602 = vrot.lane.b32.xlu1 %v3532_v13, %s5344_s22  ;;  %2746 = vst.msk [vmem:[#allocation3 + $0xa0] sm:$0xff] %vm559_vm3, %v2671_v36  ;;  %v3540_v36 = vld [vmem:[#allocation2 + $0xd9] sm:$0xff] }
 0x2fd   :  { %2840 = vrot.lane.b32.xlu0 %v7108_v20, %s5340_s9 }
 0x2fe   :  { %v2673_v61 = vpop.permute.xlu1 %2672 }
 0x2ff   :  { %2747 = vst.msk [vmem:[#allocation3 + $0xa8] sm:$0xff] %vm559_vm3, %v2673_v61  ;;  %v2675_v55 = vpop.permute.xlu0 %2674 }
 0x300   :  { %3030 = vrot.lane.b32.xlu1 %v3532_v13, %s5341_s12  ;;  %2748 = vst.msk [vmem:[#allocation3 + $0xb0] sm:$0xff] %vm559_vm3, %v2675_v55 }
 0x301   :  { %3604 = vrot.lane.b32.xlu0 %v3533_v5, %s5344_s22 }
 0x302   :  { %v2677_v1 = vpop.permute.xlu1 %2676 }
 0x303   :  { %2749 = vst.msk [vmem:[#allocation3 + $0xb8] sm:$0xff] %vm559_vm3, %v2677_v1  ;;  %v2679_v21 = vpop.permute.xlu0 %2678 }
 0x304   :  { %3794 = vrot.lane.b32.xlu1 %v7126_v43, %s5345_s10  ;;  %2750 = vst.msk [vmem:[#allocation3 + $0xc0] sm:$0xff] %vm559_vm3, %v2679_v21  ;;  %v3732_v21 = vld [vmem:[#allocation2 + $0xda] sm:$0xff] }
 0x305   :  { %3032 = vrot.lane.b32.xlu0 %v3533_v5, %s5341_s12 }
 0x306   :  { %v2681_v0 = vpop.permute.xlu1 %2680 }
 0x307   :  { %2751 = vst.msk [vmem:[#allocation3 + $0xc8] sm:$0xff] %vm559_vm3, %v2681_v0  ;;  %v2683_v20 = vpop.permute.xlu0 %2682 }
 0x308   :  { %3222 = vrot.lane.b32.xlu1 %v7126_v43, %s5342_s13  ;;  %2752 = vst.msk [vmem:[#allocation3 + $0xd0] sm:$0xff] %vm559_vm3, %v2683_v20 }
 0x309   :  { %3796 = vrot.lane.b32.xlu0 %v7130_v32, %s5345_s10 }
 0x30a   :  { %v2685_v27 = vpop.permute.xlu1 %2684 }
 0x30b   :  { %2753 = vst.msk [vmem:[#allocation3 + $0xd8] sm:$0xff] %vm559_vm3, %v2685_v27  ;;  %v2687_v33 = vpop.permute.xlu0 %2686 }
 0x30c   :  { %3224 = vrot.lane.b32.xlu1 %v7130_v32, %s5342_s13  ;;  %2754 = vst.msk [vmem:[#allocation3 + $0xe0] sm:$0xff] %vm559_vm3, %v2687_v33 }
 0x30d   :  { %3414 = vrot.lane.b32.xlu0 %v7122_v53, %s5343_s14 }
 0x30e   :  { %v2689_v40 = vpop.permute.xlu1 %2688 }
 0x30f   :  { %2755 = vst.msk [vmem:[#allocation3 + $0xe8] sm:$0xff] %vm559_vm3, %v2689_v40  ;;  %v2691_v43 = vpop.permute.xlu0 %2690 }
 0x310   :  { %2842 = vrot.lane.b32.xlu1 %v7122_v53, %s5340_s9  ;;  %2756 = vst.msk [vmem:[#allocation3 + $0xf0] sm:$0xff] %vm559_vm3, %v2691_v43  ;;  %v3535_v53 = vld [vmem:[#allocation2 + $0x99] sm:$0xff] }
 0x311   :  { %3416 = vrot.lane.b32.xlu0 %v7128_v59, %s5343_s14 }
 0x312   :  { %v2693_v49 = vpop.permute.xlu1 %2692 }
 0x313   :  { %2757 = vst.msk [vmem:[#allocation3 + $0xf8] sm:$0xff] %vm559_vm3, %v2693_v49  ;;  %v2823_v32 = vpop.permute.xlu0 %2822 }
 0x314   :  { %3606 = vrot.lane.b32.xlu1 %v3534_v51, %s5344_s22  ;;  %2918 = vst.msk [vmem:[#allocation3] sm:$0xff] %vm752_vm4, %v2823_v32 }
 0x315   :  { %2844 = vrot.lane.b32.xlu0 %v7128_v59, %s5340_s9 }
 0x316   :  { %v2825_v12 = vpop.permute.xlu1 %2824 }
 0x317   :  { %2919 = vst.msk [vmem:[#allocation3 + $0x8] sm:$0xff] %vm752_vm4, %v2825_v12  ;;  %v3015_v14 = vpop.permute.xlu0 %3014  ;;  %v3351_v12 = vld [vmem:[#allocation2 + $0xf8] sm:$0xff] }
 0x318   :  { %3034 = vrot.lane.b32.xlu1 %v3534_v51, %s5341_s12  ;;  %3110 = vst.msk [vmem:[#allocation3] sm:$0xff] %vm945_vm5, %v3015_v14  ;;  %v3542_v14 = vld [vmem:[#allocation2 + $0xf1] sm:$0xff] }
 0x319   :  { %3608 = vrot.lane.b32.xlu0 %v3535_v53, %s5344_s22 }
 0x31a   :  { %v3017_v63 = vpop.permute.xlu1 %3016 }
 0x31b   :  { %3111 = vst.msk [vmem:[#allocation3 + $0x8] sm:$0xff] %vm945_vm5, %v3017_v63  ;;  %v3207_v52 = vpop.permute.xlu0 %3206 }
 0x31c   :  { %3798 = vrot.lane.b32.xlu1 %v7146_v39, %s5345_s10  ;;  %3302 = vst.msk [vmem:[#allocation3] sm:$0xff] %vm1138_vm6, %v3207_v52 }
 0x31d   :  { %3036 = vrot.lane.b32.xlu0 %v3535_v53, %s5341_s12 }
 0x31e   :  { %v3209_v6 = vpop.permute.xlu1 %3208 }
 0x31f   :  { %3303 = vst.msk [vmem:[#allocation3 + $0x8] sm:$0xff] %vm1138_vm6, %v3209_v6  ;;  %v3399_v59 = vpop.permute.xlu0 %3398 }
 0x320   :  { %3226 = vrot.lane.b32.xlu1 %v7146_v39, %s5342_s13  ;;  %3494 = vst.msk [vmem:[#allocation3] sm:$0xff] %vm1332_vm7, %v3399_v59  ;;  %v3543_v59 = vld [vmem:[#allocation2 + $0xf9] sm:$0xff] }
 0x321   :  { %3800 = vrot.lane.b32.xlu0 %v7150_v45, %s5345_s10 }
 0x322   :  { %v2827_v38 = vpop.permute.xlu1 %2826 }
 0x323   :  { %2920 = vst.msk [vmem:[#allocation3 + $0x10] sm:$0xff] %vm752_vm4, %v2827_v38  ;;  %v3401_v2 = vpop.permute.xlu0 %3400 }
 0x324   :  { %3228 = vrot.lane.b32.xlu1 %v7150_v45, %s5342_s13  ;;  %3495 = vst.msk [vmem:[#allocation3 + $0x8] sm:$0xff] %vm1332_vm7, %v3401_v2  ;;  %v3734_v2 = vld [vmem:[#allocation2 + $0xf2] sm:$0xff] }
 0x325   :  { %3418 = vrot.lane.b32.xlu0 %v7142_v10, %s5343_s14 }
 0x326   :  { %v3591_v25 = vpop.permute.xlu1 %3590 }
 0x327   :  { %3686 = vst.msk [vmem:[#allocation3] sm:$0xff] %vm1525_vm9, %v3591_v25  ;;  %v2829_v39 = vpop.permute.xlu0 %2828 }
 0x328   :  { %2846 = vrot.lane.b32.xlu1 %v7142_v10, %s5340_s9  ;;  %2921 = vst.msk [vmem:[#allocation3 + $0x18] sm:$0xff] %vm752_vm4, %v2829_v39  ;;  %v3537_v10 = vld [vmem:[#allocation2 + $0xb1] sm:$0xff] }
 0x329   :  { %3420 = vrot.lane.b32.xlu0 %v7148_v7, %s5343_s14 }
 0x32a   :  { %v3019_v58 = vpop.permute.xlu1 %3018 }
 0x32b   :  { %3112 = vst.msk [vmem:[#allocation3 + $0x10] sm:$0xff] %vm945_vm5, %v3019_v58  ;;  %v3593_v45 = vpop.permute.xlu0 %3592 }
 0x32c   :  { %3610 = vrot.lane.b32.xlu1 %v3536_v34, %s5344_s22  ;;  %3687 = vst.msk [vmem:[#allocation3 + $0x8] sm:$0xff] %vm1525_vm9, %v3593_v45  ;;  %v3735_v45 = vld [vmem:[#allocation2 + $0xfa] sm:$0xff] }
 0x32d   :  { %2848 = vrot.lane.b32.xlu0 %v7148_v7, %s5340_s9  ;;  %v3729_v7 = vld [vmem:[#allocation2 + $0xb2] sm:$0xff] }
 0x32e   :  { %v3783_v9 = vpop.permute.xlu1 %3782 }
 0x32f   :  { %3878 = vst.msk [vmem:[#allocation3] sm:$0xff] %vm1718_vm10, %v3783_v9  ;;  %v3021_v54 = vpop.permute.xlu0 %3020 }
 0x330   :  { %3038 = vrot.lane.b32.xlu1 %v3536_v34, %s5341_s12  ;;  %3113 = vst.msk [vmem:[#allocation3 + $0x18] sm:$0xff] %vm945_vm5, %v3021_v54  ;;  %v3352_v54 = vld [vmem:[#allocation2 + $0x108] sm:$0xff] }
 0x331   :  { %3612 = vrot.lane.b32.xlu0 %v3537_v10, %s5344_s22 }
 0x332   :  { %v3211_v35 = vpop.permute.xlu1 %3210 }
 0x333   :  { %3304 = vst.msk [vmem:[#allocation3 + $0x10] sm:$0xff] %vm1138_vm6, %v3211_v35  ;;  %v3785_v23 = vpop.permute.xlu0 %3784 }
 0x334   :  { %3802 = vrot.lane.b32.xlu1 %v7166_v57, %s5345_s10  ;;  %3879 = vst.msk [vmem:[#allocation3 + $0x8] sm:$0xff] %vm1718_vm10, %v3785_v23 }
 0x335   :  { %3040 = vrot.lane.b32.xlu0 %v3537_v10, %s5341_s12 }
 0x336   :  { %v3213_v3 = vpop.permute.xlu1 %3212  ;;  %v3910_v48 = vld [vmem:[#allocation3] sm:$0xff] }
 0x337   :  { %3305 = vst.msk [vmem:[#allocation3 + $0x18] sm:$0xff] %vm1138_vm6, %v3213_v3  ;;  %5254 = vmatprep.mubr.msk.f32.mxu1 %vm1795_vm11, %v3910_v48  ;;  %v3403_v46 = vpop.permute.xlu0 %3402  ;;  %v3353_v48 = vld [vmem:[#allocation2 + $0x110] sm:$0xff] }
 0x338   :  { %3230 = vrot.lane.b32.xlu1 %v7166_v57, %s5342_s13  ;;  %3496 = vst.msk [vmem:[#allocation3 + $0x10] sm:$0xff] %vm1332_vm7, %v3403_v46  ;;  %v3544_v46 = vld [vmem:[#allocation2 + $0x109] sm:$0xff] }
 0x339   :  { %3804 = vrot.lane.b32.xlu0 %v3729_v7, %s5345_s10 }
 0x33a   :  { %v2831_v17 = vpop.permute.xlu1 %2830 }
 0x33b   :  { %2922 = vst.msk [vmem:[#allocation3 + $0x20] sm:$0xff] %vm752_vm4, %v2831_v17  ;;  %v3405_v56 = vpop.permute.xlu0 %3404  ;;  %v3911_v8 = vld [vmem:[#allocation3 + $0x8] sm:$0xff] }
 0x33c   :  { %3232 = vrot.lane.b32.xlu1 %v3729_v7, %s5342_s13  ;;  %3497 = vst.msk [vmem:[#allocation3 + $0x18] sm:$0xff] %vm1332_vm7, %v3405_v56  ;;  %5255 = vmatmul.mubr.msk.f32.vlgmr.msra.gmra.mxu1 %vm1795_vm11, %v3911_v8 }
 0x33d   :  { %3422 = vrot.lane.b32.xlu0 %v7162_v15, %s5343_s14 }
 0x33e   :  { %v3595_v29 = vpop.permute.xlu1 %3594 }
 0x33f   :  { %3688 = vst.msk [vmem:[#allocation3 + $0x10] sm:$0xff] %vm1525_vm9, %v3595_v29  ;;  %v2833_v57 = vpop.permute.xlu0 %2832  ;;  %v3545_v29 = vld [vmem:[#allocation2 + $0x111] sm:$0xff] }
 0x340   :  { %2850 = vrot.lane.b32.xlu1 %v7162_v15, %s5340_s9  ;;  %2923 = vst.msk [vmem:[#allocation3 + $0x28] sm:$0xff] %vm752_vm4, %v2833_v57  ;;  %v3539_v15 = vld [vmem:[#allocation2 + $0xc9] sm:$0xff] }
 0x341   :  { %3424 = vrot.lane.b32.xlu0 %v7168_v11, %s5343_s14 }
 0x342   :  { %v3023_v19 = vpop.permute.xlu1 %3022 }
 0x343   :  { %3114 = vst.msk [vmem:[#allocation3 + $0x20] sm:$0xff] %vm945_vm5, %v3023_v19  ;;  %v3597_v47 = vpop.permute.xlu0 %3596 }
 0x344   :  { %3614 = vrot.lane.b32.xlu1 %v3538_v16, %s5344_s22  ;;  %3689 = vst.msk [vmem:[#allocation3 + $0x18] sm:$0xff] %vm1525_vm9, %v3597_v47 }
 0x345   :  { %2852 = vrot.lane.b32.xlu0 %v7168_v11, %s5340_s9  ;;  %v3731_v11 = vld [vmem:[#allocation2 + $0xca] sm:$0xff] }
 0x346   :  { %v3787_v28 = vpop.permute.xlu1 %3786 }
 0x347   :  { %3880 = vst.msk [vmem:[#allocation3 + $0x10] sm:$0xff] %vm1718_vm10, %v3787_v28  ;;  %v3025_v26 = vpop.permute.xlu0 %3024 }
 0x348   :  { %3042 = vrot.lane.b32.xlu1 %v3538_v16, %s5341_s12  ;;  %3115 = vst.msk [vmem:[#allocation3 + $0x28] sm:$0xff] %vm945_vm5, %v3025_v26  ;;  %v3736_v16 = vld [vmem:[#allocation2 + $0x10a] sm:$0xff]  ;;  %v3737_v26 = vld [vmem:[#allocation2 + $0x112] sm:$0xff] }
 0x349   :  { %3616 = vrot.lane.b32.xlu0 %v3539_v15, %s5344_s22 }
 0x34a   :  { %v3215_v31 = vpop.permute.xlu1 %3214 }
 0x34b   :  { %3306 = vst.msk [vmem:[#allocation3 + $0x20] sm:$0xff] %vm1138_vm6, %v3215_v31  ;;  %v3789_v4 = vpop.permute.xlu0 %3788 }
 0x34c   :  { %3806 = vrot.lane.b32.xlu1 %v3730_v24, %s5345_s10  ;;  %3881 = vst.msk [vmem:[#allocation3 + $0x18] sm:$0xff] %vm1718_vm10, %v3789_v4  ;;  %v3354_v4 = vld [vmem:[#allocation2 + $0x120] sm:$0xff] }
 0x34d   :  { %3044 = vrot.lane.b32.xlu0 %v3539_v15, %s5341_s12 }
 0x34e   :  { %v3217_v41 = vpop.permute.xlu1 %3216  ;;  %v3912_v30 = vld [vmem:[#allocation3 + $0x10] sm:$0xff] }
 0x34f   :  { %3307 = vst.msk [vmem:[#allocation3 + $0x28] sm:$0xff] %vm1138_vm6, %v3217_v41  ;;  %5257 = vmatprep.mubr.msk.f32.mxu1 %vm1795_vm11, %v3912_v30  ;;  %v3407_v42 = vpop.permute.xlu0 %3406 }
 0x350   :  { %3234 = vrot.lane.b32.xlu1 %v3730_v24, %s5342_s13  ;;  %3498 = vst.msk [vmem:[#allocation3 + $0x20] sm:$0xff] %vm1332_vm7, %v3407_v42  ;;  %v3355_v42 = vld [vmem:[#allocation2 + $0x128] sm:$0xff] }
 0x351   :  { %3808 = vrot.lane.b32.xlu0 %v3731_v11, %s5345_s10 }
 0x352   :  { %v2835_v50 = vpop.permute.xlu1 %2834 }
 0x353   :  { %2924 = vst.msk [vmem:[#allocation3 + $0x30] sm:$0xff] %vm752_vm4, %v2835_v50  ;;  %v3409_v60 = vpop.permute.xlu0 %3408  ;;  %v3913_v18 = vld [vmem:[#allocation3 + $0x18] sm:$0xff] }
 0x354   :  { %3236 = vrot.lane.b32.xlu1 %v3731_v11, %s5342_s13  ;;  %3499 = vst.msk [vmem:[#allocation3 + $0x28] sm:$0xff] %vm1332_vm7, %v3409_v60  ;;  %5258 = vmatmul.mubr.msk.f32.gmra.mxu1 %vm1795_vm11, %v3913_v18  ;;  %v3546_v60 = vld [vmem:[#allocation2 + $0x121] sm:$0xff] }
 0x355   :  { %3426 = vrot.lane.b32.xlu0 %v7180_v62, %s5343_s14 }
 0x356   :  { %v3599_v13 = vpop.permute.xlu1 %3598 }
 0x357   :  { %3690 = vst.msk [vmem:[#allocation3 + $0x20] sm:$0xff] %vm1525_vm9, %v3599_v13  ;;  %v2837_v44 = vpop.permute.xlu0 %2836 }
 0x358   :  { %2854 = vrot.lane.b32.xlu1 %v7180_v62, %s5340_s9  ;;  %2925 = vst.msk [vmem:[#allocation3 + $0x38] sm:$0xff] %vm752_vm4, %v2837_v44  ;;  %v3541_v62 = vld [vmem:[#allocation2 + $0xe1] sm:$0xff] }
 0x359   :  { %3428 = vrot.lane.b32.xlu0 %v7183_v22, %s5343_s14 }
 0x35a   :  { %v3027_v61 = vpop.permute.xlu1 %3026 }
 0x35b   :  { %3116 = vst.msk [vmem:[#allocation3 + $0x30] sm:$0xff] %vm945_vm5, %v3027_v61  ;;  %v3601_v5 = vpop.permute.xlu0 %3600 }
 0x35c   :  { %3618 = vrot.lane.b32.xlu1 %v3540_v36, %s5344_s22  ;;  %3691 = vst.msk [vmem:[#allocation3 + $0x28] sm:$0xff] %vm1525_vm9, %v3601_v5  ;;  %v3738_v5 = vld [vmem:[#allocation2 + $0x122] sm:$0xff] }
 0x35d   :  { %2856 = vrot.lane.b32.xlu0 %v7183_v22, %s5340_s9  ;;  %v3733_v22 = vld [vmem:[#allocation2 + $0xe2] sm:$0xff] }
 0x35e   :  { %v3791_v55 = vpop.permute.xlu1 %3790 }
 0x35f   :  { %3882 = vst.msk [vmem:[#allocation3 + $0x20] sm:$0xff] %vm1718_vm10, %v3791_v55  ;;  %v3029_v1 = vpop.permute.xlu0 %3028 }
 0x360   :  { %3046 = vrot.lane.b32.xlu1 %v3540_v36, %s5341_s12  ;;  %3117 = vst.msk [vmem:[#allocation3 + $0x38] sm:$0xff] %vm945_vm5, %v3029_v1  ;;  %v3547_v36 = vld [vmem:[#allocation2 + $0x129] sm:$0xff] }
 0x361   :  { %3620 = vrot.lane.b32.xlu0 %v3541_v62, %s5344_s22 }
 0x362   :  { %v3219_v0 = vpop.permute.xlu1 %3218 }
 0x363   :  { %3308 = vst.msk [vmem:[#allocation3 + $0x30] sm:$0xff] %vm1138_vm6, %v3219_v0  ;;  %v3793_v20 = vpop.permute.xlu0 %3792  ;;  %v3739_v0 = vld [vmem:[#allocation2 + $0x12a] sm:$0xff] }
 0x364   :  { %3810 = vrot.lane.b32.xlu1 %v3732_v21, %s5345_s10  ;;  %3883 = vst.msk [vmem:[#allocation3 + $0x28] sm:$0xff] %vm1718_vm10, %v3793_v20 }
 0x365   :  { %3048 = vrot.lane.b32.xlu0 %v3541_v62, %s5341_s12 }
 0x366   :  { %v3221_v27 = vpop.permute.xlu1 %3220  ;;  %v3914_v33 = vld [vmem:[#allocation3 + $0x20] sm:$0xff] }
 0x367   :  { %3309 = vst.msk [vmem:[#allocation3 + $0x38] sm:$0xff] %vm1138_vm6, %v3221_v27  ;;  %5260 = vmatprep.mubr.msk.f32.mxu1 %vm1795_vm11, %v3914_v33  ;;  %v3411_v40 = vpop.permute.xlu0 %3410  ;;  %v3356_v33 = vld [vmem:[#allocation2 + $0x138] sm:$0xff] }
 0x368   :  { %3238 = vrot.lane.b32.xlu1 %v3732_v21, %s5342_s13  ;;  %3500 = vst.msk [vmem:[#allocation3 + $0x30] sm:$0xff] %vm1332_vm7, %v3411_v40 }
 0x369   :  { %3812 = vrot.lane.b32.xlu0 %v3733_v22, %s5345_s10 }
 0x36a   :  { %v2839_v43 = vpop.permute.xlu1 %2838 }
 0x36b   :  { %2926 = vst.msk [vmem:[#allocation3 + $0x40] sm:$0xff] %vm752_vm4, %v2839_v43  ;;  %v3413_v51 = vpop.permute.xlu0 %3412  ;;  %v3915_v49 = vld [vmem:[#allocation3 + $0x28] sm:$0xff] }
 0x36c   :  { %3240 = vrot.lane.b32.xlu1 %v3733_v22, %s5342_s13  ;;  %3501 = vst.msk [vmem:[#allocation3 + $0x38] sm:$0xff] %vm1332_vm7, %v3413_v51  ;;  %5261 = vmatmul.mubr.msk.f32.gmra.mxu1 %vm1795_vm11, %v3915_v49  ;;  %v3357_v51 = vld [vmem:[#allocation2 + $0x140] sm:$0xff] }
 0x36d   :  { %3430 = vrot.lane.b32.xlu0 %v7194_v37, %s5343_s14 }
 0x36e   :  { %v3603_v32 = vpop.permute.xlu1 %3602 }
 0x36f   :  { %3692 = vst.msk [vmem:[#allocation3 + $0x30] sm:$0xff] %vm1525_vm9, %v3603_v32  ;;  %v2841_v53 = vpop.permute.xlu0 %2840  ;;  %v3548_v32 = vld [vmem:[#allocation2 + $0x139] sm:$0xff] }
 0x370   :  { %2858 = vrot.lane.b32.xlu1 %v7194_v37, %s5340_s9  ;;  %2927 = vst.msk [vmem:[#allocation3 + $0x48] sm:$0xff] %vm752_vm4, %v2841_v53  ;;  %v5076_v37 = vld [vmem:[%s8538_s0 + $0x1f0] sm:$0xff] }
 0x371   :  { %3432 = vrot.lane.b32.xlu0 %v3351_v12, %s5343_s14  ;;  %2308 = vst.msk [vmem:[#allocation2 + $0x181] sm:$0xff] %vm21_vm0, %v5076_v37 }
 0x372   :  { %v3031_v63 = vpop.permute.xlu1 %3030 }
 0x373   :  { %3118 = vst.msk [vmem:[#allocation3 + $0x40] sm:$0xff] %vm945_vm5, %v3031_v63  ;;  %v3605_v52 = vpop.permute.xlu0 %3604  ;;  %v3549_v63 = vld [vmem:[#allocation2 + $0x141] sm:$0xff] }
 0x374   :  { %3622 = vrot.lane.b32.xlu1 %v3542_v14, %s5344_s22  ;;  %3693 = vst.msk [vmem:[#allocation3 + $0x38] sm:$0xff] %vm1525_vm9, %v3605_v52 }
 0x375   :  { %2860 = vrot.lane.b32.xlu0 %v3351_v12, %s5340_s9 }
 0x376   :  { %v3795_v6 = vpop.permute.xlu1 %3794 }
 0x377   :  { %3884 = vst.msk [vmem:[#allocation3 + $0x30] sm:$0xff] %vm1718_vm10, %v3795_v6  ;;  %v3033_v38 = vpop.permute.xlu0 %3032  ;;  %v3740_v6 = vld [vmem:[#allocation2 + $0x13a] sm:$0xff] }
 0x378   :  { %3050 = vrot.lane.b32.xlu1 %v3542_v14, %s5341_s12  ;;  %3119 = vst.msk [vmem:[#allocation3 + $0x48] sm:$0xff] %vm945_vm5, %v3033_v38 }
 0x379   :  { %3624 = vrot.lane.b32.xlu0 %v3543_v59, %s5344_s22 }
 0x37a   :  { %v3223_v25 = vpop.permute.xlu1 %3222 }
 0x37b   :  { %3310 = vst.msk [vmem:[#allocation3 + $0x40] sm:$0xff] %vm1138_vm6, %v3223_v25  ;;  %v3797_v39 = vpop.permute.xlu0 %3796  ;;  %v3741_v25 = vld [vmem:[#allocation2 + $0x142] sm:$0xff] }
 0x37c   :  { %3814 = vrot.lane.b32.xlu1 %v3734_v2, %s5345_s10  ;;  %3885 = vst.msk [vmem:[#allocation3 + $0x38] sm:$0xff] %vm1718_vm10, %v3797_v39 }
 0x37d   :  { %3052 = vrot.lane.b32.xlu0 %v3543_v59, %s5341_s12 }
 0x37e   :  { %v3225_v34 = vpop.permute.xlu1 %3224  ;;  %v3916_v58 = vld [vmem:[#allocation3 + $0x30] sm:$0xff] }
 0x37f   :  { %3311 = vst.msk [vmem:[#allocation3 + $0x48] sm:$0xff] %vm1138_vm6, %v3225_v34  ;;  %5263 = vmatprep.mubr.msk.f32.mxu1 %vm1795_vm11, %v3916_v58  ;;  %v3415_v9 = vpop.permute.xlu0 %3414  ;;  %v3358_v58 = vld [vmem:[#allocation2 + $0x150] sm:$0xff] }
 0x380   :  { %3242 = vrot.lane.b32.xlu1 %v3734_v2, %s5342_s13  ;;  %3502 = vst.msk [vmem:[#allocation3 + $0x40] sm:$0xff] %vm1332_vm7, %v3415_v9 }
 0x381   :  { %3816 = vrot.lane.b32.xlu0 %v3735_v45, %s5345_s10 }
 0x382   :  { %v2843_v10 = vpop.permute.xlu1 %2842 }
 0x383   :  { %2928 = vst.msk [vmem:[#allocation3 + $0x50] sm:$0xff] %vm752_vm4, %v2843_v10  ;;  %v3417_v35 = vpop.permute.xlu0 %3416  ;;  %v3917_v23 = vld [vmem:[#allocation3 + $0x38] sm:$0xff] }
 0x384   :  { %3244 = vrot.lane.b32.xlu1 %v3735_v45, %s5342_s13  ;;  %3503 = vst.msk [vmem:[#allocation3 + $0x48] sm:$0xff] %vm1332_vm7, %v3417_v35  ;;  %5264 = vmatmul.mubr.msk.f32.gmra.mxu1 %vm1795_vm11, %v3917_v23  ;;  %v3550_v23 = vld [vmem:[#allocation2 + $0x151] sm:$0xff] }
 0x385   :  { %3434 = vrot.lane.b32.xlu0 %v3352_v54, %s5343_s14 }
 0x386   :  { %v3607_v3 = vpop.permute.xlu1 %3606 }
 0x387   :  { %3694 = vst.msk [vmem:[#allocation3 + $0x40] sm:$0xff] %vm1525_vm9, %v3607_v3  ;;  %v2845_v7 = vpop.permute.xlu0 %2844 }
 0x388   :  { %2862 = vrot.lane.b32.xlu1 %v3352_v54, %s5340_s9  ;;  %2929 = vst.msk [vmem:[#allocation3 + $0x58] sm:$0xff] %vm752_vm4, %v2845_v7  ;;  %v3359_v54 = vld [vmem:[#allocation2 + $0x158] sm:$0xff] }
 0x389   :  { %3436 = vrot.lane.b32.xlu0 %v3353_v48, %s5343_s14 }
 0x38a   :  { %v3035_v17 = vpop.permute.xlu1 %3034 }
 0x38b   :  { %3120 = vst.msk [vmem:[#allocation3 + $0x50] sm:$0xff] %vm945_vm5, %v3035_v17  ;;  %v3609_v56 = vpop.permute.xlu0 %3608 }
 0x38c   :  { %3626 = vrot.lane.b32.xlu1 %v3544_v46, %s5344_s22  ;;  %3695 = vst.msk [vmem:[#allocation3 + $0x48] sm:$0xff] %vm1525_vm9, %v3609_v56  ;;  %v3742_v56 = vld [vmem:[#allocation2 + $0x152] sm:$0xff] }
 0x38d   :  { %2864 = vrot.lane.b32.xlu0 %v3353_v48, %s5340_s9 }
 0x38e   :  { %v3799_v8 = vpop.permute.xlu1 %3798 }
 0x38f   :  { %3886 = vst.msk [vmem:[#allocation3 + $0x40] sm:$0xff] %vm1718_vm10, %v3799_v8  ;;  %v3037_v57 = vpop.permute.xlu0 %3036 }
 0x390   :  { %3054 = vrot.lane.b32.xlu1 %v3544_v46, %s5341_s12  ;;  %3121 = vst.msk [vmem:[#allocation3 + $0x58] sm:$0xff] %vm945_vm5, %v3037_v57  ;;  %v3551_v46 = vld [vmem:[#allocation2 + $0x159] sm:$0xff] }
 0x391   :  { %3628 = vrot.lane.b32.xlu0 %v3545_v29, %s5344_s22 }
 0x392   :  { %v3227_v19 = vpop.permute.xlu1 %3226 }
 0x393   :  { %3312 = vst.msk [vmem:[#allocation3 + $0x50] sm:$0xff] %vm1138_vm6, %v3227_v19  ;;  %v3801_v47 = vpop.permute.xlu0 %3800  ;;  %v3743_v19 = vld [vmem:[#allocation2 + $0x15a] sm:$0xff] }
 0x394   :  { %3818 = vrot.lane.b32.xlu1 %v3736_v16, %s5345_s10  ;;  %3887 = vst.msk [vmem:[#allocation3 + $0x48] sm:$0xff] %vm1718_vm10, %v3801_v47 }
 0x395   :  { %3056 = vrot.lane.b32.xlu0 %v3545_v29, %s5341_s12 }
 0x396   :  { %v3229_v28 = vpop.permute.xlu1 %3228  ;;  %v3918_v15 = vld [vmem:[#allocation3 + $0x40] sm:$0xff] }
 0x397   :  { %3313 = vst.msk [vmem:[#allocation3 + $0x58] sm:$0xff] %vm1138_vm6, %v3229_v28  ;;  %5266 = vmatprep.mubr.msk.f32.mxu1 %vm1795_vm11, %v3918_v15  ;;  %v3419_v24 = vpop.permute.xlu0 %3418  ;;  %v3360_v15 = vld [vmem:[#allocation2 + $0x168] sm:$0xff] }
 0x398   :  { %3246 = vrot.lane.b32.xlu1 %v3736_v16, %s5342_s13  ;;  %3504 = vst.msk [vmem:[#allocation3 + $0x50] sm:$0xff] %vm1332_vm7, %v3419_v24 }
 0x399   :  { %3820 = vrot.lane.b32.xlu0 %v3737_v26, %s5345_s10 }
 0x39a   :  { %v2847_v31 = vpop.permute.xlu1 %2846 }
 0x39b   :  { %2930 = vst.msk [vmem:[#allocation3 + $0x60] sm:$0xff] %vm752_vm4, %v2847_v31  ;;  %v3421_v41 = vpop.permute.xlu0 %3420  ;;  %v3919_v30 = vld [vmem:[#allocation3 + $0x48] sm:$0xff] }
 0x39c   :  { %3248 = vrot.lane.b32.xlu1 %v3737_v26, %s5342_s13  ;;  %3505 = vst.msk [vmem:[#allocation3 + $0x58] sm:$0xff] %vm1332_vm7, %v3421_v41  ;;  %5267 = vmatmul.mubr.msk.f32.gmra.mxu1 %vm1795_vm11, %v3919_v30  ;;  %v3552_v30 = vld [vmem:[#allocation2 + $0x169] sm:$0xff] }
 0x39d   :  { %3438 = vrot.lane.b32.xlu0 %v3354_v4, %s5343_s14 }
 0x39e   :  { %v3611_v11 = vpop.permute.xlu1 %3610 }
 0x39f   :  { %3696 = vst.msk [vmem:[#allocation3 + $0x50] sm:$0xff] %vm1525_vm9, %v3611_v11  ;;  %v2849_v50 = vpop.permute.xlu0 %2848 }
 0x3a0   :  { %2866 = vrot.lane.b32.xlu1 %v3354_v4, %s5340_s9  ;;  %2931 = vst.msk [vmem:[#allocation3 + $0x68] sm:$0xff] %vm752_vm4, %v2849_v50  ;;  %v3361_v4 = vld [vmem:[#allocation2 + $0x170] sm:$0xff] }
 0x3a1   :  { %3440 = vrot.lane.b32.xlu0 %v3355_v42, %s5343_s14 }
 0x3a2   :  { %v3039_v18 = vpop.permute.xlu1 %3038 }
 0x3a3   :  { %3122 = vst.msk [vmem:[#allocation3 + $0x60] sm:$0xff] %vm945_vm5, %v3039_v18  ;;  %v3613_v13 = vpop.permute.xlu0 %3612 }
 0x3a4   :  { %3630 = vrot.lane.b32.xlu1 %v3546_v60, %s5344_s22  ;;  %3697 = vst.msk [vmem:[#allocation3 + $0x58] sm:$0xff] %vm1525_vm9, %v3613_v13  ;;  %v3744_v13 = vld [vmem:[#allocation2 + $0x16a] sm:$0xff] }
 0x3a5   :  { %2868 = vrot.lane.b32.xlu0 %v3355_v42, %s5340_s9 }
 0x3a6   :  { %v3803_v44 = vpop.permute.xlu1 %3802 }
 0x3a7   :  { %3888 = vst.msk [vmem:[#allocation3 + $0x50] sm:$0xff] %vm1718_vm10, %v3803_v44  ;;  %v3041_v61 = vpop.permute.xlu0 %3040 }
 0x3a8   :  { %3058 = vrot.lane.b32.xlu1 %v3546_v60, %s5341_s12  ;;  %3123 = vst.msk [vmem:[#allocation3 + $0x68] sm:$0xff] %vm945_vm5, %v3041_v61  ;;  %v3553_v60 = vld [vmem:[#allocation2 + $0x171] sm:$0xff] }
 0x3a9   :  { %3632 = vrot.lane.b32.xlu0 %v3547_v36, %s5344_s22 }
 0x3aa   :  { %v3231_v55 = vpop.permute.xlu1 %3230 }
 0x3ab   :  { %3314 = vst.msk [vmem:[#allocation3 + $0x60] sm:$0xff] %vm1138_vm6, %v3231_v55  ;;  %v3805_v62 = vpop.permute.xlu0 %3804  ;;  %v3745_v55 = vld [vmem:[#allocation2 + $0x172] sm:$0xff] }
 0x3ac   :  { %3822 = vrot.lane.b32.xlu1 %v3738_v5, %s5345_s10  ;;  %3889 = vst.msk [vmem:[#allocation3 + $0x58] sm:$0xff] %vm1718_vm10, %v3805_v62 }
 0x3ad   :  { %3060 = vrot.lane.b32.xlu0 %v3547_v36, %s5341_s12 }
 0x3ae   :  { %v3233_v1 = vpop.permute.xlu1 %3232  ;;  %v3920_v21 = vld [vmem:[#allocation3 + $0x50] sm:$0xff] }
 0x3af   :  { %3315 = vst.msk [vmem:[#allocation3 + $0x68] sm:$0xff] %vm1138_vm6, %v3233_v1  ;;  %5269 = vmatprep.mubr.msk.f32.mxu1 %vm1795_vm11, %v3920_v21  ;;  %v3423_v20 = vpop.permute.xlu0 %3422  ;;  %v3362_v21 = vld [vmem:[#allocation2 + $0x180] sm:$0xff] }
 0x3b0   :  { %3250 = vrot.lane.b32.xlu1 %v3738_v5, %s5342_s13  ;;  %3506 = vst.msk [vmem:[#allocation3 + $0x60] sm:$0xff] %vm1332_vm7, %v3423_v20 }
 0x3b1   :  { %3824 = vrot.lane.b32.xlu0 %v3739_v0, %s5345_s10 }
 0x3b2   :  { %v2851_v27 = vpop.permute.xlu1 %2850 }
 0x3b3   :  { %2932 = vst.msk [vmem:[#allocation3 + $0x70] sm:$0xff] %vm752_vm4, %v2851_v27  ;;  %v3425_v22 = vpop.permute.xlu0 %3424  ;;  %v3921_v40 = vld [vmem:[#allocation3 + $0x58] sm:$0xff] }
 0x3b4   :  { %3252 = vrot.lane.b32.xlu1 %v3739_v0, %s5342_s13  ;;  %3507 = vst.msk [vmem:[#allocation3 + $0x68] sm:$0xff] %vm1332_vm7, %v3425_v22  ;;  %5270 = vmatmul.mubr.msk.f32.gmra.mxu1 %vm1795_vm11, %v3921_v40  ;;  %v3554_v40 = vld [vmem:[#allocation2 + $0x181] sm:$0xff] }
 0x3b5   :  { %3442 = vrot.lane.b32.xlu0 %v3356_v33, %s5343_s14 }
 0x3b6   :  { %v3615_v43 = vpop.permute.xlu1 %3614 }
 0x3b7   :  { %3698 = vst.msk [vmem:[#allocation3 + $0x60] sm:$0xff] %vm1525_vm9, %v3615_v43  ;;  %v2853_v49 = vpop.permute.xlu0 %2852 }
 0x3b8   :  { %2870 = vrot.lane.b32.xlu1 %v3356_v33, %s5340_s9  ;;  %2933 = vst.msk [vmem:[#allocation3 + $0x78] sm:$0xff] %vm752_vm4, %v2853_v49  ;;  %v3363_v33 = vld [vmem:[#allocation2 + $0x188] sm:$0xff] }
 0x3b9   :  { %3444 = vrot.lane.b32.xlu0 %v3357_v51, %s5343_s14 }
 0x3ba   :  { %v3043_v12 = vpop.permute.xlu1 %3042 }
 0x3bb   :  { %3124 = vst.msk [vmem:[#allocation3 + $0x70] sm:$0xff] %vm945_vm5, %v3043_v12  ;;  %v3617_v53 = vpop.permute.xlu0 %3616 }
 0x3bc   :  { %3634 = vrot.lane.b32.xlu1 %v3548_v32, %s5344_s22  ;;  %3699 = vst.msk [vmem:[#allocation3 + $0x68] sm:$0xff] %vm1525_vm9, %v3617_v53  ;;  %v3746_v53 = vld [vmem:[#allocation2 + $0x182] sm:$0xff] }
 0x3bd   :  { %2872 = vrot.lane.b32.xlu0 %v3357_v51, %s5340_s9 }
 0x3be   :  { %v3807_v14 = vpop.permute.xlu1 %3806 }
 0x3bf   :  { %3890 = vst.msk [vmem:[#allocation3 + $0x60] sm:$0xff] %vm1718_vm10, %v3807_v14  ;;  %v3045_v52 = vpop.permute.xlu0 %3044 }
 0x3c0   :  { %3062 = vrot.lane.b32.xlu1 %v3548_v32, %s5341_s12  ;;  %3125 = vst.msk [vmem:[#allocation3 + $0x78] sm:$0xff] %vm945_vm5, %v3045_v52  ;;  %v3555_v32 = vld [vmem:[#allocation2 + $0x189] sm:$0xff] }
 0x3c1   :  { %3636 = vrot.lane.b32.xlu0 %v3549_v63, %s5344_s22 }
 0x3c2   :  { %v3235_v37 = vpop.permute.xlu1 %3234 }
 0x3c3   :  { %3316 = vst.msk [vmem:[#allocation3 + $0x70] sm:$0xff] %vm1138_vm6, %v3235_v37  ;;  %v3809_v59 = vpop.permute.xlu0 %3808  ;;  %v3747_v37 = vld [vmem:[#allocation2 + $0x18a] sm:$0xff] }
 0x3c4   :  { %3826 = vrot.lane.b32.xlu1 %v3740_v6, %s5345_s10  ;;  %3891 = vst.msk [vmem:[#allocation3 + $0x68] sm:$0xff] %vm1718_vm10, %v3809_v59 }
 0x3c5   :  { %3064 = vrot.lane.b32.xlu0 %v3549_v63, %s5341_s12 }
 0x3c6   :  { %v3237_v38 = vpop.permute.xlu1 %3236  ;;  %v3922_v2 = vld [vmem:[#allocation3 + $0x60] sm:$0xff] }
 0x3c7   :  { %3317 = vst.msk [vmem:[#allocation3 + $0x78] sm:$0xff] %vm1138_vm6, %v3237_v38  ;;  %5272 = vmatprep.mubr.msk.f32.mxu1 %vm1795_vm11, %v3922_v2  ;;  %v3427_v39 = vpop.permute.xlu0 %3426  ;;  %v3364_v2 = vld [vmem:[#allocation2 + $0x198] sm:$0xff] }
 0x3c8   :  { %3254 = vrot.lane.b32.xlu1 %v3740_v6, %s5342_s13  ;;  %3508 = vst.msk [vmem:[#allocation3 + $0x70] sm:$0xff] %vm1332_vm7, %v3427_v39 }
 0x3c9   :  { %3828 = vrot.lane.b32.xlu0 %v3741_v25, %s5345_s10 }
 0x3ca   :  { %v2855_v34 = vpop.permute.xlu1 %2854 }
 0x3cb   :  { %2934 = vst.msk [vmem:[#allocation3 + $0x80] sm:$0xff] %vm752_vm4, %v2855_v34  ;;  %v3429_v45 = vpop.permute.xlu0 %3428  ;;  %v3923_v9 = vld [vmem:[#allocation3 + $0x68] sm:$0xff]  ;;  %v3365_v34 = vld [vmem:[#allocation2 + $0x1a0] sm:$0xff] }
 0x3cc   :  { %3256 = vrot.lane.b32.xlu1 %v3741_v25, %s5342_s13  ;;  %3509 = vst.msk [vmem:[#allocation3 + $0x78] sm:$0xff] %vm1332_vm7, %v3429_v45  ;;  %5273 = vmatmul.mubr.msk.f32.gmra.mxu1 %vm1795_vm11, %v3923_v9  ;;  %v3556_v45 = vld [vmem:[#allocation2 + $0x199] sm:$0xff] }
 0x3cd   :  { %3446 = vrot.lane.b32.xlu0 %v3358_v58, %s5343_s14 }
 0x3ce   :  { %v3619_v10 = vpop.permute.xlu1 %3618 }
 0x3cf   :  { %3700 = vst.msk [vmem:[#allocation3 + $0x70] sm:$0xff] %vm1525_vm9, %v3619_v10  ;;  %v2857_v35 = vpop.permute.xlu0 %2856  ;;  %v3557_v10 = vld [vmem:[#allocation2 + $0x1a1] sm:$0xff] }
 0x3d0   :  { %2874 = vrot.lane.b32.xlu1 %v3358_v58, %s5340_s9  ;;  %2935 = vst.msk [vmem:[#allocation3 + $0x88] sm:$0xff] %vm752_vm4, %v2857_v35  ;;  %v3748_v35 = vld [vmem:[#allocation2 + $0x19a] sm:$0xff] }
 0x3d1   :  { %3448 = vrot.lane.b32.xlu0 %v3359_v54, %s5343_s14 }
 0x3d2   :  { %v3047_v3 = vpop.permute.xlu1 %3046 }
 0x3d3   :  { %3126 = vst.msk [vmem:[#allocation3 + $0x80] sm:$0xff] %vm945_vm5, %v3047_v3  ;;  %v3621_v48 = vpop.permute.xlu0 %3620  ;;  %v3749_v3 = vld [vmem:[#allocation2 + $0x1a2] sm:$0xff] }
 0x3d4   :  { %3638 = vrot.lane.b32.xlu1 %v3550_v23, %s5344_s22  ;;  %3701 = vst.msk [vmem:[#allocation3 + $0x78] sm:$0xff] %vm1525_vm9, %v3621_v48 }
 0x3d5   :  { %2876 = vrot.lane.b32.xlu0 %v3359_v54, %s5340_s9 }
 0x3d6   :  { %v3811_v7 = vpop.permute.xlu1 %3810 }
 0x3d7   :  { %3892 = vst.msk [vmem:[#allocation3 + $0x70] sm:$0xff] %vm1718_vm10, %v3811_v7  ;;  %v3049_v17 = vpop.permute.xlu0 %3048 }
 0x3d8   :  { %3066 = vrot.lane.b32.xlu1 %v3550_v23, %s5341_s12  ;;  %3127 = vst.msk [vmem:[#allocation3 + $0x88] sm:$0xff] %vm945_vm5, %v3049_v17 }
 0x3d9   :  { %3640 = vrot.lane.b32.xlu0 %v3551_v46, %s5344_s22 }
 0x3da   :  { %v3239_v8 = vpop.permute.xlu1 %3238 }
 0x3db   :  { %3318 = vst.msk [vmem:[#allocation3 + $0x80] sm:$0xff] %vm1138_vm6, %v3239_v8  ;;  %v3813_v29 = vpop.permute.xlu0 %3812 }
 0x3dc   :  { %3830 = vrot.lane.b32.xlu1 %v3742_v56, %s5345_s10  ;;  %3893 = vst.msk [vmem:[#allocation3 + $0x78] sm:$0xff] %vm1718_vm10, %v3813_v29 }
 0x3dd   :  { %3068 = vrot.lane.b32.xlu0 %v3551_v46, %s5341_s12 }
 0x3de   :  { %v3241_v57 = vpop.permute.xlu1 %3240  ;;  %v3924_v16 = vld [vmem:[#allocation3 + $0x70] sm:$0xff] }
 0x3df   :  { %3319 = vst.msk [vmem:[#allocation3 + $0x88] sm:$0xff] %vm1138_vm6, %v3241_v57  ;;  %5275 = vmatprep.mubr.msk.f32.mxu1 %vm1795_vm11, %v3924_v16  ;;  %v3431_v47 = vpop.permute.xlu0 %3430 }
 0x3e0   :  { %3258 = vrot.lane.b32.xlu1 %v3742_v56, %s5342_s13  ;;  %3510 = vst.msk [vmem:[#allocation3 + $0x80] sm:$0xff] %vm1332_vm7, %v3431_v47 }
 0x3e1   :  { %3832 = vrot.lane.b32.xlu0 %v3743_v19, %s5345_s10 }
 0x3e2   :  { %v2859_v28 = vpop.permute.xlu1 %2858 }
 0x3e3   :  { %2936 = vst.msk [vmem:[#allocation3 + $0x90] sm:$0xff] %vm752_vm4, %v2859_v28  ;;  %v3433_v26 = vpop.permute.xlu0 %3432  ;;  %v3925_v24 = vld [vmem:[#allocation3 + $0x78] sm:$0xff] }
 0x3e4   :  { %3260 = vrot.lane.b32.xlu1 %v3743_v19, %s5342_s13  ;;  %3511 = vst.msk [vmem:[#allocation3 + $0x88] sm:$0xff] %vm1332_vm7, %v3433_v26  ;;  %5276 = vmatmul.mubr.msk.f32.gmra.mxu1 %vm1795_vm11, %v3925_v24 }
 0x3e5   :  { %3450 = vrot.lane.b32.xlu0 %v3360_v15, %s5343_s14 }
 0x3e6   :  { %v3623_v31 = vpop.permute.xlu1 %3622 }
 0x3e7   :  { %3702 = vst.msk [vmem:[#allocation3 + $0x80] sm:$0xff] %vm1525_vm9, %v3623_v31  ;;  %v2861_v41 = vpop.permute.xlu0 %2860 }
 0x3e8   :  { %2878 = vrot.lane.b32.xlu1 %v3360_v15, %s5340_s9  ;;  %2937 = vst.msk [vmem:[#allocation3 + $0x98] sm:$0xff] %vm752_vm4, %v2861_v41 }
 0x3e9   :  { %3452 = vrot.lane.b32.xlu0 %v3361_v4, %s5343_s14 }
 0x3ea   :  { %v3051_v11 = vpop.permute.xlu1 %3050 }
 0x3eb   :  { %3128 = vst.msk [vmem:[#allocation3 + $0x90] sm:$0xff] %vm945_vm5, %v3051_v11  ;;  %v3625_v42 = vpop.permute.xlu0 %3624 }
 0x3ec   :  { %3642 = vrot.lane.b32.xlu1 %v3552_v30, %s5344_s22  ;;  %3703 = vst.msk [vmem:[#allocation3 + $0x88] sm:$0xff] %vm1525_vm9, %v3625_v42 }
 0x3ed   :  { %2880 = vrot.lane.b32.xlu0 %v3361_v4, %s5340_s9 }
 0x3ee   :  { %v3815_v50 = vpop.permute.xlu1 %3814 }
 0x3ef   :  { %3894 = vst.msk [vmem:[#allocation3 + $0x80] sm:$0xff] %vm1718_vm10, %v3815_v50  ;;  %v3053_v18 = vpop.permute.xlu0 %3052 }
 0x3f0   :  { %3070 = vrot.lane.b32.xlu1 %v3552_v30, %s5341_s12  ;;  %3129 = vst.msk [vmem:[#allocation3 + $0x98] sm:$0xff] %vm945_vm5, %v3053_v18 }
 0x3f1   :  { %3644 = vrot.lane.b32.xlu0 %v3553_v60, %s5344_s22 }
 0x3f2   :  { %v3243_v44 = vpop.permute.xlu1 %3242 }
 0x3f3   :  { %3320 = vst.msk [vmem:[#allocation3 + $0x90] sm:$0xff] %vm1138_vm6, %v3243_v44  ;;  %v3817_v36 = vpop.permute.xlu0 %3816 }
 0x3f4   :  { %3834 = vrot.lane.b32.xlu1 %v3744_v13, %s5345_s10  ;;  %3895 = vst.msk [vmem:[#allocation3 + $0x88] sm:$0xff] %vm1718_vm10, %v3817_v36 }
 0x3f5   :  { %3072 = vrot.lane.b32.xlu0 %v3553_v60, %s5341_s12 }
 0x3f6   :  { %v3245_v61 = vpop.permute.xlu1 %3244  ;;  %v3926_v5 = vld [vmem:[#allocation3 + $0x80] sm:$0xff] }
 0x3f7   :  { %3321 = vst.msk [vmem:[#allocation3 + $0x98] sm:$0xff] %vm1138_vm6, %v3245_v61  ;;  %5278 = vmatprep.mubr.msk.f32.mxu1 %vm1795_vm11, %v3926_v5  ;;  %v3435_v62 = vpop.permute.xlu0 %3434 }
 0x3f8   :  { %3262 = vrot.lane.b32.xlu1 %v3744_v13, %s5342_s13  ;;  %3512 = vst.msk [vmem:[#allocation3 + $0x90] sm:$0xff] %vm1332_vm7, %v3435_v62 }
 0x3f9   :  { %3836 = vrot.lane.b32.xlu0 %v3745_v55, %s5345_s10 }
 0x3fa   :  { %v2863_v1 = vpop.permute.xlu1 %2862 }
 0x3fb   :  { %2938 = vst.msk [vmem:[#allocation3 + $0xa0] sm:$0xff] %vm752_vm4, %v2863_v1  ;;  %v3437_v0 = vpop.permute.xlu0 %3436  ;;  %v3927_v20 = vld [vmem:[#allocation3 + $0x88] sm:$0xff] }
 0x3fc   :  { %3264 = vrot.lane.b32.xlu1 %v3745_v55, %s5342_s13  ;;  %3513 = vst.msk [vmem:[#allocation3 + $0x98] sm:$0xff] %vm1332_vm7, %v3437_v0  ;;  %5279 = vmatmul.mubr.msk.f32.gmra.mxu1 %vm1795_vm11, %v3927_v20 }
 0x3fd   :  { %3454 = vrot.lane.b32.xlu0 %v3362_v21, %s5343_s14 }
 0x3fe   :  { %v3627_v27 = vpop.permute.xlu1 %3626 }
 0x3ff   :  { %3704 = vst.msk [vmem:[#allocation3 + $0x90] sm:$0xff] %vm1525_vm9, %v3627_v27  ;;  %v2865_v22 = vpop.permute.xlu0 %2864 }
 0x400   :  { %2882 = vrot.lane.b32.xlu1 %v3362_v21, %s5340_s9  ;;  %2939 = vst.msk [vmem:[#allocation3 + $0xa8] sm:$0xff] %vm752_vm4, %v2865_v22 }
 0x401   :  { %3456 = vrot.lane.b32.xlu0 %v3363_v33, %s5343_s14 }
 0x402   :  { %v3055_v43 = vpop.permute.xlu1 %3054 }
 0x403   :  { %3130 = vst.msk [vmem:[#allocation3 + $0xa0] sm:$0xff] %vm945_vm5, %v3055_v43  ;;  %v3629_v51 = vpop.permute.xlu0 %3628 }
 0x404   :  { %3646 = vrot.lane.b32.xlu1 %v3554_v40, %s5344_s22  ;;  %3705 = vst.msk [vmem:[#allocation3 + $0x98] sm:$0xff] %vm1525_vm9, %v3629_v51 }
 0x405   :  { %2884 = vrot.lane.b32.xlu0 %v3363_v33, %s5340_s9 }
 0x406   :  { %v3819_v49 = vpop.permute.xlu1 %3818 }
 0x407   :  { %3896 = vst.msk [vmem:[#allocation3 + $0x90] sm:$0xff] %vm1718_vm10, %v3819_v49  ;;  %v3057_v12 = vpop.permute.xlu0 %3056 }
 0x408   :  { %3074 = vrot.lane.b32.xlu1 %v3554_v40, %s5341_s12  ;;  %3131 = vst.msk [vmem:[#allocation3 + $0xa8] sm:$0xff] %vm945_vm5, %v3057_v12 }
 0x409   :  { %3648 = vrot.lane.b32.xlu0 %v3555_v32, %s5344_s22 }
 0x40a   :  { %v3247_v14 = vpop.permute.xlu1 %3246 }
 0x40b   :  { %3322 = vst.msk [vmem:[#allocation3 + $0xa0] sm:$0xff] %vm1138_vm6, %v3247_v14  ;;  %v3821_v63 = vpop.permute.xlu0 %3820 }
 0x40c   :  { %3838 = vrot.lane.b32.xlu1 %v3746_v53, %s5345_s10  ;;  %3897 = vst.msk [vmem:[#allocation3 + $0x98] sm:$0xff] %vm1718_vm10, %v3821_v63 }
 0x40d   :  { %3076 = vrot.lane.b32.xlu0 %v3555_v32, %s5341_s12 }
 0x40e   :  { %v3249_v52 = vpop.permute.xlu1 %3248  ;;  %v3928_v6 = vld [vmem:[#allocation3 + $0x90] sm:$0xff] }
 0x40f   :  { %3323 = vst.msk [vmem:[#allocation3 + $0xa8] sm:$0xff] %vm1138_vm6, %v3249_v52  ;;  %5281 = vmatprep.mubr.msk.f32.mxu1 %vm1795_vm11, %v3928_v6  ;;  %v3439_v59 = vpop.permute.xlu0 %3438 }
 0x410   :  { %3266 = vrot.lane.b32.xlu1 %v3746_v53, %s5342_s13  ;;  %3514 = vst.msk [vmem:[#allocation3 + $0xa0] sm:$0xff] %vm1332_vm7, %v3439_v59 }
 0x411   :  { %3840 = vrot.lane.b32.xlu0 %v3747_v37, %s5345_s10 }
 0x412   :  { %v2867_v38 = vpop.permute.xlu1 %2866 }
 0x413   :  { %2940 = vst.msk [vmem:[#allocation3 + $0xb0] sm:$0xff] %vm752_vm4, %v2867_v38  ;;  %v3441_v25 = vpop.permute.xlu0 %3440  ;;  %v3929_v39 = vld [vmem:[#allocation3 + $0x98] sm:$0xff] }
 0x414   :  { %3268 = vrot.lane.b32.xlu1 %v3747_v37, %s5342_s13  ;;  %3515 = vst.msk [vmem:[#allocation3 + $0xa8] sm:$0xff] %vm1332_vm7, %v3441_v25  ;;  %5282 = vmatmul.mubr.msk.f32.gmra.mxu1 %vm1795_vm11, %v3929_v39 }
 0x415   :  { %3458 = vrot.lane.b32.xlu0 %v3364_v2, %s5343_s14 }
 0x416   :  { %v3631_v58 = vpop.permute.xlu1 %3630 }
 0x417   :  { %3706 = vst.msk [vmem:[#allocation3 + $0xa0] sm:$0xff] %vm1525_vm9, %v3631_v58  ;;  %v2869_v9 = vpop.permute.xlu0 %2868 }
 0x418   :  { %3460 = vrot.lane.b32.xlu1 %v3365_v34, %s5343_s14  ;;  %2941 = vst.msk [vmem:[#allocation3 + $0xb8] sm:$0xff] %vm752_vm4, %v2869_v9 }
 0x419   :  { %3650 = vrot.lane.b32.xlu0 %v3556_v45, %s5344_s22 }
 0x41a   :  { %v3059_v54 = vpop.permute.xlu1 %3058 }
 0x41b   :  { %3132 = vst.msk [vmem:[#allocation3 + $0xb0] sm:$0xff] %vm945_vm5, %v3059_v54  ;;  %v3633_v23 = vpop.permute.xlu0 %3632 }
 0x41c   :  { %3652 = vrot.lane.b32.xlu1 %v3557_v10, %s5344_s22  ;;  %3707 = vst.msk [vmem:[#allocation3 + $0xa8] sm:$0xff] %vm1525_vm9, %v3633_v23 }
 0x41d   :  { %3842 = vrot.lane.b32.xlu0 %v3748_v35, %s5345_s10 }
 0x41e   :  { %v3823_v48 = vpop.permute.xlu1 %3822 }
 0x41f   :  { %3898 = vst.msk [vmem:[#allocation3 + $0xa0] sm:$0xff] %vm1718_vm10, %v3823_v48  ;;  %v3061_v7 = vpop.permute.xlu0 %3060 }
 0x420   :  { %3844 = vrot.lane.b32.xlu1 %v3749_v3, %s5345_s10  ;;  %3133 = vst.msk [vmem:[#allocation3 + $0xb8] sm:$0xff] %vm945_vm5, %v3061_v7 }
 0x422   :  { %v3251_v46 = vpop.permute.xlu1 %3250 }
 0x423   :  { %3324 = vst.msk [vmem:[#allocation3 + $0xb0] sm:$0xff] %vm1138_vm6, %v3251_v46  ;;  %v3825_v17 = vpop.permute.xlu0 %3824 }
 0x424   :  { %3899 = vst.msk [vmem:[#allocation3 + $0xa8] sm:$0xff] %vm1718_vm10, %v3825_v17 }
 0x426   :  { %v3253_v56 = vpop.permute.xlu1 %3252  ;;  %v3930_v8 = vld [vmem:[#allocation3 + $0xa0] sm:$0xff] }
 0x427   :  { %3325 = vst.msk [vmem:[#allocation3 + $0xb8] sm:$0xff] %vm1138_vm6, %v3253_v56  ;;  %5284 = vmatprep.mubr.msk.f32.mxu1 %vm1795_vm11, %v3930_v8  ;;  %v3443_v29 = vpop.permute.xlu0 %3442 }
 0x428   :  { %3516 = vst.msk [vmem:[#allocation3 + $0xb0] sm:$0xff] %vm1332_vm7, %v3443_v29 }
 0x42a   :  { %v2871_v57 = vpop.permute.xlu1 %2870 }
 0x42b   :  { %2942 = vst.msk [vmem:[#allocation3 + $0xc0] sm:$0xff] %vm752_vm4, %v2871_v57  ;;  %v3445_v16 = vpop.permute.xlu0 %3444  ;;  %v3931_v19 = vld [vmem:[#allocation3 + $0xa8] sm:$0xff]  ;;  %v5198_v57 = vpop.f32.mrf.mxu0 }
 0x42c   :  { %3517 = vst.msk [vmem:[#allocation3 + $0xb8] sm:$0xff] %vm1332_vm7, %v3445_v16  ;;  %5285 = vmatmul.mubr.msk.f32.gmra.mxu1 %vm1795_vm11, %v3931_v19 }
 0x42d   :  { %v1962_v16 = vpop.f32.mrf.mxu0 }
 0x42e   :  { %v3635_v47 = vpop.permute.xlu1 %3634 }
 0x42f   :  { %3708 = vst.msk [vmem:[#allocation3 + $0xb0] sm:$0xff] %vm1525_vm9, %v3635_v47  ;;  %v2873_v28 = vpop.permute.xlu0 %2872  ;;  %v5201_v19 = vpop.f32.mrf.mxu0  ;;  %v7815_v47 = vld [vmem:[%s8540_s2] ss:$0 sm:$0xff] }
 0x430   :  { %2943 = vst.msk [vmem:[#allocation3 + $0xc8] sm:$0xff] %vm752_vm4, %v2873_v28 }
 0x431   :  { %v1972_v28 = vpop.f32.mrf.mxu0 }
 0x432   :  { %v3063_v15 = vpop.permute.xlu1 %3062 }
 0x433   :  { %3134 = vst.msk [vmem:[#allocation3 + $0xc0] sm:$0xff] %vm945_vm5, %v3063_v15  ;;  %v3637_v26 = vpop.permute.xlu0 %3636  ;;  %v7818_v15 = vadd.f32 %v7815_v47, %v1962_v16 }
 0x434   :  { %3709 = vst.msk [vmem:[#allocation3 + $0xb8] sm:$0xff] %vm1525_vm9, %v3637_v26  ;;  %v7821_v26 = vadd.f32 %v5198_v57, %v7815_v47 }
 0x436   :  { %v3827_v24 = vpop.permute.xlu1 %3826 }
 0x437   :  { %3900 = vst.msk [vmem:[#allocation3 + $0xb0] sm:$0xff] %vm1718_vm10, %v3827_v24  ;;  %v3065_v31 = vpop.permute.xlu0 %3064  ;;  %v7824_v24 = vadd.f32 %v7815_v47, %v1972_v28 }
 0x438   :  { %3135 = vst.msk [vmem:[#allocation3 + $0xc8] sm:$0xff] %vm945_vm5, %v3065_v31  ;;  %v5204_v31 = vpop.f32.mrf.mxu0 }
 0x43a   :  { %v3255_v4 = vpop.permute.xlu1 %3254 }
 0x43b   :  { %3326 = vst.msk [vmem:[#allocation3 + $0xc0] sm:$0xff] %vm1138_vm6, %v3255_v4  ;;  %v3829_v41 = vpop.permute.xlu0 %3828  ;;  %v2153_v4 = vadd.f32 %v7821_v26, %v7818_v15 }
 0x43c   :  { %3901 = vst.msk [vmem:[#allocation3 + $0xb8] sm:$0xff] %vm1718_vm10, %v3829_v41 }
 0x43d   :  { %v2154_v41 = vadd.f32 %v2153_v4, %v7824_v24 }
 0x43e   :  { %v3257_v30 = vpop.permute.xlu1 %3256  ;;  %v3932_v11 = vld [vmem:[#allocation3 + $0xb0] sm:$0xff] }
 0x43f   :  { %3327 = vst.msk [vmem:[#allocation3 + $0xc8] sm:$0xff] %vm1138_vm6, %v3257_v30  ;;  %5287 = vmatprep.mubr.msk.f32.mxu1 %vm1795_vm11, %v3932_v11  ;;  %v3447_v42 = vpop.permute.xlu0 %3446  ;;  %v1982_v30 = vpop.f32.mrf.mxu0  ;;  %v7830_v11 = vadd.f32 %v5201_v19, %v7815_v47 }
 0x440   :  { %3518 = vst.msk [vmem:[#allocation3 + $0xc0] sm:$0xff] %vm1332_vm7, %v3447_v42  ;;  %v7833_v42 = vadd.f32 %v7815_v47, %v1982_v30 }
 0x442   :  { %v2875_v50 = vpop.permute.xlu1 %2874 }
 0x443   :  { %2944 = vst.msk [vmem:[#allocation3 + $0xd0] sm:$0xff] %vm752_vm4, %v2875_v50  ;;  %v3449_v60 = vpop.permute.xlu0 %3448  ;;  %v3933_v18 = vld [vmem:[#allocation3 + $0xb8] sm:$0xff]  ;;  %v2155_v50 = vadd.f32 %v2154_v41, %v7830_v11 }
 0x444   :  { %3519 = vst.msk [vmem:[#allocation3 + $0xc8] sm:$0xff] %vm1332_vm7, %v3449_v60  ;;  %5288 = vmatmul.mubr.msk.f32.gmra.mxu1 %vm1795_vm11, %v3933_v18  ;;  %v5207_v60 = vpop.f32.mrf.mxu0 }
 0x445   :  { %v2156_v18 = vadd.f32 %v2155_v50, %v7833_v42 }
 0x446   :  { %v3639_v13 = vpop.permute.xlu1 %3638 }
 0x447   :  { %3710 = vst.msk [vmem:[#allocation3 + $0xc0] sm:$0xff] %vm1525_vm9, %v3639_v13  ;;  %v2877_v44 = vpop.permute.xlu0 %2876  ;;  %v1992_v13 = vpop.f32.mrf.mxu0 }
 0x448   :  { %2945 = vst.msk [vmem:[#allocation3 + $0xd8] sm:$0xff] %vm752_vm4, %v2877_v44  ;;  %v7838_v44 = vadd.f32 %v5204_v31, %v7815_v47 }
 0x44a   :  { %v3067_v36 = vpop.permute.xlu1 %3066 }
 0x44b   :  { %3136 = vst.msk [vmem:[#allocation3 + $0xd0] sm:$0xff] %vm945_vm5, %v3067_v36  ;;  %v3641_v61 = vpop.permute.xlu0 %3640  ;;  %v7841_v36 = vadd.f32 %v7815_v47, %v1992_v13 }
 0x44c   :  { %3711 = vst.msk [vmem:[#allocation3 + $0xc8] sm:$0xff] %vm1525_vm9, %v3641_v61  ;;  %v2157_v61 = vadd.f32 %v2156_v18, %v7838_v44 }
 0x44e   :  { %v3831_v5 = vpop.permute.xlu1 %3830 }
 0x44f   :  { %3902 = vst.msk [vmem:[#allocation3 + $0xc0] sm:$0xff] %vm1718_vm10, %v3831_v5  ;;  %v3069_v55 = vpop.permute.xlu0 %3068  ;;  %v5210_v5 = vpop.f32.mrf.mxu0 }
 0x450   :  { %3137 = vst.msk [vmem:[#allocation3 + $0xd8] sm:$0xff] %vm945_vm5, %v3069_v55  ;;  %v2158_v55 = vadd.f32 %v2157_v61, %v7841_v36 }
 0x452   :  { %v3259_v62 = vpop.permute.xlu1 %3258 }
 0x453   :  { %3328 = vst.msk [vmem:[#allocation3 + $0xd0] sm:$0xff] %vm1138_vm6, %v3259_v62  ;;  %v3833_v1 = vpop.permute.xlu0 %3832  ;;  %v2002_v62 = vpop.f32.mrf.mxu0 }
 0x454   :  { %3903 = vst.msk [vmem:[#allocation3 + $0xc8] sm:$0xff] %vm1718_vm10, %v3833_v1  ;;  %v7846_v1 = vadd.f32 %v5207_v60, %v7815_v47 }
 0x456   :  { %v3261_v21 = vpop.permute.xlu1 %3260  ;;  %v3934_v0 = vld [vmem:[#allocation3 + $0xc0] sm:$0xff] }
 0x457   :  { %3329 = vst.msk [vmem:[#allocation3 + $0xd8] sm:$0xff] %vm1138_vm6, %v3261_v21  ;;  %5290 = vmatprep.mubr.msk.f32.mxu1 %vm1795_vm11, %v3934_v0  ;;  %v3451_v20 = vpop.permute.xlu0 %3450  ;;  %v7849_v21 = vadd.f32 %v7815_v47, %v2002_v62  ;;  %v2159_v0 = vadd.f32 %v2158_v55, %v7846_v1 }
 0x458   :  { %3520 = vst.msk [vmem:[#allocation3 + $0xd0] sm:$0xff] %vm1332_vm7, %v3451_v20  ;;  %v5213_v20 = vpop.f32.mrf.mxu0 }
 0x45a   :  { %v2879_v27 = vpop.permute.xlu1 %2878 }
 0x45b   :  { %2946 = vst.msk [vmem:[#allocation3 + $0xe0] sm:$0xff] %vm752_vm4, %v2879_v27  ;;  %v3453_v33 = vpop.permute.xlu0 %3452  ;;  %v3935_v22 = vld [vmem:[#allocation3 + $0xc8] sm:$0xff]  ;;  %v5256_v27 = vpop.f32.mrf.mxu1 }
 0x45c   :  { %3521 = vst.msk [vmem:[#allocation3 + $0xd8] sm:$0xff] %vm1332_vm7, %v3453_v33  ;;  %5291 = vmatmul.mubr.msk.f32.gmra.mxu1 %vm1795_vm11, %v3935_v22  ;;  %v2160_v33 = vadd.f32 %v2159_v0, %v7849_v21  ;;  %v2012_v22 = vpop.f32.mrf.mxu0 }
 0x45e   :  { %v3643_v40 = vpop.permute.xlu1 %3642 }
 0x45f   :  { %3712 = vst.msk [vmem:[#allocation3 + $0xd0] sm:$0xff] %vm1525_vm9, %v3643_v40  ;;  %v2881_v43 = vpop.permute.xlu0 %2880  ;;  %v4119_v40 = vpop.f32.mrf.mxu1 }
 0x460   :  { %2947 = vst.msk [vmem:[#allocation3 + $0xe8] sm:$0xff] %vm752_vm4, %v2881_v43  ;;  %v7854_v43 = vadd.f32 %v5210_v5, %v7815_v47 }
 0x462   :  { %v3071_v51 = vpop.permute.xlu1 %3070  ;;  %8717 = vst [vmem:[#allocation9_spill] sm:$0xff] %v7854_v43 }
 0x463   :  { %3138 = vst.msk [vmem:[#allocation3 + $0xe0] sm:$0xff] %vm945_vm5, %v3071_v51  ;;  %v3645_v49 = vpop.permute.xlu0 %3644  ;;  %v5259_v51 = vpop.f32.mrf.mxu1 }
 0x464   :  { %3713 = vst.msk [vmem:[#allocation3 + $0xd8] sm:$0xff] %vm1525_vm9, %v3645_v49  ;;  %v7857_v49 = vadd.f32 %v7815_v47, %v2012_v22 }
 0x466   :  { %v3835_v32 = vpop.permute.xlu1 %3834  ;;  %8718 = vst [vmem:[#allocation8_spill] sm:$0xff] %v7857_v49 }
 0x467   :  { %3904 = vst.msk [vmem:[#allocation3 + $0xd0] sm:$0xff] %vm1718_vm10, %v3835_v32  ;;  %v3073_v12 = vpop.permute.xlu0 %3072  ;;  %v2161_v32 = vadd.f32 %v2160_v33, %v7854_v43 }
 0x468   :  { %3139 = vst.msk [vmem:[#allocation3 + $0xe8] sm:$0xff] %vm945_vm5, %v3073_v12  ;;  %v5216_v12 = vpop.f32.mrf.mxu0 }
 0x46a   :  { %v3263_v53 = vpop.permute.xlu1 %3262 }
 0x46b   :  { %3330 = vst.msk [vmem:[#allocation3 + $0xe0] sm:$0xff] %vm1138_vm6, %v3263_v53  ;;  %v3837_v14 = vpop.permute.xlu0 %3836  ;;  %v7863_v53 = vld [vmem:[%s8540_s2] ss:$0 sm:$0xff] }
 0x46c   :  { %3905 = vst.msk [vmem:[#allocation3 + $0xd8] sm:$0xff] %vm1718_vm10, %v3837_v14  ;;  %v4129_v14 = vpop.f32.mrf.mxu1 }
 0x46e   :  { %v3265_v63 = vpop.permute.xlu1 %3264  ;;  %v3936_v52 = vld [vmem:[#allocation3 + $0xd0] sm:$0xff] }
 0x46f   :  { %3331 = vst.msk [vmem:[#allocation3 + $0xe8] sm:$0xff] %vm1138_vm6, %v3265_v63  ;;  %5293 = vmatprep.mubr.msk.f32.mxu1 %vm1795_vm11, %v3936_v52  ;;  %v3455_v6 = vpop.permute.xlu0 %3454  ;;  %v2162_v63 = vadd.f32 %v2161_v32, %v7857_v49  ;;  %v7867_v52 = vadd.f32 %v7863_v53, %v4119_v40 }
 0x470   :  { %3522 = vst.msk [vmem:[#allocation3 + $0xe0] sm:$0xff] %vm1332_vm7, %v3455_v6  ;;  %v2022_v6 = vpop.f32.mrf.mxu0 }
 0x472   :  { %v2883_v37 = vpop.permute.xlu1 %2882 }
 0x473   :  { %2948 = vst.msk [vmem:[#allocation3 + $0xf0] sm:$0xff] %vm752_vm4, %v2883_v37  ;;  %v3457_v59 = vpop.permute.xlu0 %3456  ;;  %v3937_v38 = vld [vmem:[#allocation3 + $0xd8] sm:$0xff]  ;;  %v5262_v37 = vpop.f32.mrf.mxu1 }
 0x474   :  { %3523 = vst.msk [vmem:[#allocation3 + $0xe8] sm:$0xff] %vm1332_vm7, %v3457_v59  ;;  %5294 = vmatmul.mubr.msk.f32.gmra.mxu1 %vm1795_vm11, %v3937_v38  ;;  %v7870_v59 = vadd.f32 %v5213_v20, %v7815_v47  ;;  %v7873_v38 = vadd.f32 %v5256_v27, %v7863_v53  ;;  %v7902_v16 = vadd.f32 %v5262_v37, %v7863_v53 }
 0x476   :  { %v3647_v2 = vpop.permute.xlu1 %3646  ;;  %8719 = vst [vmem:[#allocation17_spill] sm:$0xff] %v7870_v59 }
 0x477   :  { %3714 = vst.msk [vmem:[#allocation3 + $0xe0] sm:$0xff] %vm1525_vm9, %v3647_v2  ;;  %v2885_v25 = vpop.permute.xlu0 %2884  ;;  %v7876_v2 = vadd.f32 %v7863_v53, %v4129_v14 }
 0x478   :  { %2949 = vst.msk [vmem:[#allocation3 + $0xf8] sm:$0xff] %vm752_vm4, %v2885_v25  ;;  %v7879_v25 = vadd.f32 %v7815_v47, %v2022_v6 }
 0x47a   :  { %v3075_v39 = vpop.permute.xlu1 %3074  ;;  %8720 = vst [vmem:[#allocation18_spill] sm:$0xff] %v7879_v25 }
 0x47b   :  { %3140 = vst.msk [vmem:[#allocation3 + $0xf0] sm:$0xff] %vm945_vm5, %v3075_v39  ;;  %v3649_v34 = vpop.permute.xlu0 %3648  ;;  %v2163_v39 = vadd.f32 %v2162_v63, %v7870_v59 }
 0x47c   :  { %3715 = vst.msk [vmem:[#allocation3 + $0xe8] sm:$0xff] %vm1525_vm9, %v3649_v34  ;;  %v4311_v34 = vadd.f32 %v7873_v38, %v7867_v52 }
 0x47e   :  { %v3839_v58 = vpop.permute.xlu1 %3838 }
 0x47f   :  { %3906 = vst.msk [vmem:[#allocation3 + $0xe0] sm:$0xff] %vm1718_vm10, %v3839_v58  ;;  %v3077_v45 = vpop.permute.xlu0 %3076  ;;  %v5219_v58 = vpop.f32.mrf.mxu0 }
 0x480   :  { %3141 = vst.msk [vmem:[#allocation3 + $0xf8] sm:$0xff] %vm945_vm5, %v3077_v45  ;;  %v4139_v45 = vpop.f32.mrf.mxu1  ;;  %v7910_v30 = vadd.f32 %v5219_v58, %v7815_v47 }
 0x482   :  { %v3267_v9 = vpop.permute.xlu1 %3266  ;;  %8723 = vst [vmem:[#allocation21_spill] sm:$0xff] %v7910_v30 }
 0x483   :  { %3332 = vst.msk [vmem:[#allocation3 + $0xf0] sm:$0xff] %vm1138_vm6, %v3267_v9  ;;  %v3841_v10 = vpop.permute.xlu0 %3840  ;;  %v4312_v9 = vadd.f32 %v4311_v34, %v7876_v2 }
 0x484   :  { %3907 = vst.msk [vmem:[#allocation3 + $0xe8] sm:$0xff] %vm1718_vm10, %v3841_v10  ;;  %v5265_v10 = vpop.f32.mrf.mxu1 }
 0x485   :  { %v7918_v61 = vadd.f32 %v5265_v10, %v7863_v53 }
 0x486   :  { %v3269_v54 = vpop.permute.xlu1 %3268  ;;  %v3938_v35 = vld [vmem:[#allocation3 + $0xe0] sm:$0xff] }
 0x487   :  { %3333 = vst.msk [vmem:[#allocation3 + $0xf8] sm:$0xff] %vm1138_vm6, %v3269_v54  ;;  %5296 = vmatprep.mubr.msk.f32.mxu1 %vm1795_vm11, %v3938_v35  ;;  %v3459_v23 = vpop.permute.xlu0 %3458  ;;  %v2164_v54 = vadd.f32 %v2163_v39, %v7879_v25  ;;  %v7887_v35 = vadd.f32 %v5259_v51, %v7863_v53 }
 0x488   :  { %3524 = vst.msk [vmem:[#allocation3 + $0xf0] sm:$0xff] %vm1332_vm7, %v3459_v23  ;;  %v7890_v23 = vadd.f32 %v7863_v53, %v4139_v45 }
 0x48a   :  { %v3461_v3 = vpop.permute.xlu1 %3460 }
 0x48b   :  { %3525 = vst.msk [vmem:[#allocation3 + $0xf8] sm:$0xff] %vm1332_vm7, %v3461_v3  ;;  %v3651_v48 = vpop.permute.xlu0 %3650  ;;  %v3939_v7 = vld [vmem:[#allocation3 + $0xe8] sm:$0xff]  ;;  %v2032_v3 = vpop.f32.mrf.mxu0 }
 0x48c   :  { %3716 = vst.msk [vmem:[#allocation3 + $0xf0] sm:$0xff] %vm1525_vm9, %v3651_v48  ;;  %5297 = vmatmul.mubr.msk.f32.gmra.mxu1 %vm1795_vm11, %v3939_v7  ;;  %v7893_v48 = vadd.f32 %v5216_v12, %v7815_v47  ;;  %v4313_v7 = vadd.f32 %v4312_v9, %v7887_v35 }
 0x48e   :  { %v3653_v46 = vpop.permute.xlu1 %3652  ;;  %8721 = vst [vmem:[#allocation19_spill] sm:$0xff] %v7893_v48 }
 0x48f   :  { %3717 = vst.msk [vmem:[#allocation3 + $0xf8] sm:$0xff] %vm1525_vm9, %v3653_v46  ;;  %v3843_v17 = vpop.permute.xlu0 %3842  ;;  %v4149_v46 = vpop.f32.mrf.mxu1 }
 0x490   :  { %3908 = vst.msk [vmem:[#allocation3 + $0xf0] sm:$0xff] %vm1718_vm10, %v3843_v17  ;;  %v7897_v17 = vadd.f32 %v7815_v47, %v2032_v3  ;;  %v7905_v19 = vadd.f32 %v7863_v53, %v4149_v46 }
 0x491   :  { %v5268_v57 = vpop.f32.mrf.mxu1 }
 0x492   :  { %v3845_v56 = vpop.permute.xlu1 %3844  ;;  %8722 = vst [vmem:[#allocation20_spill] sm:$0xff] %v7897_v17  ;;  %v7930_v51 = vadd.f32 %v5268_v57, %v7863_v53 }
 0x493   :  { %3909 = vst.msk [vmem:[#allocation3 + $0xf8] sm:$0xff] %vm1718_vm10, %v3845_v56  ;;  %v2165_v56 = vadd.f32 %v2164_v54, %v7893_v48  ;;  %v4159_v41 = vpop.f32.mrf.mxu1 }
 0x494   :  { %v7921_v5 = vadd.f32 %v7863_v53, %v4159_v41 }
 0x495   :  { %v2166_v28 = vadd.f32 %v2165_v56, %v7897_v17  ;;  %v5271_v60 = vpop.f32.mrf.mxu1 }
 0x496   :  { %v7943_v45 = vadd.f32 %v5271_v60, %v7863_v53 }
 0x497   :  { %v3940_v8 = vld [vmem:[#allocation3 + $0xf0] sm:$0xff]  ;;  %v2167_v13 = vadd.f32 %v2166_v28, %v7910_v30  ;;  %v4169_v0 = vpop.f32.mrf.mxu1 }
 0x498   :  { %5299 = vmatprep.mubr.msk.f32.mxu1 %vm1795_vm11, %v3940_v8  ;;  %v4314_v8 = vadd.f32 %v4313_v7, %v7890_v23  ;;  %v7933_v32 = vadd.f32 %v7863_v53, %v4169_v0 }
 0x499   :  { %v5274_v22 = vpop.f32.mrf.mxu1 }
 0x49a   :  { %v3941_v29 = vld [vmem:[#allocation3 + $0xf8] sm:$0xff]  ;;  %v4315_v31 = vadd.f32 %v4314_v8, %v7902_v16  ;;  %v7958_v28 = vadd.f32 %v5274_v22, %v7863_v53 }
 0x49b   :  { %5300 = vmatmul.mubr.msk.f32.gmra.mxu1 %vm1795_vm11, %v3941_v29  ;;  %v5222_v29 = vpop.f32.mrf.mxu0  ;;  %v4179_v37 = vpop.f32.mrf.mxu1 }
 0x49c   :  { %v4316_v50 = vadd.f32 %v4315_v31, %v7905_v19  ;;  %v7927_v40 = vadd.f32 %v5222_v29, %v7815_v47  ;;  %v7946_v9 = vadd.f32 %v7863_v53, %v4179_v37 }
 0x49d   :  { %v2042_v4 = vpop.f32.mrf.mxu0 }
 0x49e   :  { %v7914_v18 = vadd.f32 %v7815_v47, %v2042_v4  ;;  %v4317_v62 = vadd.f32 %v4316_v50, %v7918_v61 }
 0x49f   :  { %v5225_v55 = vpop.f32.mrf.mxu0 }
 0x4a0   :  { %v2168_v20 = vadd.f32 %v2167_v13, %v7914_v18  ;;  %v4318_v27 = vadd.f32 %v4317_v62, %v7921_v5  ;;  %v7949_v54 = vadd.f32 %v5225_v55, %v7815_v47 }
 0x4a1   :  { %v2052_v33 = vpop.f32.mrf.mxu0 }
 0x4a2   :  { %v7936_v12 = vadd.f32 %v7815_v47, %v2052_v33  ;;  %v2169_v14 = vadd.f32 %v2168_v20, %v7927_v40  ;;  %v4319_v63 = vadd.f32 %v4318_v27, %v7930_v51 }
 0x4a3   :  { %v5228_v6 = vpop.f32.mrf.mxu0 }
 0x4a4   :  { %v4320_v39 = vadd.f32 %v4319_v63, %v7933_v32  ;;  %v5277_v34 = vpop.f32.mrf.mxu1  ;;  %v2170_v58 = vadd.f32 %v2169_v14, %v7936_v12  ;;  %v7966_v13 = vadd.f32 %v5228_v6, %v7815_v47 }
 0x4a5   :  { %v2062_v10 = vpop.f32.mrf.mxu0  ;;  %v7974_v27 = vadd.f32 %v5277_v34, %v7863_v53 }
 0x4a6   :  { %v4321_v3 = vadd.f32 %v4320_v39, %v7943_v45  ;;  %v4189_v7 = vpop.f32.mrf.mxu1  ;;  %v7953_v46 = vadd.f32 %v7815_v47, %v2062_v10  ;;  %v2171_v56 = vadd.f32 %v2170_v58, %v7949_v54 }
 0x4a7   :  { %v5231_v29 = vpop.f32.mrf.mxu0  ;;  %v7961_v31 = vadd.f32 %v7863_v53, %v4189_v7  ;;  %8725 = vst [vmem:[#allocation23_spill] sm:$0xff] %v7974_v27 }
 0x4a8   :  { %v4322_v8 = vadd.f32 %v4321_v3, %v7946_v9  ;;  %v2172_v4 = vadd.f32 %v2171_v56, %v7953_v46  ;;  %v7983_v10 = vadd.f32 %v5231_v29, %v7815_v47 }
 0x4a9   :  { %8724 = vst [vmem:[#allocation22_spill] sm:$0xff] %v7961_v31  ;;  %v2072_v50 = vpop.f32.mrf.mxu0 }
 0x4aa   :  { %v4323_v41 = vadd.f32 %v4322_v8, %v7958_v28  ;;  %v7970_v0 = vadd.f32 %v7815_v47, %v2072_v50  ;;  %v2173_v20 = vadd.f32 %v2172_v4, %v7966_v13 }
 0x4ab   :  { %v5234_v22 = vpop.f32.mrf.mxu0 }
 0x4ac   :  { %v4324_v55 = vadd.f32 %v4323_v41, %v7961_v31  ;;  %v2174_v6 = vadd.f32 %v2173_v20, %v7970_v0 }
 0x4ad   :  { %v2082_v39 = vpop.f32.mrf.mxu0 }
 0x4ae   :  { %v4325_v14 = vadd.f32 %v4324_v55, %v7974_v27  ;;  %v7992_v7 = vadd.f32 %v7815_v47, %v2082_v39  ;;  %v2175_v56 = vadd.f32 %v2174_v6, %v7983_v10 }
 0x4af   :  { %v5237_v4 = vpop.f32.mrf.mxu0 }
 0x4b0   :  { %v2176_v29 = vadd.f32 %v2175_v56, %v7992_v7 }
 0x4b1   :  { %v2092_v20 = vpop.f32.mrf.mxu0 }
 0x4bc   :  { %v5280_v57 = vpop.f32.mrf.mxu1 }
 0x4bd   :  { %v7986_v3 = vadd.f32 %v5280_v57, %v7863_v53 }
 0x4be   :  { %v4199_v60 = vpop.f32.mrf.mxu1 }
 0x4bf   :  { %v7977_v33 = vadd.f32 %v7863_v53, %v4199_v60  ;;  %8727 = vst [vmem:[#allocation25_spill] sm:$0xff] %v7986_v3 }
 0x4c1   :  { %8726 = vst [vmem:[#allocation24_spill] sm:$0xff] %v7977_v33  ;;  %v4326_v37 = vadd.f32 %v4325_v14, %v7977_v33  ;;  %v8005_v14 = vadd.f32 %v5234_v22, %v7815_v47 }
 0x4c3   :  { %v4327_v8 = vadd.f32 %v4326_v37, %v7986_v3  ;;  %8731 = vst [vmem:[#allocation29_spill] sm:$0xff] %v8005_v14  ;;  %v8009_v37 = vadd.f32 %v7815_v47, %v2092_v20  ;;  %v2177_v39 = vadd.f32 %v2176_v29, %v8005_v14  ;;  %v8022_v20 = vadd.f32 %v5237_v4, %v7815_v47 }
 0x4c5   :  { %8732 = vst [vmem:[#allocation30_spill] sm:$0xff] %v8009_v37  ;;  %v2178_v22 = vadd.f32 %v2177_v39, %v8009_v37  ;;  %8735 = vst [vmem:[#allocation33_spill] sm:$0xff] %v8022_v20 }
 0x4d4   :  { %v5283_v62 = vpop.f32.mrf.mxu1 }
 0x4d5   :  { %v7999_v57 = vadd.f32 %v5283_v62, %v7863_v53 }
 0x4d6   :  { %v4209_v63 = vpop.f32.mrf.mxu1 }
 0x4d7   :  { %v7989_v34 = vadd.f32 %v7863_v53, %v4209_v63  ;;  %8729 = vst [vmem:[#allocation27_spill] sm:$0xff] %v7999_v57 }
 0x4d9   :  { %8728 = vst [vmem:[#allocation26_spill] sm:$0xff] %v7989_v34  ;;  %v4328_v50 = vadd.f32 %v4327_v8, %v7989_v34  ;;  %v5240_v8 = vpop.f32.mrf.mxu0 }
 0x4db   :  { %v4329_v63 = vadd.f32 %v4328_v50, %v7999_v57  ;;  %v2102_v57 = vpop.f32.mrf.mxu0 }
 0x4ec   :  { %v5286_v58 = vpop.f32.mrf.mxu1 }
 0x4ed   :  { %v8014_v34 = vadd.f32 %v5286_v58, %v7863_v53  ;;  %v2179_v58 = vadd.f32 %v2178_v22, %v8022_v20 }
 0x4ee   :  { %v4219_v41 = vpop.f32.mrf.mxu1 }
 0x4ef   :  { %v8002_v55 = vadd.f32 %v7863_v53, %v4219_v41  ;;  %8733 = vst [vmem:[#allocation31_spill] sm:$0xff] %v8014_v34 }
 0x4f1   :  { %8730 = vst [vmem:[#allocation28_spill] sm:$0xff] %v8002_v55  ;;  %v4330_v56 = vadd.f32 %v4329_v63, %v8002_v55  ;;  %v8026_v55 = vadd.f32 %v7815_v47, %v2102_v57  ;;  %v8039_v57 = vadd.f32 %v5240_v8, %v7815_v47 }
 0x4f3   :  { %v4331_v50 = vadd.f32 %v4330_v56, %v8014_v34  ;;  %8736 = vst [vmem:[#allocation34_spill] sm:$0xff] %v8026_v55  ;;  %v5243_v56 = vpop.f32.mrf.mxu0  ;;  %v2180_v4 = vadd.f32 %v2179_v58, %v8026_v55  ;;  %8739 = vst [vmem:[#allocation37_spill] sm:$0xff] %v8039_v57 }
 0x504   :  { %v5289_v60 = vpop.f32.mrf.mxu1 }
 0x506   :  { %v4229_v6 = vpop.f32.mrf.mxu1 }
 0x507   :  { %v8017_v41 = vadd.f32 %v7863_v53, %v4229_v6  ;;  %v8030_v6 = vadd.f32 %v5289_v60, %v7863_v53 }
 0x509   :  { %8734 = vst [vmem:[#allocation32_spill] sm:$0xff] %v8017_v41  ;;  %v4332_v29 = vadd.f32 %v4331_v50, %v8017_v41  ;;  %8737 = vst [vmem:[#allocation35_spill] sm:$0xff] %v8030_v6  ;;  %v2112_v41 = vpop.f32.mrf.mxu0 }
 0x50b   :  { %v4333_v34 = vadd.f32 %v4332_v29, %v8030_v6  ;;  %v2181_v29 = vadd.f32 %v2180_v4, %v8039_v57 }
 0x51c   :  { %v5292_v62 = vpop.f32.mrf.mxu1 }
 0x51d   :  { %v8042_v22 = vadd.f32 %v5292_v62, %v7863_v53 }
 0x51e   :  { %v4239_v3 = vpop.f32.mrf.mxu1 }
 0x51f   :  { %v8033_v39 = vadd.f32 %v7863_v53, %v4239_v3  ;;  %8740 = vst [vmem:[#allocation38_spill] sm:$0xff] %v8042_v22  ;;  %v8048_v3 = vadd.f32 %v7815_v47, %v2112_v41 }
 0x521   :  { %8738 = vst [vmem:[#allocation36_spill] sm:$0xff] %v8033_v39  ;;  %v4334_v50 = vadd.f32 %v4333_v34, %v8033_v39  ;;  %8742 = vst [vmem:[#allocation40_spill] sm:$0xff] %v8048_v3  ;;  %v2182_v39 = vadd.f32 %v2181_v29, %v8048_v3 }
 0x523   :  { %v4335_v58 = vadd.f32 %v4334_v50, %v8042_v22 }
 0x534   :  { %v5295_v63 = vpop.f32.mrf.mxu1 }
 0x535   :  { %v8055_v8 = vadd.f32 %v5295_v63, %v7863_v53 }
 0x536   :  { %v4249_v37 = vpop.f32.mrf.mxu1 }
 0x537   :  { %v8045_v60 = vadd.f32 %v7863_v53, %v4249_v37  ;;  %8743 = vst [vmem:[#allocation10_spill] sm:$0xff] %v8055_v8  ;;  %v8061_v37 = vadd.f32 %v5243_v56, %v7815_v47 }
 0x539   :  { %8741 = vst [vmem:[#allocation39_spill] sm:$0xff] %v8045_v60  ;;  %v4336_v34 = vadd.f32 %v4335_v58, %v8045_v60  ;;  %8745 = vst [vmem:[#allocation12_spill] sm:$0xff] %v8061_v37  ;;  %v2183_v4 = vadd.f32 %v2182_v39, %v8061_v37 }
 0x53b   :  { %v4337_v41 = vadd.f32 %v4336_v34, %v8055_v8  ;;  %v2184_v60 = vrot.slane %v2183_v4, 4 }
 0x53d   :  { %v2185_v34 = vadd.f32 %v2184_v60, %v2183_v4 }
 0x54c   :  { %v5298_v33 = vpop.f32.mrf.mxu1 }
 0x54d   :  { %v8067_v58 = vadd.f32 %v5298_v33, %v7863_v53 }
 0x54e   :  { %v4259_v6 = vpop.f32.mrf.mxu1 }
 0x54f   :  { %v8058_v62 = vadd.f32 %v7863_v53, %v4259_v6  ;;  %8746 = vst [vmem:[#allocation41_spill] sm:$0xff] %v8067_v58 }
 0x551   :  { %8744 = vst [vmem:[#allocation11_spill] sm:$0xff] %v8058_v62  ;;  %v4338_v50 = vadd.f32 %v4337_v41, %v8058_v62  ;;  %v2186_v62 = vrot.slane %v2185_v34, 2 }
 0x553   :  { %v4339_v6 = vadd.f32 %v4338_v50, %v8067_v58  ;;  %v2187_v37 = vadd.f32 %v2186_v62, %v2185_v34 }
 0x555   :  { %v2188_v55 = vrot.slane %v2187_v37, 1 }
 0x557   :  { %v2189_v20 = vadd.f32 %v2188_v55, %v2187_v37 }
 0x55b   :  { %v5301_v22 = vpop.f32.mrf.mxu1 }
 0x55c   :  { %v8074_v47 = vadd.f32 %v5301_v22, %v7863_v53 }
 0x55d   :  { %v4269_v29 = vpop.f32.mrf.mxu1 }
 0x55e   :  { %v8070_v63 = vadd.f32 %v7863_v53, %v4269_v29  ;;  %8747 = vst [vmem:[#allocation42_spill] sm:$0xff] %v8074_v47 }
 0x560   :  { %v4340_v56 = vadd.f32 %v4339_v6, %v8070_v63 }
 0x562   :  { %v4341_v39 = vadd.f32 %v4340_v56, %v8074_v47 }
 0x564   :  { %v4342_v41 = vrot.slane %v4341_v39, 4 }
 0x566   :  { %v4343_v8 = vadd.f32 %v4342_v41, %v4341_v39 }
 0x568   :  { %v4344_v33 = vrot.slane %v4343_v8, 2 }
 0x56a   :  { %v4345_v3 = vadd.f32 %v4344_v33, %v4343_v8 }
 0x56c   :  { %v4346_v57 = vrot.slane %v4345_v3, 1 }
 0x56e   :  { %v4347_v29 = vadd.f32 %v4346_v57, %v4345_v3 }
 0x570   :  { %v4348_v14 = vadd.f32 %v4347_v29, %v2189_v20 }
 0x572   :  { %v8078_v50 = vmul.f32 0.001953125, %v4348_v14 }
 0x574   :  { %v4383_v53 = vsub.f32 %v7818_v15, %v8078_v50  ;;  %v4384_v22 = vsub.f32 %v7821_v26, %v8078_v50  ;;  %v4385_v60 = vsub.f32 %v7824_v24, %v8078_v50  ;;  %v4386_v8 = vsub.f32 %v7830_v11, %v8078_v50 }
 0x575   :  { %v4387_v55 = vsub.f32 %v7833_v42, %v8078_v50  ;;  %v4388_v57 = vsub.f32 %v7838_v44, %v8078_v50  ;;  %v4389_v37 = vsub.f32 %v7841_v36, %v8078_v50  ;;  %v4390_v39 = vsub.f32 %v7846_v1, %v8078_v50 }
 0x576   :  { %v4415_v4 = vmul.f32 %v4383_v53, %v4383_v53  ;;  %v4416_v6 = vmul.f32 %v4384_v22, %v4384_v22  ;;  %v4417_v20 = vmul.f32 %v4385_v60, %v4385_v60  ;;  %v4418_v3 = vmul.f32 %v4386_v8, %v4386_v8 }
 0x577   :  { %v4419_v56 = vmul.f32 %v4387_v55, %v4387_v55  ;;  %v4420_v41 = vmul.f32 %v4388_v57, %v4388_v57  ;;  %v4391_v29 = vsub.f32 %v7849_v21, %v8078_v50  ;;  %v4421_v53 = vmul.f32 %v4389_v37, %v4389_v37 }
 0x578   :  { %v4447_v14 = vadd.f32 %v4416_v6, %v4415_v4  ;;  %v4392_v60 = vsub.f32 %v7854_v43, %v8078_v50  ;;  %v4422_v4 = vmul.f32 %v4390_v39, %v4390_v39  ;;  %v4517_v8 = vsub.f32 %v7867_v52, %v8078_v50 }
 0x579   :  { %v4518_v55 = vsub.f32 %v7873_v38, %v8078_v50 }
 0x57a   :  { %v4448_v62 = vadd.f32 %v4447_v14, %v4417_v20  ;;  %v4393_v20 = vsub.f32 %v7857_v49, %v8078_v50  ;;  %v4423_v14 = vmul.f32 %v4391_v29, %v4391_v29  ;;  %v4396_v29 = vsub.f32 %v7893_v48, %v8078_v50 }
 0x57b   :  { %v4550_v39 = vmul.f32 %v4518_v55, %v4518_v55  ;;  %v4398_v48 = vsub.f32 %v7910_v30, %v8078_v50 }
 0x57c   :  { %v4449_v34 = vadd.f32 %v4448_v62, %v4418_v3  ;;  %v4394_v3 = vsub.f32 %v7870_v59, %v8078_v50  ;;  %v4424_v62 = vmul.f32 %v4392_v60, %v4392_v60  ;;  %v4521_v60 = vsub.f32 %v7890_v23, %v8078_v50 }
 0x57e   :  { %v4450_v33 = vadd.f32 %v4449_v34, %v4419_v56  ;;  %v4519_v56 = vsub.f32 %v7876_v2, %v8078_v50  ;;  %v4549_v34 = vmul.f32 %v4517_v8, %v4517_v8  ;;  %v4397_v8 = vsub.f32 %v7897_v17, %v8078_v50 }
 0x580   :  { %v4451_v22 = vadd.f32 %v4450_v33, %v4420_v41  ;;  %v4395_v41 = vsub.f32 %v7879_v25, %v8078_v50  ;;  %v4425_v33 = vmul.f32 %v4393_v20, %v4393_v20  ;;  %v4522_v20 = vsub.f32 %v7902_v16, %v8078_v50 }
 0x582   :  { %v4452_v6 = vadd.f32 %v4451_v22, %v4421_v53  ;;  %v4520_v22 = vsub.f32 %v7887_v35, %v8078_v50  ;;  %v4427_v55 = vmul.f32 %v4395_v41, %v4395_v41  ;;  %v4429_v41 = vmul.f32 %v4397_v8, %v4397_v8 }
 0x584   :  { %v4453_v57 = vadd.f32 %v4452_v6, %v4422_v4  ;;  %v4426_v4 = vmul.f32 %v4394_v3, %v4394_v3  ;;  %v4428_v3 = vmul.f32 %v4396_v29, %v4396_v29  ;;  %v4430_v29 = vmul.f32 %v4398_v48, %v4398_v48 }
 0x586   :  { %v4454_v37 = vadd.f32 %v4453_v57, %v4423_v14  ;;  %v4551_v14 = vmul.f32 %v4519_v56, %v4519_v56  ;;  %v4581_v57 = vadd.f32 %v4550_v39, %v4549_v34  ;;  %v4553_v56 = vmul.f32 %v4521_v60, %v4521_v60 }
 0x587   :  { %v4399_v39 = vsub.f32 %v7914_v18, %v8078_v50 }
 0x588   :  { %v4455_v53 = vadd.f32 %v4454_v37, %v4424_v62  ;;  %v4552_v62 = vmul.f32 %v4520_v22, %v4520_v22  ;;  %v4582_v37 = vadd.f32 %v4581_v57, %v4551_v14  ;;  %v4554_v22 = vmul.f32 %v4522_v20, %v4522_v20 }
 0x589   :  { %v4400_v57 = vsub.f32 %v7927_v40, %v8078_v50  ;;  %v4431_v8 = vmul.f32 %v4399_v39, %v4399_v39 }
 0x58a   :  { %v4456_v6 = vadd.f32 %v4455_v53, %v4425_v33  ;;  %v4523_v53 = vsub.f32 %v7905_v19, %v8078_v50  ;;  %v4583_v34 = vadd.f32 %v4582_v37, %v4552_v62  ;;  %v4401_v37 = vsub.f32 %v7936_v12, %v8078_v50 }
 0x58b   :  { %v4432_v48 = vmul.f32 %v4400_v57, %v4400_v57 }
 0x58c   :  { %v4457_v25 = vadd.f32 %v4456_v6, %v4426_v4  ;;  %v4524_v6 = vsub.f32 %v7918_v61, %v8078_v50  ;;  %v4584_v14 = vadd.f32 %v4583_v34, %v4553_v56  ;;  %v4555_v60 = vmul.f32 %v4523_v53, %v4523_v53 }
 0x58d   :  { %v4402_v34 = vsub.f32 %v7949_v54, %v8078_v50  ;;  %v4433_v39 = vmul.f32 %v4401_v37, %v4401_v37 }
 0x58e   :  { %v4458_v33 = vadd.f32 %v4457_v25, %v4427_v55  ;;  %v4525_v55 = vsub.f32 %v7921_v5, %v8078_v50  ;;  %v4585_v62 = vadd.f32 %v4584_v14, %v4554_v22  ;;  %v4556_v20 = vmul.f32 %v4524_v6, %v4524_v6 }
 0x58f   :  { %v4403_v14 = vsub.f32 %v7953_v46, %v8078_v50  ;;  %v4434_v57 = vmul.f32 %v4402_v34, %v4402_v34 }
 0x590   :  { %v4459_v4 = vadd.f32 %v4458_v33, %v4428_v3  ;;  %v4526_v33 = vsub.f32 %v7930_v51, %v8078_v50  ;;  %v4586_v56 = vadd.f32 %v4585_v62, %v4555_v60  ;;  %v4557_v53 = vmul.f32 %v4525_v55, %v4525_v55 }
 0x591   :  { %v4404_v62 = vsub.f32 %v7966_v13, %v8078_v50  ;;  %v4435_v37 = vmul.f32 %v4403_v14, %v4403_v14 }
 0x592   :  { %v4460_v25 = vadd.f32 %v4459_v4, %v4429_v41  ;;  %v4527_v4 = vsub.f32 %v7933_v32, %v8078_v50  ;;  %v4587_v22 = vadd.f32 %v4586_v56, %v4556_v20  ;;  %v4558_v6 = vmul.f32 %v4526_v33, %v4526_v33 }
 0x593   :  { %v4405_v56 = vsub.f32 %v7970_v0, %v8078_v50  ;;  %v4436_v34 = vmul.f32 %v4404_v62, %v4404_v62 }
 0x594   :  { %v4461_v3 = vadd.f32 %v4460_v25, %v4430_v29  ;;  %v4528_v25 = vsub.f32 %v7943_v45, %v8078_v50  ;;  %v4588_v60 = vadd.f32 %v4587_v22, %v4557_v53  ;;  %v4559_v55 = vmul.f32 %v4527_v4, %v4527_v4 }
 0x595   :  { %v4406_v22 = vsub.f32 %v7983_v10, %v8078_v50  ;;  %v4437_v14 = vmul.f32 %v4405_v56, %v4405_v56 }
 0x596   :  { %v4462_v41 = vadd.f32 %v4461_v3, %v4431_v8  ;;  %v4529_v3 = vsub.f32 %v7946_v9, %v8078_v50  ;;  %v4589_v20 = vadd.f32 %v4588_v60, %v4558_v6  ;;  %v4560_v33 = vmul.f32 %v4528_v25, %v4528_v25 }
 0x597   :  { %v4407_v60 = vsub.f32 %v7992_v7, %v8078_v50  ;;  %v4438_v62 = vmul.f32 %v4406_v22, %v4406_v22 }
 0x598   :  { %v4463_v29 = vadd.f32 %v4462_v41, %v4432_v48  ;;  %v4530_v41 = vsub.f32 %v7958_v28, %v8078_v50  ;;  %v4590_v53 = vadd.f32 %v4589_v20, %v4559_v55  ;;  %v4561_v4 = vmul.f32 %v4529_v3, %v4529_v3  ;;  %v8748_v20 = vld [vmem:[#allocation29_spill] sm:$0xff] }
 0x599   :  { %v4408_v30 = vsub.f32 %v8748_v20, %v8078_v50  ;;  %v4439_v56 = vmul.f32 %v4407_v60, %v4407_v60 }
 0x59a   :  { %v4464_v8 = vadd.f32 %v4463_v29, %v4433_v39  ;;  %v4531_v29 = vsub.f32 %v7961_v31, %v8078_v50  ;;  %v4591_v6 = vadd.f32 %v4590_v53, %v4560_v33  ;;  %v4562_v25 = vmul.f32 %v4530_v41, %v4530_v41  ;;  %v8750_v53 = vld [vmem:[#allocation30_spill] sm:$0xff] }
 0x59b   :  { %v4409_v59 = vsub.f32 %v8750_v53, %v8078_v50  ;;  %v4440_v22 = vmul.f32 %v4408_v30, %v4408_v30 }
 0x59c   :  { %v4465_v48 = vadd.f32 %v4464_v8, %v4434_v57  ;;  %v4532_v8 = vsub.f32 %v7974_v27, %v8078_v50  ;;  %v4592_v55 = vadd.f32 %v4591_v6, %v4561_v4  ;;  %v4563_v3 = vmul.f32 %v4531_v29, %v4531_v29  ;;  %v8752_v6 = vld [vmem:[#allocation33_spill] sm:$0xff] }
 0x59d   :  { %v4410_v20 = vsub.f32 %v8752_v6, %v8078_v50  ;;  %v4441_v60 = vmul.f32 %v4409_v59, %v4409_v59  ;;  %v8758_v59 = vld [vmem:[#allocation31_spill] sm:$0xff] }
 0x59e   :  { %v4466_v39 = vadd.f32 %v4465_v48, %v4435_v37  ;;  %v8749_v48 = vld [vmem:[#allocation24_spill] sm:$0xff]  ;;  %v4593_v33 = vadd.f32 %v4592_v55, %v4562_v25  ;;  %v4564_v41 = vmul.f32 %v4532_v8, %v4532_v8  ;;  %v8754_v55 = vld [vmem:[#allocation34_spill] sm:$0xff] }
 0x59f   :  { %v4533_v17 = vsub.f32 %v8749_v48, %v8078_v50  ;;  %v4411_v53 = vsub.f32 %v8754_v55, %v8078_v50  ;;  %v4442_v30 = vmul.f32 %v4410_v20, %v4410_v20  ;;  %v8760_v20 = vld [vmem:[#allocation32_spill] sm:$0xff] }
 0x5a0   :  { %v4467_v57 = vadd.f32 %v4466_v39, %v4436_v34  ;;  %v8751_v39 = vld [vmem:[#allocation25_spill] sm:$0xff]  ;;  %v4594_v4 = vadd.f32 %v4593_v33, %v4563_v3 }
 0x5a1   :  { %v4534_v49 = vsub.f32 %v8751_v39, %v8078_v50  ;;  %v4565_v29 = vmul.f32 %v4533_v17, %v4533_v17  ;;  %v8756_v33 = vld [vmem:[#allocation37_spill] sm:$0xff] }
 0x5a2   :  { %v4468_v37 = vadd.f32 %v4467_v57, %v4437_v14  ;;  %v8753_v57 = vld [vmem:[#allocation26_spill] sm:$0xff]  ;;  %v4595_v25 = vadd.f32 %v4594_v4, %v4564_v41  ;;  %v4412_v6 = vsub.f32 %v8756_v33, %v8078_v50  ;;  %v4443_v4 = vmul.f32 %v4411_v53, %v4411_v53 }
 0x5a3   :  { %v4535_v43 = vsub.f32 %v8753_v57, %v8078_v50  ;;  %v4566_v8 = vmul.f32 %v4534_v49, %v4534_v49  ;;  %v8759_v49 = vld [vmem:[#allocation40_spill] sm:$0xff] }
 0x5a4   :  { %v4469_v34 = vadd.f32 %v4468_v37, %v4438_v62  ;;  %v8755_v37 = vld [vmem:[#allocation27_spill] sm:$0xff]  ;;  %v4596_v3 = vadd.f32 %v4595_v25, %v4565_v29  ;;  %v4413_v29 = vsub.f32 %v8759_v49, %v8078_v50  ;;  %v4444_v25 = vmul.f32 %v4412_v6, %v4412_v6  ;;  %v8764_v49 = vld [vmem:[#allocation38_spill] sm:$0xff] }
 0x5a5   :  { %v4536_v27 = vsub.f32 %v8755_v37, %v8078_v50  ;;  %v4567_v17 = vmul.f32 %v4535_v43, %v4535_v43  ;;  %v8761_v43 = vld [vmem:[#allocation35_spill] sm:$0xff] }
 0x5a6   :  { %v4470_v14 = vadd.f32 %v4469_v34, %v4439_v56  ;;  %v8757_v34 = vld [vmem:[#allocation28_spill] sm:$0xff]  ;;  %v4597_v41 = vadd.f32 %v4596_v3, %v4566_v8  ;;  %v4540_v53 = vsub.f32 %v8761_v43, %v8078_v50 }
 0x5a7   :  { %v4537_v31 = vsub.f32 %v8757_v34, %v8078_v50 }
 0x5a8   :  { %v4471_v62 = vadd.f32 %v4470_v14, %v4440_v22  ;;  %v4538_v22 = vsub.f32 %v8758_v59, %v8078_v50  ;;  %v4568_v14 = vmul.f32 %v4536_v27, %v4536_v27  ;;  %v4598_v55 = vadd.f32 %v4597_v41, %v4567_v17  ;;  %v8763_v17 = vld [vmem:[#allocation36_spill] sm:$0xff] }
 0x5a9   :  { %v4541_v41 = vsub.f32 %v8763_v17, %v8078_v50 }
 0x5aa   :  { %v4472_v56 = vadd.f32 %v4471_v62, %v4441_v60  ;;  %v4539_v60 = vsub.f32 %v8760_v20, %v8078_v50  ;;  %v4569_v62 = vmul.f32 %v4537_v31, %v4537_v31  ;;  %v4599_v33 = vadd.f32 %v4598_v55, %v4568_v14 }
 0x5ab   :  { %v4570_v8 = vmul.f32 %v4538_v22, %v4538_v22  ;;  %v4542_v31 = vsub.f32 %v8764_v49, %v8078_v50  ;;  %v4572_v55 = vmul.f32 %v4540_v53, %v4540_v53  ;;  %v4546_v53 = vsub.f32 %v8067_v58, %v8078_v50 }
 0x5ac   :  { %v4473_v57 = vadd.f32 %v4472_v56, %v4442_v30  ;;  %v4600_v3 = vadd.f32 %v4599_v33, %v4569_v62  ;;  %v8762_v30 = vld [vmem:[#allocation12_spill] sm:$0xff]  ;;  %v4445_v56 = vmul.f32 %v4413_v29, %v4413_v29  ;;  %v4571_v6 = vmul.f32 %v4539_v60, %v4539_v60  ;;  %v8766_v29 = vld [vmem:[#allocation10_spill] sm:$0xff]  ;;  %v8767_v60 = vld [vmem:[#allocation11_spill] sm:$0xff] }
 0x5ad   :  { %v4414_v27 = vsub.f32 %v8762_v30, %v8078_v50  ;;  %v4573_v33 = vmul.f32 %v4541_v41, %v4541_v41  ;;  %v4544_v30 = vsub.f32 %v8766_v29, %v8078_v50  ;;  %v4574_v20 = vmul.f32 %v4542_v31, %v4542_v31 }
 0x5ae   :  { %v4474_v37 = vadd.f32 %v4473_v57, %v4443_v4  ;;  %v4601_v57 = vadd.f32 %v4600_v3, %v4570_v8  ;;  %v4547_v41 = vsub.f32 %v8070_v63, %v8078_v50  ;;  %v4548_v31 = vsub.f32 %v8074_v47, %v8078_v50 }
 0x5af   :  { %v4446_v14 = vmul.f32 %v4414_v27, %v4414_v27  ;;  %v4576_v27 = vmul.f32 %v4544_v30, %v4544_v30 }
 0x5b0   :  { %v4475_v34 = vadd.f32 %v4474_v37, %v4444_v25  ;;  %v4602_v37 = vadd.f32 %v4601_v57, %v4571_v6  ;;  %v8765_v25 = vld [vmem:[#allocation39_spill] sm:$0xff] }
 0x5b1   :  { %v4543_v22 = vsub.f32 %v8765_v25, %v8078_v50 }
 0x5b2   :  { %v4476_v4 = vadd.f32 %v4475_v34, %v4445_v56  ;;  %v4603_v62 = vadd.f32 %v4602_v37, %v4572_v55  ;;  %v4545_v34 = vsub.f32 %v8767_v60, %v8078_v50  ;;  %v4578_v37 = vmul.f32 %v4546_v53, %v4546_v53 }
 0x5b3   :  { %v4575_v8 = vmul.f32 %v4543_v22, %v4543_v22 }
 0x5b4   :  { %v4477_v43 = vadd.f32 %v4476_v4, %v4446_v14  ;;  %v4604_v17 = vadd.f32 %v4603_v62, %v4573_v33  ;;  %v4577_v57 = vmul.f32 %v4545_v34, %v4545_v34  ;;  %v4579_v33 = vmul.f32 %v4547_v41, %v4547_v41  ;;  %v4622_v41 = vld [vmem:[%s8541_s3] sm:$0x1]  ;;  %s5346_s3 = smov [#allocation5]  }
 0x5b6   :  { %v4605_v3 = vadd.f32 %v4604_v17, %v4574_v20  ;;  %v4478_v56 = vrot.slane %v4477_v43, 4  ;;  %v4580_v17 = vmul.f32 %v4548_v31, %v4548_v31 }
 0x5b8   :  { %v4606_v6 = vadd.f32 %v4605_v3, %v4575_v8  ;;  %v4479_v55 = vadd.f32 %v4478_v56, %v4477_v43 }
 0x5ba   :  { %v4607_v4 = vadd.f32 %v4606_v6, %v4576_v27  ;;  %v4480_v20 = vrot.slane %v4479_v55, 2 }
 0x5bc   :  { %v4608_v14 = vadd.f32 %v4607_v4, %v4577_v57  ;;  %v4481_v58 = vadd.f32 %v4480_v20, %v4479_v55  ;;  %v4628_v57 = vlaneseq }
 0x5be   :  { %v4609_v22 = vadd.f32 %v4608_v14, %v4578_v37  ;;  %v4482_v3 = vrot.slane %v4481_v58, 1  ;;  %v4629_v55 = vshrl.u32 %v4628_v57, 7 }
 0x5c0   :  { %v4610_v62 = vadd.f32 %v4609_v22, %v4579_v33  ;;  %v4483_v34 = vadd.f32 %v4482_v3, %v4481_v58  ;;  %v4624_v58 = vld [vmem:[%s8542_s4] sm:$0x1]  ;;  %s5001_s4 = sshll.u32 %s5346_s3, 4  ;;  %s5002_s4 = int_to_ptr.vmem [resolvable:$true] %s5001_s4 }
 0x5c1   :  { %s5315_s27 = scalar_lea.vmem %s5002_s4, 512  ;;  %p5320_p1 = scmp.lt.s32.totalorder %s5002_s4, %s5002_s4 }
 0x5c2   :  { %v4611_v60 = vadd.f32 %v4610_v62, %v4580_v17  ;;  %p5316_p0 = scmp.ne.s32.totalorder %s5002_s4, %s5315_s27  ;;  %p5321_p2 = scmp.lt.s32.totalorder %s5315_s27, %s5315_s27 }
 0x5c4   :  { %v4612_v30 = vrot.slane %v4611_v60, 4  ;;  %p5322_p3 = por %p5321_p2, %p5320_p1 }
 0x5c6   :  { %v4613_v8 = vadd.f32 %v4612_v30, %v4611_v60  ;;  %p5323_p4 = pnand %p5322_p3, %p5316_p0 }
 0x5c8   :  { %v4614_v29 = vrot.slane %v4613_v8, 2 }
 0x5ca   :  { %v4615_v25 = vadd.f32 %v4614_v29, %v4613_v8  ;;  %v4630_v29 = vsub.s32 0, %v4629_v55  ;;  %v8769_v55 = vld [vmem:[#allocation27_spill] sm:$0xff] }
 0x5cc   :  { %v4616_v27 = vrot.slane %v4615_v25, 1 }
 0x5ce   :  { %v4617_v43 = vadd.f32 %v4616_v27, %v4615_v25 }
 0x5d0   :  { %v4618_v56 = vadd.f32 %v4617_v43, %v4483_v34 }
 0x5d2   :  { %v4619_v6 = vmul.f32 0.001953125, %v4618_v56 }
 0x5d4   :  { %v4620_v47 = vadd.f32 1e-05, %v4619_v6 }
 0x5d6   :  { %5313 = vrsqrt.f32 %v4620_v47 }
 0x5e3   :  { %v5314_v53 = vpop.eup %5313 }
 0x5e4   :  { %v4623_v4 = vmul.f32 %v5314_v53, %v4622_v41 }
 0x5e6   :  { %v4625_v60 = vmul.f32 %v4623_v4, %v8078_v50  ;;  %v8215_v31 = vrot.slane %v4623_v4, %v4630_v29 }
 0x5e8   :  { %v4626_v25 = vsub.f32 %v4624_v58, %v4625_v60  ;;  %v4633_v47 = vmul.f32 %v8215_v31, %v7818_v15  ;;  %v4649_v14 = vmul.f32 %v8215_v31, %v7914_v18  ;;  %v4634_v33 = vmul.f32 %v8215_v31, %v7821_v26 }
 0x5e9   :  { %v4650_v50 = vmul.f32 %v8215_v31, %v7927_v40  ;;  %v8233_v15 = vmul.f32 %v8215_v31, %v8070_v63  ;;  %v4635_v26 = vmul.f32 %v8215_v31, %v7824_v24  ;;  %v4636_v18 = vmul.f32 %v8215_v31, %v7830_v11 }
 0x5ea   :  { %v8217_v37 = vrot.slane %v4626_v25, %v4630_v29  ;;  %v4637_v40 = vmul.f32 %v8215_v31, %v7833_v42  ;;  %v4638_v3 = vmul.f32 %v8215_v31, %v7838_v44  ;;  %v8245_v34 = vmul.f32 %v8215_v31, %v7841_v36  ;;  %v8770_v25 = vld [vmem:[#allocation28_spill] sm:$0xff] }
 0x5eb   :  { %v4651_v63 = vmul.f32 %v8215_v31, %v7936_v12  ;;  %v8251_v24 = vmul.f32 %v8215_v31, %v7846_v1  ;;  %v8255_v11 = vmul.f32 %v8215_v31, %v7849_v21  ;;  %v4652_v42 = vmul.f32 %v8215_v31, %v7949_v54 }
 0x5ec   :  { %v4687_v22 = vadd.f32 %v8217_v37, %v4649_v14  ;;  %v4671_v20 = vadd.f32 %v8217_v37, %v4633_v47  ;;  %v4688_v30 = vadd.f32 %v8217_v37, %v4650_v50  ;;  %v4672_v8 = vadd.f32 %v8217_v37, %v4634_v33  ;;  %v8771_v14 = vld [vmem:[#allocation32_spill] sm:$0xff] }
 0x5ed   :  { %v4653_v44 = vmul.f32 %v8215_v31, %v7953_v46  ;;  %v4689_v12 = vadd.f32 %v8217_v37, %v4651_v63  ;;  %v4673_v43 = vadd.f32 %v8217_v37, %v4635_v26  ;;  %v4654_v1 = vmul.f32 %v8215_v31, %v7966_v13 }
 0x5ee   :  { %v4719_v17 = vmax.f32 %v4687_v22, 0.0  ;;  %v4703_v62 = vmax.f32 %v4671_v20, 0.0  ;;  %v4720_v36 = vmax.f32 %v4688_v30, 0.0  ;;  %v4704_v27 = vmax.f32 %v4672_v8, 0.0 }
 0x5ef   :  { %v4655_v56 = vmul.f32 %v8215_v31, %v7970_v0  ;;  %v8269_v21 = vmul.f32 %v8215_v31, %v7983_v10  ;;  %v8273_v54 = vmul.f32 %v8215_v31, %v7992_v7  ;;  %v4833_v46 = vmul.f32 %v8215_v31, %v7867_v52 }
 0x5f0   :  { %4767 = vxpose.xlu1.b32.start [1/16] (narrow) %v4719_v17, 8  ;;  %4735 = vxpose.xlu0.b32.start [1/16] (narrow) %v4703_v62, 8  ;;  %v4834_v6 = vmul.f32 %v8215_v31, %v7873_v38  ;;  %v4835_v13 = vmul.f32 %v8215_v31, %v7876_v2  ;;  %v4836_v0 = vmul.f32 %v8215_v31, %v7887_v35  ;;  %v4721_v53 = vmax.f32 %v4689_v12, 0.0 }
 0x5f1   :  { %v4837_v10 = vmul.f32 %v8215_v31, %v7890_v23  ;;  %v4838_v7 = vmul.f32 %v8215_v31, %v7902_v16  ;;  %v4839_v52 = vmul.f32 %v8215_v31, %v7905_v19  ;;  %v4705_v41 = vmax.f32 %v4673_v43, 0.0 }
 0x5f2   :  { %v4690_v38 = vadd.f32 %v8217_v37, %v4652_v42  ;;  %v4674_v2 = vadd.f32 %v8217_v37, %v4636_v18  ;;  %v4840_v57 = vmul.f32 %v8215_v31, %v7918_v61  ;;  %v4841_v35 = vmul.f32 %v8215_v31, %v7921_v5  ;;  %v8773_v42 = vld [vmem:[#allocation36_spill] sm:$0xff] }
 0x5f3   :  { %v4842_v23 = vmul.f32 %v8215_v31, %v7930_v51  ;;  %v4843_v16 = vmul.f32 %v8215_v31, %v7933_v32  ;;  %v8301_v19 = vmul.f32 %v8215_v31, %v7943_v45  ;;  %v8305_v4 = vmul.f32 %v8215_v31, %v7946_v9  ;;  %v8768_v32 = vld [vmem:[#allocation26_spill] sm:$0xff] }
 0x5f4   :  { %4768 = vxpose.xlu1.b32.cont [2/16] (narrow) %v4720_v36, 8  ;;  %4736 = vxpose.xlu0.b32.cont [2/16] (narrow) %v4704_v27, 8  ;;  %v8309_v61 = vmul.f32 %v8215_v31, %v7958_v28  ;;  %v4849_v5 = vmul.f32 %v8215_v31, %v8749_v48  ;;  %v4850_v51 = vmul.f32 %v8215_v31, %v8751_v39  ;;  %v4722_v9 = vmax.f32 %v4690_v38, 0.0  ;;  %v8775_v38 = vld [vmem:[#allocation10_spill] sm:$0xff] }
 0x5f5   :  { %v4851_v45 = vmul.f32 %v8215_v31, %v8768_v32  ;;  %v4852_v60 = vmul.f32 %v8215_v31, %v8769_v55  ;;  %v4706_v58 = vmax.f32 %v4674_v2, 0.0  ;;  %v4691_v29 = vadd.f32 %v8217_v37, %v4653_v44  ;;  %v8776_v2 = vld [vmem:[#allocation11_spill] sm:$0xff] }
 0x5f6   :  { %v4675_v28 = vadd.f32 %v8217_v37, %v4637_v40  ;;  %v4853_v47 = vmul.f32 %v8215_v31, %v8770_v25  ;;  %v4854_v48 = vmul.f32 %v8215_v31, %v8758_v59  ;;  %v4855_v39 = vmul.f32 %v8215_v31, %v8771_v14 }
 0x5f7   :  { %v4692_v33 = vadd.f32 %v8217_v37, %v4654_v1  ;;  %v4676_v50 = vadd.f32 %v8217_v37, %v4638_v3  ;;  %v8330_v22 = vadd.f32 %v4849_v5, %v8217_v37  ;;  %v8333_v20 = vadd.f32 %v4833_v46, %v8217_v37  ;;  %v8772_v3 = vld [vmem:[#allocation35_spill] sm:$0xff] }
 0x5f8   :  { %4769 = vxpose.xlu1.b32.cont [3/16] (narrow) %v4721_v53, 8  ;;  %4737 = vxpose.xlu0.b32.cont [3/16] (narrow) %v4705_v41, 8  ;;  %v8336_v17 = vadd.f32 %v4850_v51, %v8217_v37  ;;  %v8339_v59 = vadd.f32 %v4834_v6, %v8217_v37  ;;  %v8342_v62 = vadd.f32 %v4851_v45, %v8217_v37  ;;  %v4723_v8 = vmax.f32 %v4691_v29, 0.0  ;;  %v8774_v53 = vld [vmem:[#allocation39_spill] sm:$0xff]  ;;  %v8777_v29 = vld [vmem:[#allocation22_spill] sm:$0xff] }
 0x5f9   :  { %v8345_v30 = vadd.f32 %v4835_v13, %v8217_v37  ;;  %v4707_v26 = vmax.f32 %v4675_v28, 0.0  ;;  %v8348_v18 = vadd.f32 %v4852_v60, %v8217_v37  ;;  %v8351_v40 = vadd.f32 %v4836_v0, %v8217_v37 }
 0x5fa   :  { %v4856_v63 = vmul.f32 %v8215_v31, %v8772_v3  ;;  %v4857_v44 = vmul.f32 %v8215_v31, %v8773_v42  ;;  %v4858_v36 = vmul.f32 %v8215_v31, %v8764_v49  ;;  %v4693_v27 = vadd.f32 %v8217_v37, %v4655_v56 }
 0x5fb   :  { %v4677_v12 = vadd.f32 %v8217_v37, %v8245_v34  ;;  %v8363_v43 = vadd.f32 %v4853_v47, %v8217_v37  ;;  %v8366_v1 = vadd.f32 %v4837_v10, %v8217_v37  ;;  %v8369_v46 = vadd.f32 %v4854_v48, %v8217_v37  ;;  %v8779_v47 = vld [vmem:[#allocation41_spill] sm:$0xff] }
 0x5fc   :  { %4770 = vxpose.xlu1.b32.cont [4/16] (narrow) %v4722_v9, 8  ;;  %4738 = vxpose.xlu0.b32.cont [4/16] (narrow) %v4706_v58, 8  ;;  %v8372_v6 = vadd.f32 %v4838_v7, %v8217_v37  ;;  %v8375_v49 = vadd.f32 %v4855_v39, %v8217_v37  ;;  %v8378_v56 = vadd.f32 %v4839_v52, %v8217_v37  ;;  %v4724_v13 = vmax.f32 %v4692_v33, 0.0 }
 0x5fd   :  { %v4708_v34 = vmax.f32 %v4676_v50, 0.0  ;;  %v8381_v0 = vadd.f32 %v4856_v63, %v8217_v37  ;;  %v8384_v10 = vadd.f32 %v4840_v57, %v8217_v37  ;;  %v4859_v41 = vmul.f32 %v8215_v31, %v8774_v53  ;;  %v8783_v53 = vld [vmem:[#allocation8_spill] sm:$0xff] }
 0x5fe   :  { %v4860_v7 = vmul.f32 %v8215_v31, %v8775_v38  ;;  %v4861_v5 = vmul.f32 %v8215_v31, %v8776_v2  ;;  %v4694_v52 = vadd.f32 %v8217_v37, %v8269_v21  ;;  %v4678_v51 = vadd.f32 %v8217_v37, %v8251_v24  ;;  %v8784_v38 = vld [vmem:[#allocation30_spill] sm:$0xff] }
 0x5ff   :  { %v8397_v57 = vadd.f32 %v4857_v44, %v8217_v37  ;;  %v8400_v32 = vadd.f32 %v4841_v35, %v8217_v37  ;;  %v8403_v45 = vadd.f32 %v4858_v36, %v8217_v37  ;;  %v8406_v55 = vadd.f32 %v4842_v23, %v8217_v37  ;;  %v8778_v23 = vld [vmem:[#allocation23_spill] sm:$0xff] }
 0x600   :  { %4771 = vxpose.xlu1.b32.cont [5/16] (narrow) %v4723_v8, 8  ;;  %4739 = vxpose.xlu0.b32.cont [5/16] (narrow) %v4707_v26, 8  ;;  %v8409_v60 = vadd.f32 %v4859_v41, %v8217_v37  ;;  %v8412_v21 = vadd.f32 %v4843_v16, %v8217_v37  ;;  %v4725_v9 = vmax.f32 %v4693_v27, 0.0  ;;  %v4709_v24 = vmax.f32 %v4677_v12, 0.0  ;;  %v8780_v16 = vld [vmem:[#allocation42_spill] sm:$0xff] }
 0x601   :  { %v8415_v58 = vadd.f32 %v4860_v7, %v8217_v37  ;;  %v8419_v35 = vadd.f32 %v8301_v19, %v8217_v37  ;;  %v4847_v28 = vmul.f32 %v8215_v31, %v8777_v29  ;;  %v4848_v25 = vmul.f32 %v8215_v31, %v8778_v23  ;;  %v8786_v29 = vld [vmem:[#allocation33_spill] sm:$0xff] }
 0x602   :  { %v4862_v48 = vmul.f32 %v8215_v31, %v8779_v47  ;;  %v4864_v14 = vmul.f32 %v8215_v31, %v8780_v16  ;;  %v4726_v39 = vmax.f32 %v4694_v52, 0.0  ;;  %v4710_v33 = vmax.f32 %v4678_v51, 0.0  ;;  %v8787_v16 = vld [vmem:[#allocation18_spill] sm:$0xff] }
 0x603   :  { %v8430_v50 = vadd.f32 %v4861_v5, %v8217_v37  ;;  %v8434_v19 = vadd.f32 %v8305_v4, %v8217_v37  ;;  %v8441_v26 = vadd.f32 %v8309_v61, %v8217_v37  ;;  %v8445_v3 = vadd.f32 %v8233_v15, %v8217_v37  ;;  %v8781_v61 = vld [vmem:[#allocation9_spill] sm:$0xff] }
 0x604   :  { %4772 = vxpose.xlu1.b32.cont [6/16] (narrow) %v4724_v13, 8  ;;  %4740 = vxpose.xlu0.b32.cont [6/16] (narrow) %v4708_v34, 8  ;;  %v8437_v8 = vadd.f32 %v4862_v48, %v8217_v37  ;;  %v8448_v63 = vadd.f32 %v4847_v28, %v8217_v37  ;;  %v4695_v42 = vadd.f32 %v8217_v37, %v8273_v54  ;;  %v8782_v15 = vld [vmem:[#allocation29_spill] sm:$0xff] }
 0x605   :  { %v4679_v4 = vadd.f32 %v8217_v37, %v8255_v11  ;;  %v8455_v44 = vadd.f32 %v4864_v14, %v8217_v37  ;;  %v8458_v36 = vadd.f32 %v4848_v25, %v8217_v37  ;;  %v4642_v27 = vmul.f32 %v8215_v31, %v8781_v61 }
 0x606   :  { %v4658_v12 = vmul.f32 %v8215_v31, %v8782_v15  ;;  %v4727_v13 = vmax.f32 %v4695_v42, 0.0  ;;  %v4643_v41 = vmul.f32 %v8215_v31, %v8783_v53  ;;  %v4659_v7 = vmul.f32 %v8215_v31, %v8784_v38  ;;  %v8789_v15 = vld [vmem:[#allocation19_spill] sm:$0xff]  ;;  %v8791_v38 = vld [vmem:[#allocation20_spill] sm:$0xff] }
 0x607   :  { %v4711_v34 = vmax.f32 %v4679_v4, 0.0  ;;  %v4680_v11 = vadd.f32 %v8217_v37, %v4642_v27  ;;  %v4660_v28 = vmul.f32 %v8215_v31, %v8786_v29  ;;  %v4645_v14 = vmul.f32 %v8215_v31, %v8787_v16  ;;  %v8793_v29 = vld [vmem:[#allocation21_spill] sm:$0xff] }
 0x608   :  { %4773 = vxpose.xlu1.b32.cont [7/16] (narrow) %v4725_v9, 8  ;;  %4741 = vxpose.xlu0.b32.cont [7/16] (narrow) %v4709_v24, 8  ;;  %v4696_v54 = vadd.f32 %v8217_v37, %v4658_v12  ;;  %v4697_v52 = vadd.f32 %v8217_v37, %v4659_v7  ;;  %v4681_v51 = vadd.f32 %v8217_v37, %v4643_v41  ;;  %v8785_v9 = vld [vmem:[#allocation17_spill] sm:$0xff] }
 0x609   :  { %v4712_v5 = vmax.f32 %v4680_v11, 0.0  ;;  %v4644_v24 = vmul.f32 %v8215_v31, %v8785_v9  ;;  %v4698_v47 = vadd.f32 %v8217_v37, %v4660_v28  ;;  %v4683_v27 = vadd.f32 %v8217_v37, %v4645_v14 }
 0x60a   :  { %v4728_v2 = vmax.f32 %v4696_v54, 0.0  ;;  %v4729_v23 = vmax.f32 %v4697_v52, 0.0  ;;  %v4713_v25 = vmax.f32 %v4681_v51, 0.0  ;;  %v4646_v12 = vmul.f32 %v8215_v31, %v8789_v15 }
 0x60b   :  { %v4682_v48 = vadd.f32 %v8217_v37, %v4644_v24  ;;  %v4730_v42 = vmax.f32 %v4698_v47, 0.0  ;;  %v4715_v11 = vmax.f32 %v4683_v27, 0.0  ;;  %v4647_v7 = vmul.f32 %v8215_v31, %v8791_v38 }
 0x60c   :  { %4774 = vxpose.xlu1.b32.cont [8/16] (narrow) %v4726_v39, 8  ;;  %4742 = vxpose.xlu0.b32.cont [8/16] (narrow) %v4710_v33, 8  ;;  %v8788_v39 = vld [vmem:[#allocation34_spill] sm:$0xff]  ;;  %v4684_v41 = vadd.f32 %v8217_v37, %v4646_v12  ;;  %v4648_v28 = vmul.f32 %v8215_v31, %v8793_v29  ;;  %v4899_v27 = vmax.f32 %v8345_v30, 0.0  ;;  %v4916_v15 = vmax.f32 %v8348_v18, 0.0 }
 0x60d   :  { %v4661_v33 = vmul.f32 %v8215_v31, %v8788_v39  ;;  %v4714_v4 = vmax.f32 %v4682_v48, 0.0  ;;  %v4685_v24 = vadd.f32 %v8217_v37, %v4647_v7  ;;  %v4919_v30 = vmax.f32 %v8375_v49, 0.0 }
 0x60e   :  { %v4716_v51 = vmax.f32 %v4684_v41, 0.0  ;;  %v4686_v14 = vadd.f32 %v8217_v37, %v4648_v28  ;;  %v4903_v18 = vmax.f32 %v8378_v56, 0.0  ;;  %v4906_v49 = vmax.f32 %v8406_v55, 0.0 }
 0x60f   :  { %v4699_v61 = vadd.f32 %v8217_v37, %v4661_v33  ;;  %v4717_v48 = vmax.f32 %v4685_v24, 0.0  ;;  %v4923_v56 = vmax.f32 %v8409_v60, 0.0  ;;  %v4926_v55 = vmax.f32 %v8437_v8, 0.0 }
 0x610   :  { %4775 = vxpose.xlu1.b32.cont [9/16] (narrow) %v4727_v13, 8  ;;  %4743 = vxpose.xlu0.b32.cont [9/16] (narrow) %v4711_v34, 8  ;;  %v8790_v13 = vld [vmem:[#allocation37_spill] sm:$0xff]  ;;  %v4718_v33 = vmax.f32 %v4686_v14, 0.0  ;;  %v4910_v60 = vmax.f32 %v8441_v26, 0.0 }
 0x611   :  { %v4662_v34 = vmul.f32 %v8215_v31, %v8790_v13  ;;  %v4731_v54 = vmax.f32 %v4699_v61, 0.0  ;;  %v4898_v61 = vmax.f32 %v8339_v59, 0.0  ;;  %v4918_v59 = vmax.f32 %v8369_v46, 0.0 }
 0x612   :  { %v4905_v46 = vmax.f32 %v8400_v32, 0.0  ;;  %v4925_v32 = vmax.f32 %v8430_v50, 0.0  ;;  %v4912_v50 = vmax.f32 %v8458_v36, 0.0 }
 0x613   :  { %v4700_v53 = vadd.f32 %v8217_v37, %v4662_v34 }
 0x614   :  { %4776 = vxpose.xlu1.b32.cont [10/16] (narrow) %v4728_v2, 8  ;;  %4744 = vxpose.xlu0.b32.cont [10/16] (narrow) %v4712_v5, 8  ;;  %v8792_v2 = vld [vmem:[#allocation40_spill] sm:$0xff] }
 0x615   :  { %v4663_v5 = vmul.f32 %v8215_v31, %v8792_v2  ;;  %v4732_v52 = vmax.f32 %v4700_v53, 0.0 }
 0x617   :  { %v4701_v9 = vadd.f32 %v8217_v37, %v4663_v5 }
 0x618   :  { %4777 = vxpose.xlu1.b32.cont [11/16] (narrow) %v4729_v23, 8  ;;  %4745 = vxpose.xlu0.b32.cont [11/16] (narrow) %v4713_v25, 8  ;;  %v8794_v23 = vld [vmem:[#allocation12_spill] sm:$0xff] }
 0x619   :  { %v4664_v25 = vmul.f32 %v8215_v31, %v8794_v23  ;;  %v4733_v47 = vmax.f32 %v4701_v9, 0.0  ;;  %v4914_v31 = vmax.f32 %v8336_v17, 0.0  ;;  %v4901_v17 = vmax.f32 %v8366_v1, 0.0 }
 0x61a   :  { %v4921_v1 = vmax.f32 %v8397_v57, 0.0  ;;  %v4908_v57 = vmax.f32 %v8419_v35, 0.0  ;;  %v4928_v35 = vmax.f32 %v8455_v44, 0.0 }
 0x61b   :  { %v4702_v16 = vadd.f32 %v8217_v37, %v4664_v25  ;;  %v4915_v37 = vmax.f32 %v8342_v62, 0.0  ;;  %v4902_v62 = vmax.f32 %v8372_v6, 0.0  ;;  %v4922_v6 = vmax.f32 %v8403_v45, 0.0 }
 0x61c   :  { %4778 = vxpose.xlu1.b32.cont [12/16] (narrow) %v4730_v42, 8  ;;  %4746 = vxpose.xlu0.b32.cont [12/16] (narrow) %v4714_v4, 8  ;;  %v4913_v42 = vmax.f32 %v8330_v22, 0.0  ;;  %v4897_v4 = vmax.f32 %v8333_v20, 0.0  ;;  %v4900_v22 = vmax.f32 %v8351_v40, 0.0  ;;  %v4917_v20 = vmax.f32 %v8363_v43, 0.0 }
 0x61d   :  { %v4734_v39 = vmax.f32 %v4702_v16, 0.0  ;;  %v4920_v40 = vmax.f32 %v8381_v0, 0.0  ;;  %v4904_v43 = vmax.f32 %v8384_v10, 0.0  ;;  %v4907_v0 = vmax.f32 %v8412_v21, 0.0 }
 0x61e   :  { %v4924_v10 = vmax.f32 %v8415_v58, 0.0  ;;  %v4909_v45 = vmax.f32 %v8434_v19, 0.0  ;;  %v4927_v21 = vmax.f32 %v8445_v3, 0.0  ;;  %v4911_v58 = vmax.f32 %v8448_v63, 0.0 }
 0x620   :  { %4779 = vxpose.xlu1.b32.cont [13/16] (narrow) %v4731_v54, 8  ;;  %4747 = vxpose.xlu0.b32.cont [13/16] (narrow) %v4715_v11, 8 }
 0x624   :  { %4780 = vxpose.xlu1.b32.cont [14/16] (narrow) %v4732_v52, 8  ;;  %4748 = vxpose.xlu0.b32.cont [14/16] (narrow) %v4716_v51, 8 }
 0x628   :  { %4781 = vxpose.xlu1.b32.cont [15/16] (narrow) %v4733_v47, 8  ;;  %4749 = vxpose.xlu0.b32.cont [15/16] (narrow) %v4717_v48, 8 }
 0x62c   :  { %4782 = vxpose.xlu1.b32.end [16/16] (narrow) %v4734_v39, 8  ;;  %4750 = vxpose.xlu0.b32.end [16/16] (narrow) %v4718_v33, 8 }
 0x630   :  { %4961 = vxpose.xlu1.b32.start [1/16] (narrow) %v4913_v42, 8  ;;  %4929 = vxpose.xlu0.b32.start [1/16] (narrow) %v4897_v4, 8 }
 0x634   :  { %4962 = vxpose.xlu1.b32.cont [2/16] (narrow) %v4914_v31, 8  ;;  %4930 = vxpose.xlu0.b32.cont [2/16] (narrow) %v4898_v61, 8 }
 0x638   :  { %4963 = vxpose.xlu1.b32.cont [3/16] (narrow) %v4915_v37, 8  ;;  %4931 = vxpose.xlu0.b32.cont [3/16] (narrow) %v4899_v27, 8 }
 0x63c   :  { %4964 = vxpose.xlu1.b32.cont [4/16] (narrow) %v4916_v15, 8  ;;  %4932 = vxpose.xlu0.b32.cont [4/16] (narrow) %v4900_v22, 8 }
 0x640   :  { %4965 = vxpose.xlu1.b32.cont [5/16] (narrow) %v4917_v20, 8  ;;  %4933 = vxpose.xlu0.b32.cont [5/16] (narrow) %v4901_v17, 8 }
 0x644   :  { %4966 = vxpose.xlu1.b32.cont [6/16] (narrow) %v4918_v59, 8  ;;  %4934 = vxpose.xlu0.b32.cont [6/16] (narrow) %v4902_v62, 8 }
 0x648   :  { %4967 = vxpose.xlu1.b32.cont [7/16] (narrow) %v4919_v30, 8  ;;  %4935 = vxpose.xlu0.b32.cont [7/16] (narrow) %v4903_v18, 8 }
 0x64c   :  { %4968 = vxpose.xlu1.b32.cont [8/16] (narrow) %v4920_v40, 8  ;;  %4936 = vxpose.xlu0.b32.cont [8/16] (narrow) %v4904_v43, 8 }
 0x650   :  { %4969 = vxpose.xlu1.b32.cont [9/16] (narrow) %v4921_v1, 8  ;;  %4937 = vxpose.xlu0.b32.cont [9/16] (narrow) %v4905_v46, 8 }
 0x654   :  { %4970 = vxpose.xlu1.b32.cont [10/16] (narrow) %v4922_v6, 8  ;;  %4938 = vxpose.xlu0.b32.cont [10/16] (narrow) %v4906_v49, 8 }
 0x658   :  { %4971 = vxpose.xlu1.b32.cont [11/16] (narrow) %v4923_v56, 8  ;;  %4939 = vxpose.xlu0.b32.cont [11/16] (narrow) %v4907_v0, 8 }
 0x65c   :  { %4972 = vxpose.xlu1.b32.cont [12/16] (narrow) %v4924_v10, 8  ;;  %4940 = vxpose.xlu0.b32.cont [12/16] (narrow) %v4908_v57, 8 }
 0x660   :  { %4973 = vxpose.xlu1.b32.cont [13/16] (narrow) %v4925_v32, 8  ;;  %4941 = vxpose.xlu0.b32.cont [13/16] (narrow) %v4909_v45, 8 }
 0x664   :  { %4974 = vxpose.xlu1.b32.cont [14/16] (narrow) %v4926_v55, 8  ;;  %4942 = vxpose.xlu0.b32.cont [14/16] (narrow) %v4910_v60, 8 }
 0x668   :  { %4975 = vxpose.xlu1.b32.cont [15/16] (narrow) %v4927_v21, 8  ;;  %4943 = vxpose.xlu0.b32.cont [15/16] (narrow) %v4911_v58, 8 }
 0x66c   :  { %4976 = vxpose.xlu1.b32.end [16/16] (narrow) %v4928_v35, 8  ;;  %4944 = vxpose.xlu0.b32.end [16/16] (narrow) %v4912_v50, 8  ;;  %v4783_v19 = vpop.trf.xlu1  ;;  %v4751_v12 = vpop.trf.xlu0 }
 0x66d   :  { %4800 = vst [vmem:[#allocation5 + $0x8] sm:$0xff] %v4783_v19  ;;  %4799 = vst [vmem:[#allocation5] sm:$0xff] %v4751_v12 }
 0x6ac   :  { %v4977_v8 = vpop.trf.xlu1  ;;  %v4945_v26 = vpop.trf.xlu0 }
 0x6ad   :  { %4995 = vst [vmem:[#allocation5 + $0x18] sm:$0xff] %v4977_v8  ;;  %4994 = vst [vmem:[#allocation5 + $0x10] sm:$0xff] %v4945_v26 }
 0x6ae   :  { %5326 = shalt.err (!%p5323_p4)
}
 0x6af   :  { %s5347_s28 = smov 256  }
 0x6b0   :  { %5007 = dma.vmem_to_hbm [thread:$0]  %s5002_s4, 512, %s8543_s5, [#allocation6], %s5347_s28, %s5347_s28, %s5341_s12  }
 0x6b1   :  { %5335 = dma.done.wait [#allocation6], 512  }
 0x6b2   :  { %5336 = vsyncadd [#allocation6], 4294966784 }
 0x6b3   :  { %5011 = vsyncpa [#allocation6], 1 }

</bundles_post_ra>
